<compile_context>
chip_gen: v7x
topology: tpu7x:2x2x1
jax: 0.10.0
libtpu: 0.0.40
codegen_flags: <defaults>
</compile_context>

<pallas_src>
import jax
import jax.numpy as jnp
from jax import lax
from jax.experimental import pallas as pl
from jax.experimental.pallas import tpu as pltpu


def _leaky(v):
    return jnp.where(v > 0, v, 0.2 * v)


def resblock_kernel(x_ref, w0_ref, b0_ref, w1_ref, b1_ref, w2_ref, b2_ref,
                    out_ref, xp_ref, ap_ref):
    """One batch element per grid step (batch dim squeezed).

    x_ref  : (H, W, Cin)        NHWC input tile (channels on lanes)
    w0_ref : (Cin, Cp)          1x1 conv weight (Cout zero-padded to Cp)
    b0_ref : (1, Cp)
    w1_ref : (9, Cin, Cin)      3x3 conv1 weight, taps flattened on axis 0
    b1_ref : (1, Cin)
    w2_ref : (9, Cin, Cp)       3x3 conv2 weight (Cout zero-padded to Cp)
    b2_ref : (1, Cp)
    out_ref: (H, W, Cp)
    xp_ref : VMEM (H+2, W+2, Cin)  zero-padded input scratch
    ap_ref : VMEM (H+2, W+2, Cin)  zero-padded LeakyReLU(conv1(x)) scratch
    """
    H, W, Cp = out_ref.shape
    Cin = x_ref.shape[2]
    HW = H * W

    # Zero the padded scratches every step (halos must be 0; re-zeroing keeps
    # the kernel correct when the batch axis is split across TensorCores).
    xp_ref[...] = jnp.zeros_like(xp_ref)
    ap_ref[...] = jnp.zeros_like(ap_ref)

    # In-kernel spatial zero-padding (no HBM pad pass in the wrapper).
    xp_ref[pl.ds(1, H), pl.ds(1, W), :] = x_ref[...]

    # ---- branch 2, pass 1: a = LeakyReLU(conv1_3x3(x)) --------------------
    # 9 whole-image shifted-slice matmuls; bias folded into accumulator init.
    acc1 = jnp.broadcast_to(b1_ref[...], (HW, Cin)).astype(jnp.float32)
    for ky in range(3):
        for kx in range(3):
            patch = xp_ref[pl.ds(ky, H), pl.ds(kx, W), :].reshape(HW, Cin)
            acc1 = acc1 + jnp.dot(patch, w1_ref[3 * ky + kx],
                                  preferred_element_type=jnp.float32)
    ap_ref[pl.ds(1, H), pl.ds(1, W), :] = _leaky(acc1).reshape(H, W, Cin)

    # ---- branch 1: LeakyReLU(conv_1x1(x)) ----------------------------------
    xin = x_ref[...].reshape(HW, Cin)
    br1 = _leaky(jnp.dot(xin, w0_ref[...],
                         preferred_element_type=jnp.float32) + b0_ref[...])

    # ---- branch 2, pass 2: LeakyReLU(conv2_3x3(a)) -------------------------
    acc2 = jnp.broadcast_to(b2_ref[...], (HW, Cp)).astype(jnp.float32)
    for ky in range(3):
        for kx in range(3):
            patch = ap_ref[pl.ds(ky, H), pl.ds(kx, W), :].reshape(HW, Cin)
            acc2 = acc2 + jnp.dot(patch, w2_ref[3 * ky + kx],
                                  preferred_element_type=jnp.float32)

    out_ref[...] = (br1 + _leaky(acc2)).reshape(H, W, Cp).astype(out_ref.dtype)


@jax.jit
def resblock_pallas(x_nchw, w0_oihw, b0, w1_oihw, b1, w2_oihw, b2):
    """x_nchw: (B, Cin, H, W) f32; weights in PyTorch OIHW layout.

    Returns (B, Cout, H, W) f32, matching ResBlock.forward.
    """
    B, Cin, H, W = x_nchw.shape
    Cout = w0_oihw.shape[0]
    Cp = ((Cout + 127) // 128) * 128          # lane-dense padded out channels

    # Layout plumbing (plain XLA glue outside the kernel):
    x_nhwc = jnp.transpose(x_nchw, (0, 2, 3, 1))                    # chans->lanes

    w0 = jnp.transpose(w0_oihw[:, :, 0, 0], (1, 0))                 # (Cin, Cout)
    w0 = jnp.pad(w0, ((0, 0), (0, Cp - Cout)))
    b0p = jnp.pad(b0.reshape(1, Cout), ((0, 0), (0, Cp - Cout)))

    w1 = jnp.transpose(w1_oihw, (2, 3, 1, 0)).reshape(9, Cin, Cin)  # (9,Cin,Cin)
    b1p = b1.reshape(1, Cin)

    w2 = jnp.transpose(w2_oihw, (2, 3, 1, 0))                       # (3,3,Cin,Cout)
    w2 = jnp.pad(w2, ((0, 0), (0, 0), (0, 0), (0, Cp - Cout))).reshape(9, Cin, Cp)
    b2p = jnp.pad(b2.reshape(1, Cout), ((0, 0), (0, Cp - Cout)))

    out_p = pl.pallas_call(
        resblock_kernel,
        out_shape=jax.ShapeDtypeStruct((B, H, W, Cp), jnp.float32),
        grid_spec=pltpu.PrefetchScalarGridSpec(
            num_scalar_prefetch=0,
            grid=(B,),
            in_specs=[
                pl.BlockSpec((None, H, W, Cin), lambda b: (b, 0, 0, 0)),
                pl.BlockSpec((Cin, Cp), lambda b: (0, 0)),
                pl.BlockSpec((1, Cp), lambda b: (0, 0)),
                pl.BlockSpec((9, Cin, Cin), lambda b: (0, 0, 0)),
                pl.BlockSpec((1, Cin), lambda b: (0, 0)),
                pl.BlockSpec((9, Cin, Cp), lambda b: (0, 0, 0)),
                pl.BlockSpec((1, Cp), lambda b: (0, 0)),
            ],
            out_specs=pl.BlockSpec((None, H, W, Cp), lambda b: (b, 0, 0, 0)),
            scratch_shapes=[pltpu.VMEM((H + 2, W + 2, Cin), jnp.float32),
                            pltpu.VMEM((H + 2, W + 2, Cin), jnp.float32)],
        ),
        compiler_params=pltpu.CompilerParams(
            dimension_semantics=("parallel",)),
    )(x_nhwc, w0, b0p, w1, b1p, w2, b2p)

    # Slice off channel padding, back to NCHW.
    return jnp.transpose(out_p[..., :Cout], (0, 3, 1, 2))


def _reference(x, w0_oihw, b0, w1_oihw, b1, w2_oihw, b2):
    """Pure-JAX NCHW reference mirroring the PyTorch forward."""
    dn = lax.conv_dimension_numbers(x.shape, w0_oihw.shape,
                                    ("NCHW", "OIHW", "NCHW"))

    def conv(inp, w, b, pad):
        y = lax.conv_general_dilated(inp, w, (1, 1), [(pad, pad), (pad, pad)],
                                     dimension_numbers=dn)
        return y + b[None, :, None, None]

    br1 = _leaky(conv(x, w0_oihw, b0, 0))
    a = _leaky(conv(x, w1_oihw, b1, 1))
    br2 = _leaky(conv(a, w2_oihw, b2, 1))
    return br1 + br2


if __name__ == "__main__":
    B, Cin, Cout, H, W = 2, 4, 8, 16, 16

    key = jax.random.PRNGKey(0)
    kx, k0, kb0, k1, kb1, k2, kb2 = jax.random.split(key, 7)

    x = jax.random.normal(kx, (B, Cin, H, W), jnp.float32)

    # PyTorch OIHW conv-weight layout.
    w0_oihw = 0.1 * jax.random.normal(k0, (Cout, Cin, 1, 1), jnp.float32)
    b0 = 0.1 * jax.random.normal(kb0, (Cout,), jnp.float32)
    w1_oihw = 0.1 * jax.random.normal(k1, (Cin, Cin, 3, 3), jnp.float32)
    b1 = 0.1 * jax.random.normal(kb1, (Cin,), jnp.float32)
    w2_oihw = 0.1 * jax.random.normal(k2, (Cout, Cin, 3, 3), jnp.float32)
    b2 = 0.1 * jax.random.normal(kb2, (Cout,), jnp.float32)

    out = resblock_pallas(x, w0_oihw, b0, w1_oihw, b1, w2_oihw, b2)
    out = jax.block_until_ready(out)

    ref = _reference(x, w0_oihw, b0, w1_oihw, b1, w2_oihw, b2)
    assert out.shape == (B, Cout, H, W)
    assert jnp.allclose(out, ref, atol=1e-4, rtol=1e-4), (
        float(jnp.max(jnp.abs(out - ref))))

    print("KERNEL_OK")
</pallas_src>

<mosaic_0001>
module attributes {stable_mosaic.version = 11 : i64} {
  func.func @resblock_kernel(%arg0: i32, %arg1: memref<1x16x16x4xf32, #tpu.memory_space<vmem>>, %arg2: memref<4x128xf32, #tpu.memory_space<vmem>>, %arg3: memref<1x128xf32, #tpu.memory_space<vmem>>, %arg4: memref<9x4x4xf32, #tpu.memory_space<vmem>>, %arg5: memref<1x4xf32, #tpu.memory_space<vmem>>, %arg6: memref<9x4x128xf32, #tpu.memory_space<vmem>>, %arg7: memref<1x128xf32, #tpu.memory_space<vmem>>, %arg8: memref<1x16x16x128xf32, #tpu.memory_space<vmem>>, %arg9: memref<18x18x4xf32, #tpu.memory_space<vmem>>, %arg10: memref<18x18x4xf32, #tpu.memory_space<vmem>>) attributes {dimension_semantics = [#tpu.dimension_semantics<parallel>], iteration_bounds = array<i64: 2>, scalar_prefetch = 0 : i64, scratch_operands = 2 : i64, tpu.core_type = #tpu.core_type<tc>, window_params = [{transform_indices = @transform_0, window_bounds = array<i64: 1, 16, 16, 4>}, {pipeline_mode = #tpu.pipeline_mode<synchronous>, transform_indices = @transform_1, window_bounds = array<i64: 4, 128>}, {pipeline_mode = #tpu.pipeline_mode<synchronous>, transform_indices = @transform_2, window_bounds = array<i64: 1, 128>}, {pipeline_mode = #tpu.pipeline_mode<synchronous>, transform_indices = @transform_3, window_bounds = array<i64: 9, 4, 4>}, {pipeline_mode = #tpu.pipeline_mode<synchronous>, transform_indices = @transform_4, window_bounds = array<i64: 1, 4>}, {pipeline_mode = #tpu.pipeline_mode<synchronous>, transform_indices = @transform_5, window_bounds = array<i64: 9, 4, 128>}, {pipeline_mode = #tpu.pipeline_mode<synchronous>, transform_indices = @transform_6, window_bounds = array<i64: 1, 128>}, {transform_indices = @transform_7, window_bounds = array<i64: 1, 16, 16, 128>}]} {
    %cst = arith.constant 0.000000e+00 : f32
    %0 = vector.broadcast %cst : f32 to vector<18x18x4xf32>
    %c0 = arith.constant 0 : index
    %c0_0 = arith.constant 0 : index
    %c0_1 = arith.constant 0 : index
    %1 = vector.load %arg9[%c0, %c0_0, %c0_1] : memref<18x18x4xf32, #tpu.memory_space<vmem>>, vector<18x18x4xf32>
    tpu.vector_store %arg9[%c0, %c0_0, %c0_1], %0 {strides = array<i32>} : memref<18x18x4xf32, #tpu.memory_space<vmem>>, vector<18x18x4xf32>,
    %cst_2 = arith.constant 0.000000e+00 : f32
    %2 = vector.broadcast %cst_2 : f32 to vector<18x18x4xf32>
    %c0_3 = arith.constant 0 : index
    %c0_4 = arith.constant 0 : index
    %c0_5 = arith.constant 0 : index
    %3 = vector.load %arg10[%c0_3, %c0_4, %c0_5] : memref<18x18x4xf32, #tpu.memory_space<vmem>>, vector<18x18x4xf32>
    tpu.vector_store %arg10[%c0_3, %c0_4, %c0_5], %2 {strides = array<i32>} : memref<18x18x4xf32, #tpu.memory_space<vmem>>, vector<18x18x4xf32>,
    %c0_6 = arith.constant 0 : index
    %c0_7 = arith.constant 0 : index
    %c0_8 = arith.constant 0 : index
    %c0_9 = arith.constant 0 : index
    %4 = vector.load %arg1[%c0_6, %c0_7, %c0_8, %c0_9] : memref<1x16x16x4xf32, #tpu.memory_space<vmem>>, vector<1x16x16x4xf32>
    %5 = vector.shape_cast %4 : vector<1x16x16x4xf32> to vector<16x16x4xf32>
    %c1 = arith.constant 1 : index
    %c1_10 = arith.constant 1 : index
    %c0_11 = arith.constant 0 : index
    %6 = vector.load %arg9[%c1, %c1_10, %c0_11] : memref<18x18x4xf32, #tpu.memory_space<vmem>>, vector<16x16x4xf32>
    tpu.vector_store %arg9[%c1, %c1_10, %c0_11], %5 {strides = array<i32>} : memref<18x18x4xf32, #tpu.memory_space<vmem>>, vector<16x16x4xf32>,
    %c0_12 = arith.constant 0 : index
    %c0_13 = arith.constant 0 : index
    %7 = vector.load %arg5[%c0_12, %c0_13] : memref<1x4xf32, #tpu.memory_space<vmem>>, vector<1x4xf32>
    %8 = vector.shape_cast %7 : vector<1x4xf32> to vector<1x4xf32>
    %9 = vector.broadcast %8 : vector<1x4xf32> to vector<256x4xf32>
    %c0_14 = arith.constant 0 : index
    %c0_15 = arith.constant 0 : index
    %c0_16 = arith.constant 0 : index
    %10 = vector.load %arg9[%c0_14, %c0_15, %c0_16] : memref<18x18x4xf32, #tpu.memory_space<vmem>>, vector<16x16x4xf32>
    %11 = vector.shape_cast %10 : vector<16x16x4xf32> to vector<256x4xf32>
    %c0_17 = arith.constant 0 : index
    %c0_18 = arith.constant 0 : index
    %c0_19 = arith.constant 0 : index
    %12 = vector.load %arg4[%c0_17, %c0_18, %c0_19] : memref<9x4x4xf32, #tpu.memory_space<vmem>>, vector<1x4x4xf32>
    %13 = vector.shape_cast %12 : vector<1x4x4xf32> to vector<4x4xf32>
    %cst_20 = arith.constant dense<0.000000e+00> : vector<256x4xf32>
    %14 = tpu.matmul %11, %13, %cst_20 {dimension_numbers = #tpu.dot_dimension_numbers<[1], [0], [0], [1], [0, 0, 1, 1], [], []>} : vector<256x4xf32>, vector<4x4xf32>, vector<256x4xf32> -> vector<256x4xf32>
    %15 = arith.addf %9, %14 : vector<256x4xf32>
    %c0_21 = arith.constant 0 : index
    %c1_22 = arith.constant 1 : index
    %c0_23 = arith.constant 0 : index
    %16 = vector.load %arg9[%c0_21, %c1_22, %c0_23] : memref<18x18x4xf32, #tpu.memory_space<vmem>>, vector<16x16x4xf32>
    %17 = vector.shape_cast %16 : vector<16x16x4xf32> to vector<256x4xf32>
    %c1_24 = arith.constant 1 : index
    %c0_25 = arith.constant 0 : index
    %c0_26 = arith.constant 0 : index
    %18 = vector.load %arg4[%c1_24, %c0_25, %c0_26] : memref<9x4x4xf32, #tpu.memory_space<vmem>>, vector<1x4x4xf32>
    %19 = vector.shape_cast %18 : vector<1x4x4xf32> to vector<4x4xf32>
    %cst_27 = arith.constant dense<0.000000e+00> : vector<256x4xf32>
    %20 = tpu.matmul %17, %19, %cst_27 {dimension_numbers = #tpu.dot_dimension_numbers<[1], [0], [0], [1], [0, 0, 1, 1], [], []>} : vector<256x4xf32>, vector<4x4xf32>, vector<256x4xf32> -> vector<256x4xf32>
    %21 = arith.addf %15, %20 : vector<256x4xf32>
    %c0_28 = arith.constant 0 : index
    %c2 = arith.constant 2 : index
    %c0_29 = arith.constant 0 : index
    %22 = vector.load %arg9[%c0_28, %c2, %c0_29] : memref<18x18x4xf32, #tpu.memory_space<vmem>>, vector<16x16x4xf32>
    %23 = vector.shape_cast %22 : vector<16x16x4xf32> to vector<256x4xf32>
    %c2_30 = arith.constant 2 : index
    %c0_31 = arith.constant 0 : index
    %c0_32 = arith.constant 0 : index
    %24 = vector.load %arg4[%c2_30, %c0_31, %c0_32] : memref<9x4x4xf32, #tpu.memory_space<vmem>>, vector<1x4x4xf32>
    %25 = vector.shape_cast %24 : vector<1x4x4xf32> to vector<4x4xf32>
    %cst_33 = arith.constant dense<0.000000e+00> : vector<256x4xf32>
    %26 = tpu.matmul %23, %25, %cst_33 {dimension_numbers = #tpu.dot_dimension_numbers<[1], [0], [0], [1], [0, 0, 1, 1], [], []>} : vector<256x4xf32>, vector<4x4xf32>, vector<256x4xf32> -> vector<256x4xf32>
    %27 = arith.addf %21, %26 : vector<256x4xf32>
    %c1_34 = arith.constant 1 : index
    %c0_35 = arith.constant 0 : index
    %c0_36 = arith.constant 0 : index
    %28 = vector.load %arg9[%c1_34, %c0_35, %c0_36] : memref<18x18x4xf32, #tpu.memory_space<vmem>>, vector<16x16x4xf32>
    %29 = vector.shape_cast %28 : vector<16x16x4xf32> to vector<256x4xf32>
    %c3 = arith.constant 3 : index
    %c0_37 = arith.constant 0 : index
    %c0_38 = arith.constant 0 : index
    %30 = vector.load %arg4[%c3, %c0_37, %c0_38] : memref<9x4x4xf32, #tpu.memory_space<vmem>>, vector<1x4x4xf32>
    %31 = vector.shape_cast %30 : vector<1x4x4xf32> to vector<4x4xf32>
    %cst_39 = arith.constant dense<0.000000e+00> : vector<256x4xf32>
    %32 = tpu.matmul %29, %31, %cst_39 {dimension_numbers = #tpu.dot_dimension_numbers<[1], [0], [0], [1], [0, 0, 1, 1], [], []>} : vector<256x4xf32>, vector<4x4xf32>, vector<256x4xf32> -> vector<256x4xf32>
    %33 = arith.addf %27, %32 : vector<256x4xf32>
    %c1_40 = arith.constant 1 : index
    %c1_41 = arith.constant 1 : index
    %c0_42 = arith.constant 0 : index
    %34 = vector.load %arg9[%c1_40, %c1_41, %c0_42] : memref<18x18x4xf32, #tpu.memory_space<vmem>>, vector<16x16x4xf32>
    %35 = vector.shape_cast %34 : vector<16x16x4xf32> to vector<256x4xf32>
    %c4 = arith.constant 4 : index
    %c0_43 = arith.constant 0 : index
    %c0_44 = arith.constant 0 : index
    %36 = vector.load %arg4[%c4, %c0_43, %c0_44] : memref<9x4x4xf32, #tpu.memory_space<vmem>>, vector<1x4x4xf32>
    %37 = vector.shape_cast %36 : vector<1x4x4xf32> to vector<4x4xf32>
    %cst_45 = arith.constant dense<0.000000e+00> : vector<256x4xf32>
    %38 = tpu.matmul %35, %37, %cst_45 {dimension_numbers = #tpu.dot_dimension_numbers<[1], [0], [0], [1], [0, 0, 1, 1], [], []>} : vector<256x4xf32>, vector<4x4xf32>, vector<256x4xf32> -> vector<256x4xf32>
    %39 = arith.addf %33, %38 : vector<256x4xf32>
    %c1_46 = arith.constant 1 : index
    %c2_47 = arith.constant 2 : index
    %c0_48 = arith.constant 0 : index
    %40 = vector.load %arg9[%c1_46, %c2_47, %c0_48] : memref<18x18x4xf32, #tpu.memory_space<vmem>>, vector<16x16x4xf32>
    %41 = vector.shape_cast %40 : vector<16x16x4xf32> to vector<256x4xf32>
    %c5 = arith.constant 5 : index
    %c0_49 = arith.constant 0 : index
    %c0_50 = arith.constant 0 : index
    %42 = vector.load %arg4[%c5, %c0_49, %c0_50] : memref<9x4x4xf32, #tpu.memory_space<vmem>>, vector<1x4x4xf32>
    %43 = vector.shape_cast %42 : vector<1x4x4xf32> to vector<4x4xf32>
    %cst_51 = arith.constant dense<0.000000e+00> : vector<256x4xf32>
    %44 = tpu.matmul %41, %43, %cst_51 {dimension_numbers = #tpu.dot_dimension_numbers<[1], [0], [0], [1], [0, 0, 1, 1], [], []>} : vector<256x4xf32>, vector<4x4xf32>, vector<256x4xf32> -> vector<256x4xf32>
    %45 = arith.addf %39, %44 : vector<256x4xf32>
    %c2_52 = arith.constant 2 : index
    %c0_53 = arith.constant 0 : index
    %c0_54 = arith.constant 0 : index
    %46 = vector.load %arg9[%c2_52, %c0_53, %c0_54] : memref<18x18x4xf32, #tpu.memory_space<vmem>>, vector<16x16x4xf32>
    %47 = vector.shape_cast %46 : vector<16x16x4xf32> to vector<256x4xf32>
    %c6 = arith.constant 6 : index
    %c0_55 = arith.constant 0 : index
    %c0_56 = arith.constant 0 : index
    %48 = vector.load %arg4[%c6, %c0_55, %c0_56] : memref<9x4x4xf32, #tpu.memory_space<vmem>>, vector<1x4x4xf32>
    %49 = vector.shape_cast %48 : vector<1x4x4xf32> to vector<4x4xf32>
    %cst_57 = arith.constant dense<0.000000e+00> : vector<256x4xf32>
    %50 = tpu.matmul %47, %49, %cst_57 {dimension_numbers = #tpu.dot_dimension_numbers<[1], [0], [0], [1], [0, 0, 1, 1], [], []>} : vector<256x4xf32>, vector<4x4xf32>, vector<256x4xf32> -> vector<256x4xf32>
    %51 = arith.addf %45, %50 : vector<256x4xf32>
    %c2_58 = arith.constant 2 : index
    %c1_59 = arith.constant 1 : index
    %c0_60 = arith.constant 0 : index
    %52 = vector.load %arg9[%c2_58, %c1_59, %c0_60] : memref<18x18x4xf32, #tpu.memory_space<vmem>>, vector<16x16x4xf32>
    %53 = vector.shape_cast %52 : vector<16x16x4xf32> to vector<256x4xf32>
    %c7 = arith.constant 7 : index
    %c0_61 = arith.constant 0 : index
    %c0_62 = arith.constant 0 : index
    %54 = vector.load %arg4[%c7, %c0_61, %c0_62] : memref<9x4x4xf32, #tpu.memory_space<vmem>>, vector<1x4x4xf32>
    %55 = vector.shape_cast %54 : vector<1x4x4xf32> to vector<4x4xf32>
    %cst_63 = arith.constant dense<0.000000e+00> : vector<256x4xf32>
    %56 = tpu.matmul %53, %55, %cst_63 {dimension_numbers = #tpu.dot_dimension_numbers<[1], [0], [0], [1], [0, 0, 1, 1], [], []>} : vector<256x4xf32>, vector<4x4xf32>, vector<256x4xf32> -> vector<256x4xf32>
    %57 = arith.addf %51, %56 : vector<256x4xf32>
    %c2_64 = arith.constant 2 : index
    %c2_65 = arith.constant 2 : index
    %c0_66 = arith.constant 0 : index
    %58 = vector.load %arg9[%c2_64, %c2_65, %c0_66] : memref<18x18x4xf32, #tpu.memory_space<vmem>>, vector<16x16x4xf32>
    %59 = vector.shape_cast %58 : vector<16x16x4xf32> to vector<256x4xf32>
    %c8 = arith.constant 8 : index
    %c0_67 = arith.constant 0 : index
    %c0_68 = arith.constant 0 : index
    %60 = vector.load %arg4[%c8, %c0_67, %c0_68] : memref<9x4x4xf32, #tpu.memory_space<vmem>>, vector<1x4x4xf32>
    %61 = vector.shape_cast %60 : vector<1x4x4xf32> to vector<4x4xf32>
    %cst_69 = arith.constant dense<0.000000e+00> : vector<256x4xf32>
    %62 = tpu.matmul %59, %61, %cst_69 {dimension_numbers = #tpu.dot_dimension_numbers<[1], [0], [0], [1], [0, 0, 1, 1], [], []>} : vector<256x4xf32>, vector<4x4xf32>, vector<256x4xf32> -> vector<256x4xf32>
    %63 = arith.addf %57, %62 : vector<256x4xf32>
    %cst_70 = arith.constant 0.000000e+00 : f32
    %64 = vector.broadcast %cst_70 : f32 to vector<256x4xf32>
    %65 = arith.cmpf ogt, %63, %64 : vector<256x4xf32>
    %cst_71 = arith.constant 2.000000e-01 : f32
    %66 = vector.broadcast %cst_71 : f32 to vector<256x4xf32>
    %67 = arith.mulf %66, %63 : vector<256x4xf32>
    %68 = arith.select %65, %63, %67 : vector<256x4xi1>, vector<256x4xf32>
    %69 = vector.shape_cast %68 : vector<256x4xf32> to vector<16x16x4xf32>
    %c1_72 = arith.constant 1 : index
    %c1_73 = arith.constant 1 : index
    %c0_74 = arith.constant 0 : index
    %70 = vector.load %arg10[%c1_72, %c1_73, %c0_74] : memref<18x18x4xf32, #tpu.memory_space<vmem>>, vector<16x16x4xf32>
    tpu.vector_store %arg10[%c1_72, %c1_73, %c0_74], %69 {strides = array<i32>} : memref<18x18x4xf32, #tpu.memory_space<vmem>>, vector<16x16x4xf32>,
    %c0_75 = arith.constant 0 : index
    %c0_76 = arith.constant 0 : index
    %c0_77 = arith.constant 0 : index
    %c0_78 = arith.constant 0 : index
    %71 = vector.load %arg1[%c0_75, %c0_76, %c0_77, %c0_78] : memref<1x16x16x4xf32, #tpu.memory_space<vmem>>, vector<1x16x16x4xf32>
    %72 = vector.shape_cast %71 : vector<1x16x16x4xf32> to vector<16x16x4xf32>
    %73 = vector.shape_cast %72 : vector<16x16x4xf32> to vector<256x4xf32>
    %c0_79 = arith.constant 0 : index
    %c0_80 = arith.constant 0 : index
    %74 = vector.load %arg2[%c0_79, %c0_80] : memref<4x128xf32, #tpu.memory_space<vmem>>, vector<4x128xf32>
    %cst_81 = arith.constant dense<0.000000e+00> : vector<256x128xf32>
    %75 = tpu.matmul %73, %74, %cst_81 {dimension_numbers = #tpu.dot_dimension_numbers<[1], [0], [0], [1], [0, 0, 1, 1], [], []>} : vector<256x4xf32>, vector<4x128xf32>, vector<256x128xf32> -> vector<256x128xf32>
    %c0_82 = arith.constant 0 : index
    %c0_83 = arith.constant 0 : index
    %76 = vector.load %arg3[%c0_82, %c0_83] : memref<1x128xf32, #tpu.memory_space<vmem>>, vector<1x128xf32>
    %77 = vector.broadcast %76 : vector<1x128xf32> to vector<256x128xf32>
    %78 = arith.addf %75, %77 : vector<256x128xf32>
    %cst_84 = arith.constant 0.000000e+00 : f32
    %79 = vector.broadcast %cst_84 : f32 to vector<256x128xf32>
    %80 = arith.cmpf ogt, %78, %79 : vector<256x128xf32>
    %cst_85 = arith.constant 2.000000e-01 : f32
    %81 = vector.broadcast %cst_85 : f32 to vector<256x128xf32>
    %82 = arith.mulf %81, %78 : vector<256x128xf32>
    %83 = arith.select %80, %78, %82 : vector<256x128xi1>, vector<256x128xf32>
    %c0_86 = arith.constant 0 : index
    %c0_87 = arith.constant 0 : index
    %84 = vector.load %arg7[%c0_86, %c0_87] : memref<1x128xf32, #tpu.memory_space<vmem>>, vector<1x128xf32>
    %85 = vector.shape_cast %84 : vector<1x128xf32> to vector<1x128xf32>
    %86 = vector.broadcast %85 : vector<1x128xf32> to vector<256x128xf32>
    %c0_88 = arith.constant 0 : index
    %c0_89 = arith.constant 0 : index
    %c0_90 = arith.constant 0 : index
    %87 = vector.load %arg10[%c0_88, %c0_89, %c0_90] : memref<18x18x4xf32, #tpu.memory_space<vmem>>, vector<16x16x4xf32>
    %88 = vector.shape_cast %87 : vector<16x16x4xf32> to vector<256x4xf32>
    %c0_91 = arith.constant 0 : index
    %c0_92 = arith.constant 0 : index
    %c0_93 = arith.constant 0 : index
    %89 = vector.load %arg6[%c0_91, %c0_92, %c0_93] : memref<9x4x128xf32, #tpu.memory_space<vmem>>, vector<1x4x128xf32>
    %90 = vector.shape_cast %89 : vector<1x4x128xf32> to vector<4x128xf32>
    %cst_94 = arith.constant dense<0.000000e+00> : vector<256x128xf32>
    %91 = tpu.matmul %88, %90, %cst_94 {dimension_numbers = #tpu.dot_dimension_numbers<[1], [0], [0], [1], [0, 0, 1, 1], [], []>} : vector<256x4xf32>, vector<4x128xf32>, vector<256x128xf32> -> vector<256x128xf32>
    %92 = arith.addf %86, %91 : vector<256x128xf32>
    %c0_95 = arith.constant 0 : index
    %c1_96 = arith.constant 1 : index
    %c0_97 = arith.constant 0 : index
    %93 = vector.load %arg10[%c0_95, %c1_96, %c0_97] : memref<18x18x4xf32, #tpu.memory_space<vmem>>, vector<16x16x4xf32>
    %94 = vector.shape_cast %93 : vector<16x16x4xf32> to vector<256x4xf32>
    %c1_98 = arith.constant 1 : index
    %c0_99 = arith.constant 0 : index
    %c0_100 = arith.constant 0 : index
    %95 = vector.load %arg6[%c1_98, %c0_99, %c0_100] : memref<9x4x128xf32, #tpu.memory_space<vmem>>, vector<1x4x128xf32>
    %96 = vector.shape_cast %95 : vector<1x4x128xf32> to vector<4x128xf32>
    %cst_101 = arith.constant dense<0.000000e+00> : vector<256x128xf32>
    %97 = tpu.matmul %94, %96, %cst_101 {dimension_numbers = #tpu.dot_dimension_numbers<[1], [0], [0], [1], [0, 0, 1, 1], [], []>} : vector<256x4xf32>, vector<4x128xf32>, vector<256x128xf32> -> vector<256x128xf32>
    %98 = arith.addf %92, %97 : vector<256x128xf32>
    %c0_102 = arith.constant 0 : index
    %c2_103 = arith.constant 2 : index
    %c0_104 = arith.constant 0 : index
    %99 = vector.load %arg10[%c0_102, %c2_103, %c0_104] : memref<18x18x4xf32, #tpu.memory_space<vmem>>, vector<16x16x4xf32>
    %100 = vector.shape_cast %99 : vector<16x16x4xf32> to vector<256x4xf32>
    %c2_105 = arith.constant 2 : index
    %c0_106 = arith.constant 0 : index
    %c0_107 = arith.constant 0 : index
    %101 = vector.load %arg6[%c2_105, %c0_106, %c0_107] : memref<9x4x128xf32, #tpu.memory_space<vmem>>, vector<1x4x128xf32>
    %102 = vector.shape_cast %101 : vector<1x4x128xf32> to vector<4x128xf32>
    %cst_108 = arith.constant dense<0.000000e+00> : vector<256x128xf32>
    %103 = tpu.matmul %100, %102, %cst_108 {dimension_numbers = #tpu.dot_dimension_numbers<[1], [0], [0], [1], [0, 0, 1, 1], [], []>} : vector<256x4xf32>, vector<4x128xf32>, vector<256x128xf32> -> vector<256x128xf32>
    %104 = arith.addf %98, %103 : vector<256x128xf32>
    %c1_109 = arith.constant 1 : index
    %c0_110 = arith.constant 0 : index
    %c0_111 = arith.constant 0 : index
    %105 = vector.load %arg10[%c1_109, %c0_110, %c0_111] : memref<18x18x4xf32, #tpu.memory_space<vmem>>, vector<16x16x4xf32>
    %106 = vector.shape_cast %105 : vector<16x16x4xf32> to vector<256x4xf32>
    %c3_112 = arith.constant 3 : index
    %c0_113 = arith.constant 0 : index
    %c0_114 = arith.constant 0 : index
    %107 = vector.load %arg6[%c3_112, %c0_113, %c0_114] : memref<9x4x128xf32, #tpu.memory_space<vmem>>, vector<1x4x128xf32>
    %108 = vector.shape_cast %107 : vector<1x4x128xf32> to vector<4x128xf32>
    %cst_115 = arith.constant dense<0.000000e+00> : vector<256x128xf32>
    %109 = tpu.matmul %106, %108, %cst_115 {dimension_numbers = #tpu.dot_dimension_numbers<[1], [0], [0], [1], [0, 0, 1, 1], [], []>} : vector<256x4xf32>, vector<4x128xf32>, vector<256x128xf32> -> vector<256x128xf32>
    %110 = arith.addf %104, %109 : vector<256x128xf32>
    %c1_116 = arith.constant 1 : index
    %c1_117 = arith.constant 1 : index
    %c0_118 = arith.constant 0 : index
    %111 = vector.load %arg10[%c1_116, %c1_117, %c0_118] : memref<18x18x4xf32, #tpu.memory_space<vmem>>, vector<16x16x4xf32>
    %112 = vector.shape_cast %111 : vector<16x16x4xf32> to vector<256x4xf32>
    %c4_119 = arith.constant 4 : index
    %c0_120 = arith.constant 0 : index
    %c0_121 = arith.constant 0 : index
    %113 = vector.load %arg6[%c4_119, %c0_120, %c0_121] : memref<9x4x128xf32, #tpu.memory_space<vmem>>, vector<1x4x128xf32>
    %114 = vector.shape_cast %113 : vector<1x4x128xf32> to vector<4x128xf32>
    %cst_122 = arith.constant dense<0.000000e+00> : vector<256x128xf32>
    %115 = tpu.matmul %112, %114, %cst_122 {dimension_numbers = #tpu.dot_dimension_numbers<[1], [0], [0], [1], [0, 0, 1, 1], [], []>} : vector<256x4xf32>, vector<4x128xf32>, vector<256x128xf32> -> vector<256x128xf32>
    %116 = arith.addf %110, %115 : vector<256x128xf32>
    %c1_123 = arith.constant 1 : index
    %c2_124 = arith.constant 2 : index
    %c0_125 = arith.constant 0 : index
    %117 = vector.load %arg10[%c1_123, %c2_124, %c0_125] : memref<18x18x4xf32, #tpu.memory_space<vmem>>, vector<16x16x4xf32>
    %118 = vector.shape_cast %117 : vector<16x16x4xf32> to vector<256x4xf32>
    %c5_126 = arith.constant 5 : index
    %c0_127 = arith.constant 0 : index
    %c0_128 = arith.constant 0 : index
    %119 = vector.load %arg6[%c5_126, %c0_127, %c0_128] : memref<9x4x128xf32, #tpu.memory_space<vmem>>, vector<1x4x128xf32>
    %120 = vector.shape_cast %119 : vector<1x4x128xf32> to vector<4x128xf32>
    %cst_129 = arith.constant dense<0.000000e+00> : vector<256x128xf32>
    %121 = tpu.matmul %118, %120, %cst_129 {dimension_numbers = #tpu.dot_dimension_numbers<[1], [0], [0], [1], [0, 0, 1, 1], [], []>} : vector<256x4xf32>, vector<4x128xf32>, vector<256x128xf32> -> vector<256x128xf32>
    %122 = arith.addf %116, %121 : vector<256x128xf32>
    %c2_130 = arith.constant 2 : index
    %c0_131 = arith.constant 0 : index
    %c0_132 = arith.constant 0 : index
    %123 = vector.load %arg10[%c2_130, %c0_131, %c0_132] : memref<18x18x4xf32, #tpu.memory_space<vmem>>, vector<16x16x4xf32>
    %124 = vector.shape_cast %123 : vector<16x16x4xf32> to vector<256x4xf32>
    %c6_133 = arith.constant 6 : index
    %c0_134 = arith.constant 0 : index
    %c0_135 = arith.constant 0 : index
    %125 = vector.load %arg6[%c6_133, %c0_134, %c0_135] : memref<9x4x128xf32, #tpu.memory_space<vmem>>, vector<1x4x128xf32>
    %126 = vector.shape_cast %125 : vector<1x4x128xf32> to vector<4x128xf32>
    %cst_136 = arith.constant dense<0.000000e+00> : vector<256x128xf32>
    %127 = tpu.matmul %124, %126, %cst_136 {dimension_numbers = #tpu.dot_dimension_numbers<[1], [0], [0], [1], [0, 0, 1, 1], [], []>} : vector<256x4xf32>, vector<4x128xf32>, vector<256x128xf32> -> vector<256x128xf32>
    %128 = arith.addf %122, %127 : vector<256x128xf32>
    %c2_137 = arith.constant 2 : index
    %c1_138 = arith.constant 1 : index
    %c0_139 = arith.constant 0 : index
    %129 = vector.load %arg10[%c2_137, %c1_138, %c0_139] : memref<18x18x4xf32, #tpu.memory_space<vmem>>, vector<16x16x4xf32>
    %130 = vector.shape_cast %129 : vector<16x16x4xf32> to vector<256x4xf32>
    %c7_140 = arith.constant 7 : index
    %c0_141 = arith.constant 0 : index
    %c0_142 = arith.constant 0 : index
    %131 = vector.load %arg6[%c7_140, %c0_141, %c0_142] : memref<9x4x128xf32, #tpu.memory_space<vmem>>, vector<1x4x128xf32>
    %132 = vector.shape_cast %131 : vector<1x4x128xf32> to vector<4x128xf32>
    %cst_143 = arith.constant dense<0.000000e+00> : vector<256x128xf32>
    %133 = tpu.matmul %130, %132, %cst_143 {dimension_numbers = #tpu.dot_dimension_numbers<[1], [0], [0], [1], [0, 0, 1, 1], [], []>} : vector<256x4xf32>, vector<4x128xf32>, vector<256x128xf32> -> vector<256x128xf32>
    %134 = arith.addf %128, %133 : vector<256x128xf32>
    %c2_144 = arith.constant 2 : index
    %c2_145 = arith.constant 2 : index
    %c0_146 = arith.constant 0 : index
    %135 = vector.load %arg10[%c2_144, %c2_145, %c0_146] : memref<18x18x4xf32, #tpu.memory_space<vmem>>, vector<16x16x4xf32>
    %136 = vector.shape_cast %135 : vector<16x16x4xf32> to vector<256x4xf32>
    %c8_147 = arith.constant 8 : index
    %c0_148 = arith.constant 0 : index
    %c0_149 = arith.constant 0 : index
    %137 = vector.load %arg6[%c8_147, %c0_148, %c0_149] : memref<9x4x128xf32, #tpu.memory_space<vmem>>, vector<1x4x128xf32>
    %138 = vector.shape_cast %137 : vector<1x4x128xf32> to vector<4x128xf32>
    %cst_150 = arith.constant dense<0.000000e+00> : vector<256x128xf32>
    %139 = tpu.matmul %136, %138, %cst_150 {dimension_numbers = #tpu.dot_dimension_numbers<[1], [0], [0], [1], [0, 0, 1, 1], [], []>} : vector<256x4xf32>, vector<4x128xf32>, vector<256x128xf32> -> vector<256x128xf32>
    %140 = arith.addf %134, %139 : vector<256x128xf32>
    %cst_151 = arith.constant 0.000000e+00 : f32
    %141 = vector.broadcast %cst_151 : f32 to vector<256x128xf32>
    %142 = arith.cmpf ogt, %140, %141 : vector<256x128xf32>
    %cst_152 = arith.constant 2.000000e-01 : f32
    %143 = vector.broadcast %cst_152 : f32 to vector<256x128xf32>
    %144 = arith.mulf %143, %140 : vector<256x128xf32>
    %145 = arith.select %142, %140, %144 : vector<256x128xi1>, vector<256x128xf32>
    %146 = arith.addf %83, %145 : vector<256x128xf32>
    %147 = vector.shape_cast %146 : vector<256x128xf32> to vector<16x16x128xf32>
    %c0_153 = arith.constant 0 : index
    %c0_154 = arith.constant 0 : index
    %c0_155 = arith.constant 0 : index
    %c0_156 = arith.constant 0 : index
    %148 = vector.load %arg8[%c0_153, %c0_154, %c0_155, %c0_156] : memref<1x16x16x128xf32, #tpu.memory_space<vmem>>, vector<1x16x16x128xf32>
    %149 = vector.shape_cast %148 : vector<1x16x16x128xf32> to vector<16x16x128xf32>
    %150 = vector.shape_cast %147 : vector<16x16x128xf32> to vector<1x16x16x128xf32>
    tpu.vector_store %arg8[%c0_153, %c0_154, %c0_155, %c0_156], %150 {strides = array<i32>} : memref<1x16x16x128xf32, #tpu.memory_space<vmem>>, vector<1x16x16x128xf32>,
    return
  }
  func.func @transform_0(%arg0: i32) -> (i32, i32, i32, i32) {
    %c0_i32 = arith.constant 0 : i32
    %c0_i32_0 = arith.constant 0 : i32
    %c0_i32_1 = arith.constant 0 : i32
    %c0_i32_2 = arith.constant 0 : i32
    return %arg0, %c0_i32, %c0_i32_0, %c0_i32_1 : i32, i32, i32, i32
  }
  func.func @transform_1(%arg0: i32) -> (i32, i32) {
    %c0_i32 = arith.constant 0 : i32
    %c0_i32_0 = arith.constant 0 : i32
    %c0_i32_1 = arith.constant 0 : i32
    return %c0_i32, %c0_i32_0 : i32, i32
  }
  func.func @transform_2(%arg0: i32) -> (i32, i32) {
    %c0_i32 = arith.constant 0 : i32
    %c0_i32_0 = arith.constant 0 : i32
    %c0_i32_1 = arith.constant 0 : i32
    return %c0_i32, %c0_i32_0 : i32, i32
  }
  func.func @transform_3(%arg0: i32) -> (i32, i32, i32) {
    %c0_i32 = arith.constant 0 : i32
    %c0_i32_0 = arith.constant 0 : i32
    %c0_i32_1 = arith.constant 0 : i32
    %c0_i32_2 = arith.constant 0 : i32
    return %c0_i32, %c0_i32_0, %c0_i32_1 : i32, i32, i32
  }
  func.func @transform_4(%arg0: i32) -> (i32, i32) {
    %c0_i32 = arith.constant 0 : i32
    %c0_i32_0 = arith.constant 0 : i32
    %c0_i32_1 = arith.constant 0 : i32
    return %c0_i32, %c0_i32_0 : i32, i32
  }
  func.func @transform_5(%arg0: i32) -> (i32, i32, i32) {
    %c0_i32 = arith.constant 0 : i32
    %c0_i32_0 = arith.constant 0 : i32
    %c0_i32_1 = arith.constant 0 : i32
    %c0_i32_2 = arith.constant 0 : i32
    return %c0_i32, %c0_i32_0, %c0_i32_1 : i32, i32, i32
  }
  func.func @transform_6(%arg0: i32) -> (i32, i32) {
    %c0_i32 = arith.constant 0 : i32
    %c0_i32_0 = arith.constant 0 : i32
    %c0_i32_1 = arith.constant 0 : i32
    return %c0_i32, %c0_i32_0 : i32, i32
  }
  func.func @transform_7(%arg0: i32) -> (i32, i32, i32, i32) {
    %c0_i32 = arith.constant 0 : i32
    %c0_i32_0 = arith.constant 0 : i32
    %c0_i32_1 = arith.constant 0 : i32
    %c0_i32_2 = arith.constant 0 : i32
    return %arg0, %c0_i32, %c0_i32_0, %c0_i32_1 : i32, i32, i32, i32
  }
}

</mosaic_0001>

<bundles_post_ra>
// kernel: resblock_pallas.1
= control target key start
LH: loop header
LB: loop body
LE: loop exit
PB: predicated region body
PF: predicated region fallthrough
CT: control target
= control target key end

     0   :  { %s11165_s24 = smov 0   ;;  %s13469_s0 = inlined_call_operand.vmem [shape: f32[2,16,16,4], index: 0, kind: input, shape index: {}]   ;;  %s13470_s1 = inlined_call_operand.vmem [shape: f32[4,128], index: 1, kind: input, shape index: {}]   ;;  %s13471_s2 = inlined_call_operand.vmem [shape: f32[1,128], index: 2, kind: input, shape index: {}]   ;;  %s13472_s3 = inlined_call_operand.vmem [shape: f32[9,4,4], index: 3, kind: input, shape index: {}]   ;;  %s13473_s4 = inlined_call_operand.vmem [shape: f32[1,4], index: 4, kind: input, shape index: {}]   ;;  %s13474_s5 = inlined_call_operand.vmem [shape: f32[9,4,128], index: 5, kind: input, shape index: {}]   ;;  %s13475_s6 = inlined_call_operand.vmem [shape: f32[1,128], index: 6, kind: input, shape index: {}]   ;;  %s13476_s7 = inlined_call_operand.vmem [shape: f32[2,16,16,128], index: 7, kind: output, shape index: {}]  }
   0x1 LB: > { %s8293_s25 = sadd.s32 4294967295, %s11122_s24   ;;  %p8297_p0 = scmp.ge.s32.totalorder %s11122_s24, 1  ;;  %s11122_s24 = sphi %s11165_s24, %s17_s24  }
   0x2   : > { %p237_p1 = scmp.lt.s32.totalorder %s11122_s24, 3 }
   0x4   : > { %p238_p2 = pnand %p8297_p0, %p237_p1 }
   0x6   : > { %241 = sbr.rel (%p238_p2) target bundleno = 1601 (0x641), region = 48 }
   0xd   : > { %v11176_v0 = vld [vmem:[%s13472_s3] sm:$0xf]  ;;  %vm590_vm0 = vcmask 1043456   ;;  %vm279_vm1 = vcmask 31744   ;;  %p11180_p3 = scmp.lt.s32.totalorder %s8293_s25, 1  ;;  %v11124_v1 = vmov 0.0  }
   0xe   : > { %9579 = vmatprep.subr.msk.mxu0 %vm590_vm0, %v11176_v0  ;;  %280 = vst.msk [vmem:[#allocation2] sm:$0xff] %vm279_vm1, %v11124_v1  ;;  %281 = vst.msk [vmem:[#allocation2 + $0x8] sm:$0xff] %vm279_vm1, %v11124_v1  ;;  %v11333_v2 = vld [vmem:[%s13472_s3 + $0x4] sm:$0xf]  ;;  %vm282_vm2 = vcmask 25600  }
   0xf   : > { %284 = vst.msk [vmem:[#allocation2 + $0x18] sm:$0xff] %vm279_vm1, %v11124_v1  ;;  %285 = vst.msk [vmem:[#allocation2 + $0x20] sm:$0xff] %vm279_vm1, %v11124_v1  ;;  %9580 = vmatpush3.msk.msra.mxu0 %vm590_vm0, %v11176_v0  ;;  %s13813_s25 = smov (!%p11180_p3, %s8293_s25), 1  ;;  %v11437_v9 = vld [vmem:[%s13472_s3 + $0x8] sm:$0xf] }
  0x10   : > { %287 = vst.msk [vmem:[#allocation2 + $0x30] sm:$0xff] %vm279_vm1, %v11124_v1  ;;  %288 = vst.msk [vmem:[#allocation2 + $0x38] sm:$0xff] %vm279_vm1, %v11124_v1  ;;  %9629 = vmatprep.subr.msk.mxu0 %vm590_vm0, %v11333_v2  ;;  %s8950_s8 = sshll.u32 %s13813_s25, 8 }
  0x11   : > { %290 = vst.msk [vmem:[#allocation2 + $0x48] sm:$0xff] %vm279_vm1, %v11124_v1  ;;  %291 = vst.msk [vmem:[#allocation2 + $0x50] sm:$0xff] %vm279_vm1, %v11124_v1  ;;  %s11423_s11 = scalar_lea.vmem %s13469_s0, %s8950_s8  ;;  %s13340_s15 = scalar_lea.vmem %s13476_s7, %s8950_s8 }
  0x12   : > { %293 = vst.msk [vmem:[#allocation2 + $0x60] sm:$0xff] %vm279_vm1, %v11124_v1  ;;  %294 = vst.msk [vmem:[#allocation2 + $0x68] sm:$0xff] %vm279_vm1, %v11124_v1  ;;  %v389_v3 = vld [vmem:[%s11423_s11] sm:$0xff]  ;;  %v390_v4 = vld [vmem:[%s11423_s11 + $0x8] sm:$0xff] }
  0x13   : > { %296 = vst.msk [vmem:[#allocation2 + $0x78] sm:$0xff] %vm279_vm1, %v11124_v1  ;;  %297 = vst.msk [vmem:[#allocation2 + $0x80] sm:$0xff] %vm279_vm1, %v11124_v1  ;;  %v391_v5 = vld [vmem:[%s11423_s11 + $0x10] sm:$0xff]  ;;  %v392_v6 = vld [vmem:[%s11423_s11 + $0x18] sm:$0xff] }
  0x14   : > { %299 = vst.msk [vmem:[#allocation2 + $0x90] sm:$0xff] %vm279_vm1, %v11124_v1  ;;  %300 = vst.msk [vmem:[#allocation2 + $0x98] sm:$0xff] %vm279_vm1, %v11124_v1  ;;  %v393_v7 = vld [vmem:[%s11423_s11 + $0x20] sm:$0xff]  ;;  %v394_v8 = vld [vmem:[%s11423_s11 + $0x28] sm:$0xff] }
  0x15   : > { %302 = vst.msk [vmem:[#allocation2 + $0xa8] sm:$0xff] %vm279_vm1, %v11124_v1  ;;  %303 = vst.msk [vmem:[#allocation2 + $0xb0] sm:$0xff] %vm279_vm1, %v11124_v1  ;;  %v461_v10 = vld [vmem:[#allocation2] sm:$0xff]  ;;  %v462_v11 = vld [vmem:[#allocation2 + $0x8] sm:$0xff] }
  0x16   : > { %305 = vst.msk [vmem:[#allocation2 + $0xc0] sm:$0xff] %vm279_vm1, %v11124_v1  ;;  %306 = vst.msk [vmem:[#allocation2 + $0xc8] sm:$0xff] %vm279_vm1, %v11124_v1  ;;  %v395_v12 = vld [vmem:[%s11423_s11 + $0x30] sm:$0xff]  ;;  %9581 = vmatprep.mubr.msk.f32.mxu0 %vm279_vm1, %v461_v10  ;;  %v396_v13 = vld [vmem:[%s11423_s11 + $0x38] sm:$0xff] }
  0x17   : > { %308 = vst.msk [vmem:[#allocation2 + $0xd8] sm:$0xff] %vm279_vm1, %v11124_v1  ;;  %309 = vst.msk [vmem:[#allocation2 + $0xe0] sm:$0xff] %vm279_vm1, %v11124_v1  ;;  %v397_v14 = vld [vmem:[%s11423_s11 + $0x40] sm:$0xff]  ;;  %v398_v15 = vld [vmem:[%s11423_s11 + $0x48] sm:$0xff]  ;;  %9582 = vmatmul.mubr.msk.f32.vlgmr.msra.gmra.mrb[0].mxu0 %vm279_vm1, %v462_v11 }
  0x18   : > { %311 = vst.msk [vmem:[#allocation2 + $0xf0] sm:$0xff] %vm279_vm1, %v11124_v1  ;;  %312 = vst.msk [vmem:[#allocation2 + $0xf8] sm:$0xff] %vm279_vm1, %v11124_v1  ;;  %v399_v16 = vld [vmem:[%s11423_s11 + $0x50] sm:$0xff]  ;;  %v400_v17 = vld [vmem:[%s11423_s11 + $0x58] sm:$0xff]  ;;  %9630 = vmatpush3.msk.msra.mxu0 %vm590_vm0, %v11333_v2 }
  0x19   : > { %314 = vst.msk [vmem:[#allocation2 + $0x108] sm:$0xff] %vm279_vm1, %v11124_v1  ;;  %315 = vst.msk [vmem:[#allocation2 + $0x110] sm:$0xff] %vm279_vm1, %v11124_v1  ;;  %v401_v18 = vld [vmem:[%s11423_s11 + $0x60] sm:$0xff]  ;;  %v402_v19 = vld [vmem:[%s11423_s11 + $0x68] sm:$0xff]  ;;  %9679 = vmatprep.subr.msk.mxu0 %vm590_vm0, %v11437_v9 }
  0x1a   : > { %317 = vst.msk [vmem:[#allocation2 + $0x120] sm:$0xff] %vm279_vm1, %v11124_v1  ;;  %318 = vst.msk [vmem:[#allocation2 + $0x128] sm:$0xff] %vm279_vm1, %v11124_v1  ;;  %v403_v20 = vld [vmem:[%s11423_s11 + $0x70] sm:$0xff]  ;;  %v404_v21 = vld [vmem:[%s11423_s11 + $0x78] sm:$0xff] }
  0x1b   : > { %320 = vst.msk [vmem:[#allocation2 + $0x138] sm:$0xff] %vm279_vm1, %v11124_v1  ;;  %321 = vst.msk [vmem:[#allocation2 + $0x140] sm:$0xff] %vm279_vm1, %v11124_v1  ;;  %v405_v22 = vld [vmem:[%s11423_s11 + $0x80] sm:$0xff]  ;;  %v406_v23 = vld [vmem:[%s11423_s11 + $0x88] sm:$0xff] }
  0x1c   : > { %323 = vst.msk [vmem:[#allocation2 + $0x150] sm:$0xff] %vm279_vm1, %v11124_v1  ;;  %324 = vst.msk [vmem:[#allocation2 + $0x158] sm:$0xff] %vm279_vm1, %v11124_v1  ;;  %v407_v24 = vld [vmem:[%s11423_s11 + $0x90] sm:$0xff]  ;;  %v408_v25 = vld [vmem:[%s11423_s11 + $0x98] sm:$0xff] }
  0x1d   : > { %326 = vst.msk [vmem:[#allocation2 + $0x168] sm:$0xff] %vm279_vm1, %v11124_v1  ;;  %327 = vst.msk [vmem:[#allocation2 + $0x170] sm:$0xff] %vm279_vm1, %v11124_v1  ;;  %v409_v26 = vld [vmem:[%s11423_s11 + $0xa0] sm:$0xff]  ;;  %v410_v27 = vld [vmem:[%s11423_s11 + $0xa8] sm:$0xff] }
  0x1e   : > { %329 = vst.msk [vmem:[#allocation2 + $0x180] sm:$0xff] %vm279_vm1, %v11124_v1  ;;  %330 = vst.msk [vmem:[#allocation2 + $0x188] sm:$0xff] %vm279_vm1, %v11124_v1  ;;  %v411_v31 = vld [vmem:[%s11423_s11 + $0xb0] sm:$0xff]  ;;  %v412_v32 = vld [vmem:[%s11423_s11 + $0xb8] sm:$0xff] }
  0x1f   : > { %332 = vst.msk [vmem:[#allocation2 + $0x198] sm:$0xff] %vm279_vm1, %v11124_v1  ;;  %333 = vst.msk [vmem:[#allocation2 + $0x1a0] sm:$0xff] %vm279_vm1, %v11124_v1  ;;  %v413_v37 = vld [vmem:[%s11423_s11 + $0xc0] sm:$0xff]  ;;  %v414_v38 = vld [vmem:[%s11423_s11 + $0xc8] sm:$0xff] }
  0x20   : > { %335 = vst.msk [vmem:[#allocation3] sm:$0xff] %vm279_vm1, %v11124_v1  ;;  %336 = vst.msk [vmem:[#allocation3 + $0x8] sm:$0xff] %vm279_vm1, %v11124_v1  ;;  %v415_v39 = vld [vmem:[%s11423_s11 + $0xd0] sm:$0xff]  ;;  %v416_v40 = vld [vmem:[%s11423_s11 + $0xd8] sm:$0xff] }
  0x21   : > { %338 = vst.msk [vmem:[#allocation3 + $0x18] sm:$0xff] %vm279_vm1, %v11124_v1  ;;  %339 = vst.msk [vmem:[#allocation3 + $0x20] sm:$0xff] %vm279_vm1, %v11124_v1  ;;  %v417_v41 = vld [vmem:[%s11423_s11 + $0xe0] sm:$0xff]  ;;  %v418_v42 = vld [vmem:[%s11423_s11 + $0xe8] sm:$0xff] }
  0x22   : > { %341 = vst.msk [vmem:[#allocation3 + $0x30] sm:$0xff] %vm279_vm1, %v11124_v1  ;;  %342 = vst.msk [vmem:[#allocation3 + $0x38] sm:$0xff] %vm279_vm1, %v11124_v1  ;;  %v851_v2 = vld [vmem:[#allocation2 + $0x1] sm:$0xff] }
  0x23   : > { %344 = vst.msk [vmem:[#allocation3 + $0x48] sm:$0xff] %vm279_vm1, %v11124_v1  ;;  %345 = vst.msk [vmem:[#allocation3 + $0x50] sm:$0xff] %vm279_vm1, %v11124_v1 }
  0x24   : > { %347 = vst.msk [vmem:[#allocation3 + $0x60] sm:$0xff] %vm279_vm1, %v11124_v1  ;;  %348 = vst.msk [vmem:[#allocation3 + $0x68] sm:$0xff] %vm279_vm1, %v11124_v1 }
  0x25   : > { %350 = vst.msk [vmem:[#allocation3 + $0x78] sm:$0xff] %vm279_vm1, %v11124_v1  ;;  %351 = vst.msk [vmem:[#allocation3 + $0x80] sm:$0xff] %vm279_vm1, %v11124_v1 }
  0x26   : > { %353 = vst.msk [vmem:[#allocation3 + $0x90] sm:$0xff] %vm279_vm1, %v11124_v1  ;;  %354 = vst.msk [vmem:[#allocation3 + $0x98] sm:$0xff] %vm279_vm1, %v11124_v1 }
  0x27   : > { %356 = vst.msk [vmem:[#allocation3 + $0xa8] sm:$0xff] %vm279_vm1, %v11124_v1  ;;  %357 = vst.msk [vmem:[#allocation3 + $0xb0] sm:$0xff] %vm279_vm1, %v11124_v1 }
  0x28   : > { %359 = vst.msk [vmem:[#allocation3 + $0xc0] sm:$0xff] %vm279_vm1, %v11124_v1  ;;  %360 = vst.msk [vmem:[#allocation3 + $0xc8] sm:$0xff] %vm279_vm1, %v11124_v1 }
  0x29   : > { %362 = vst.msk [vmem:[#allocation3 + $0xd8] sm:$0xff] %vm279_vm1, %v11124_v1  ;;  %363 = vst.msk [vmem:[#allocation3 + $0xe0] sm:$0xff] %vm279_vm1, %v11124_v1 }
  0x2a   : > { %365 = vst.msk [vmem:[#allocation3 + $0xf0] sm:$0xff] %vm279_vm1, %v11124_v1  ;;  %366 = vst.msk [vmem:[#allocation3 + $0xf8] sm:$0xff] %vm279_vm1, %v11124_v1 }
  0x2b   : > { %368 = vst.msk [vmem:[#allocation3 + $0x108] sm:$0xff] %vm279_vm1, %v11124_v1  ;;  %369 = vst.msk [vmem:[#allocation3 + $0x110] sm:$0xff] %vm279_vm1, %v11124_v1 }
  0x2c   : > { %371 = vst.msk [vmem:[#allocation3 + $0x120] sm:$0xff] %vm279_vm1, %v11124_v1  ;;  %372 = vst.msk [vmem:[#allocation3 + $0x128] sm:$0xff] %vm279_vm1, %v11124_v1 }
  0x2d   : > { %374 = vst.msk [vmem:[#allocation3 + $0x138] sm:$0xff] %vm279_vm1, %v11124_v1  ;;  %375 = vst.msk [vmem:[#allocation3 + $0x140] sm:$0xff] %vm279_vm1, %v11124_v1 }
  0x2e   : > { %377 = vst.msk [vmem:[#allocation3 + $0x150] sm:$0xff] %vm279_vm1, %v11124_v1  ;;  %378 = vst.msk [vmem:[#allocation3 + $0x158] sm:$0xff] %vm279_vm1, %v11124_v1 }
  0x2f   : > { %380 = vst.msk [vmem:[#allocation3 + $0x168] sm:$0xff] %vm279_vm1, %v11124_v1  ;;  %381 = vst.msk [vmem:[#allocation3 + $0x170] sm:$0xff] %vm279_vm1, %v11124_v1 }
  0x30   : > { %383 = vst.msk [vmem:[#allocation3 + $0x180] sm:$0xff] %vm279_vm1, %v11124_v1  ;;  %384 = vst.msk [vmem:[#allocation3 + $0x188] sm:$0xff] %vm279_vm1, %v11124_v1 }
  0x31   : > { %386 = vst.msk [vmem:[#allocation3 + $0x198] sm:$0xff] %vm279_vm1, %v11124_v1  ;;  %387 = vst.msk [vmem:[#allocation3 + $0x1a0] sm:$0xff] %vm279_vm1, %v11124_v1 }
  0x32   : > { %286 = vst.msk [vmem:[#allocation2 + $0x28] sm:$0x3] %vm282_vm2, %v11124_v1  ;;  %283 = vst.msk [vmem:[#allocation2 + $0x10] sm:$0x3] %vm282_vm2, %v11124_v1 }
  0x33   : > { %289 = vst.msk [vmem:[#allocation2 + $0x40] sm:$0x3] %vm282_vm2, %v11124_v1  ;;  %292 = vst.msk [vmem:[#allocation2 + $0x58] sm:$0x3] %vm282_vm2, %v11124_v1 }
  0x34   : > { %295 = vst.msk [vmem:[#allocation2 + $0x70] sm:$0x3] %vm282_vm2, %v11124_v1  ;;  %298 = vst.msk [vmem:[#allocation2 + $0x88] sm:$0x3] %vm282_vm2, %v11124_v1 }
  0x35   : > { %301 = vst.msk [vmem:[#allocation2 + $0xa0] sm:$0x3] %vm282_vm2, %v11124_v1  ;;  %304 = vst.msk [vmem:[#allocation2 + $0xb8] sm:$0x3] %vm282_vm2, %v11124_v1 }
  0x36   : > { %307 = vst.msk [vmem:[#allocation2 + $0xd0] sm:$0x3] %vm282_vm2, %v11124_v1  ;;  %310 = vst.msk [vmem:[#allocation2 + $0xe8] sm:$0x3] %vm282_vm2, %v11124_v1 }
  0x37   : > { %313 = vst.msk [vmem:[#allocation2 + $0x100] sm:$0x3] %vm282_vm2, %v11124_v1  ;;  %316 = vst.msk [vmem:[#allocation2 + $0x118] sm:$0x3] %vm282_vm2, %v11124_v1 }
  0x38   : > { %319 = vst.msk [vmem:[#allocation2 + $0x130] sm:$0x3] %vm282_vm2, %v11124_v1  ;;  %322 = vst.msk [vmem:[#allocation2 + $0x148] sm:$0x3] %vm282_vm2, %v11124_v1 }
  0x39   : > { %325 = vst.msk [vmem:[#allocation2 + $0x160] sm:$0x3] %vm282_vm2, %v11124_v1  ;;  %328 = vst.msk [vmem:[#allocation2 + $0x178] sm:$0x3] %vm282_vm2, %v11124_v1 }
  0x3a   : > { %331 = vst.msk [vmem:[#allocation2 + $0x190] sm:$0x3] %vm282_vm2, %v11124_v1  ;;  %334 = vst.msk [vmem:[#allocation2 + $0x1a8] sm:$0x3] %vm282_vm2, %v11124_v1 }
  0x3b   : > { %337 = vst.msk [vmem:[#allocation3 + $0x10] sm:$0x3] %vm282_vm2, %v11124_v1  ;;  %340 = vst.msk [vmem:[#allocation3 + $0x28] sm:$0x3] %vm282_vm2, %v11124_v1 }
  0x3c   : > { %343 = vst.msk [vmem:[#allocation3 + $0x40] sm:$0x3] %vm282_vm2, %v11124_v1  ;;  %346 = vst.msk [vmem:[#allocation3 + $0x58] sm:$0x3] %vm282_vm2, %v11124_v1 }
  0x3d   : > { %349 = vst.msk [vmem:[#allocation3 + $0x70] sm:$0x3] %vm282_vm2, %v11124_v1  ;;  %352 = vst.msk [vmem:[#allocation3 + $0x88] sm:$0x3] %vm282_vm2, %v11124_v1 }
  0x3e   : > { %355 = vst.msk [vmem:[#allocation3 + $0xa0] sm:$0x3] %vm282_vm2, %v11124_v1  ;;  %358 = vst.msk [vmem:[#allocation3 + $0xb8] sm:$0x3] %vm282_vm2, %v11124_v1 }
  0x3f   : > { %361 = vst.msk [vmem:[#allocation3 + $0xd0] sm:$0x3] %vm282_vm2, %v11124_v1  ;;  %364 = vst.msk [vmem:[#allocation3 + $0xe8] sm:$0x3] %vm282_vm2, %v11124_v1 }
  0x40   : > { %367 = vst.msk [vmem:[#allocation3 + $0x100] sm:$0x3] %vm282_vm2, %v11124_v1  ;;  %370 = vst.msk [vmem:[#allocation3 + $0x118] sm:$0x3] %vm282_vm2, %v11124_v1 }
  0x41   : > { %373 = vst.msk [vmem:[#allocation3 + $0x130] sm:$0x3] %vm282_vm2, %v11124_v1  ;;  %376 = vst.msk [vmem:[#allocation3 + $0x148] sm:$0x3] %vm282_vm2, %v11124_v1 }
  0x42   : > { %379 = vst.msk [vmem:[#allocation3 + $0x160] sm:$0x3] %vm282_vm2, %v11124_v1  ;;  %382 = vst.msk [vmem:[#allocation3 + $0x178] sm:$0x3] %vm282_vm2, %v11124_v1 }
  0x43   : > { %385 = vst.msk [vmem:[#allocation3 + $0x190] sm:$0x3] %vm282_vm2, %v11124_v1  ;;  %388 = vst.msk [vmem:[#allocation3 + $0x1a8] sm:$0x3] %vm282_vm2, %v11124_v1 }
  0x44   : > { %422 = vst.msk [vmem:[#allocation2 + $0x19] sm:$0xff] %vm279_vm1, %v389_v3  ;;  %423 = vst.msk [vmem:[#allocation2 + $0x21] sm:$0xff] %vm279_vm1, %v390_v4  ;;  %v852_v3 = vld [vmem:[#allocation2 + $0x9] sm:$0xff] }
  0x45   : > { %424 = vst.msk [vmem:[#allocation2 + $0x31] sm:$0xff] %vm279_vm1, %v391_v5  ;;  %425 = vst.msk [vmem:[#allocation2 + $0x39] sm:$0xff] %vm279_vm1, %v392_v6  ;;  %v11622_v5 = vld [vmem:[%s13472_s3 + $0xc] sm:$0xf] }
  0x46   : > { %426 = vst.msk [vmem:[#allocation2 + $0x49] sm:$0xff] %vm279_vm1, %v393_v7  ;;  %427 = vst.msk [vmem:[#allocation2 + $0x51] sm:$0xff] %vm279_vm1, %v394_v8 }
  0x47   : > { %428 = vst.msk [vmem:[#allocation2 + $0x61] sm:$0xff] %vm279_vm1, %v395_v12  ;;  %429 = vst.msk [vmem:[#allocation2 + $0x69] sm:$0xff] %vm279_vm1, %v396_v13 }
  0x48   : > { %430 = vst.msk [vmem:[#allocation2 + $0x79] sm:$0xff] %vm279_vm1, %v397_v14  ;;  %431 = vst.msk [vmem:[#allocation2 + $0x81] sm:$0xff] %vm279_vm1, %v398_v15 }
  0x49   : > { %432 = vst.msk [vmem:[#allocation2 + $0x91] sm:$0xff] %vm279_vm1, %v399_v16  ;;  %433 = vst.msk [vmem:[#allocation2 + $0x99] sm:$0xff] %vm279_vm1, %v400_v17 }
  0x4a   : > { %434 = vst.msk [vmem:[#allocation2 + $0xa9] sm:$0xff] %vm279_vm1, %v401_v18  ;;  %435 = vst.msk [vmem:[#allocation2 + $0xb1] sm:$0xff] %vm279_vm1, %v402_v19 }
  0x4b   : > { %436 = vst.msk [vmem:[#allocation2 + $0xc1] sm:$0xff] %vm279_vm1, %v403_v20  ;;  %437 = vst.msk [vmem:[#allocation2 + $0xc9] sm:$0xff] %vm279_vm1, %v404_v21  ;;  %v11477_v28 = vld [vmem:[#allocation2 + $0x18] sm:$0xff]  ;;  %v11479_v29 = vld [vmem:[#allocation2 + $0x20] sm:$0xff] }
  0x4c   : > { %438 = vst.msk [vmem:[#allocation2 + $0xd9] sm:$0xff] %vm279_vm1, %v405_v22  ;;  %439 = vst.msk [vmem:[#allocation2 + $0xe1] sm:$0xff] %vm279_vm1, %v406_v23  ;;  %v11481_v30 = vld [vmem:[#allocation2 + $0x30] sm:$0xff]  ;;  %9584 = vmatprep.mubr.msk.f32.mxu0 %vm279_vm1, %v11477_v28  ;;  %v11494_v33 = vld [vmem:[#allocation2 + $0x38] sm:$0xff] }
  0x4d   : > { %440 = vst.msk [vmem:[#allocation2 + $0xf1] sm:$0xff] %vm279_vm1, %v407_v24  ;;  %441 = vst.msk [vmem:[#allocation2 + $0xf9] sm:$0xff] %vm279_vm1, %v408_v25  ;;  %9585 = vmatmul.mubr.msk.f32.gmra.mrb[2].mxu0 %vm279_vm1, %v11479_v29  ;;  %v11498_v34 = vld [vmem:[#allocation2 + $0x48] sm:$0xff]  ;;  %v11504_v35 = vld [vmem:[#allocation2 + $0x50] sm:$0xff] }
  0x4e   : > { %442 = vst.msk [vmem:[#allocation2 + $0x109] sm:$0xff] %vm279_vm1, %v409_v26  ;;  %443 = vst.msk [vmem:[#allocation2 + $0x111] sm:$0xff] %vm279_vm1, %v410_v27  ;;  %9587 = vmatprep.mubr.msk.f32.mxu0 %vm279_vm1, %v11481_v30  ;;  %v11506_v36 = vld [vmem:[#allocation2 + $0x60] sm:$0xff]  ;;  %v11524_v43 = vld [vmem:[#allocation2 + $0x68] sm:$0xff] }
  0x4f   : > { %444 = vst.msk [vmem:[#allocation2 + $0x121] sm:$0xff] %vm279_vm1, %v411_v31  ;;  %445 = vst.msk [vmem:[#allocation2 + $0x129] sm:$0xff] %vm279_vm1, %v412_v32  ;;  %v11526_v44 = vld [vmem:[#allocation2 + $0x78] sm:$0xff]  ;;  %v11532_v45 = vld [vmem:[#allocation2 + $0x80] sm:$0xff] }
  0x50   : > { %446 = vst.msk [vmem:[#allocation2 + $0x139] sm:$0xff] %vm279_vm1, %v413_v37  ;;  %447 = vst.msk [vmem:[#allocation2 + $0x141] sm:$0xff] %vm279_vm1, %v414_v38  ;;  %v11534_v46 = vld [vmem:[#allocation2 + $0x90] sm:$0xff]  ;;  %v11540_v47 = vld [vmem:[#allocation2 + $0x98] sm:$0xff] }
  0x51   : > { %9588 = vmatmul.mubr.msk.f32.gmra.mrb[4].mxu0 %vm279_vm1, %v11494_v33  ;;  %448 = vst.msk [vmem:[#allocation2 + $0x151] sm:$0xff] %vm279_vm1, %v415_v39  ;;  %449 = vst.msk [vmem:[#allocation2 + $0x159] sm:$0xff] %vm279_vm1, %v416_v40  ;;  %v11542_v48 = vld [vmem:[#allocation2 + $0xa8] sm:$0xff]  ;;  %v11548_v49 = vld [vmem:[#allocation2 + $0xb0] sm:$0xff] }
  0x52   : > { %9590 = vmatprep.mubr.msk.f32.mxu0 %vm279_vm1, %v11498_v34  ;;  %450 = vst.msk [vmem:[#allocation2 + $0x169] sm:$0xff] %vm279_vm1, %v417_v41  ;;  %451 = vst.msk [vmem:[#allocation2 + $0x171] sm:$0xff] %vm279_vm1, %v418_v42  ;;  %v11550_v50 = vld [vmem:[#allocation2 + $0xc0] sm:$0xff]  ;;  %v11556_v51 = vld [vmem:[#allocation2 + $0xc8] sm:$0xff] }
  0x53   : > { %v11558_v52 = vld [vmem:[#allocation2 + $0xd8] sm:$0xff]  ;;  %v11564_v53 = vld [vmem:[#allocation2 + $0xe0] sm:$0xff]  ;;  %v11641_v10 = vld [vmem:[#allocation2 + $0x49] sm:$0xff] }
  0x54   : > { %v11566_v54 = vld [vmem:[#allocation2 + $0xf0] sm:$0xff]  ;;  %v11572_v55 = vld [vmem:[#allocation2 + $0xf8] sm:$0xff]  ;;  %v11629_v6 = vld [vmem:[#allocation2 + $0x21] sm:$0xff] }
  0x55   : > { %9591 = vmatmul.mubr.msk.f32.gmra.mrb[6].mxu0 %vm279_vm1, %v11504_v35  ;;  %v11574_v56 = vld [vmem:[#allocation2 + $0x108] sm:$0xff]  ;;  %v11580_v57 = vld [vmem:[#allocation2 + $0x110] sm:$0xff]  ;;  %v11617_v4 = vld [vmem:[#allocation2 + $0x19] sm:$0xff] }
  0x56   : > { %9593 = vmatprep.mubr.msk.f32.mxu0 %vm279_vm1, %v11506_v36  ;;  %v11582_v58 = vld [vmem:[#allocation2 + $0x120] sm:$0xff]  ;;  %v11588_v59 = vld [vmem:[#allocation2 + $0x128] sm:$0xff]  ;;  %v11631_v7 = vld [vmem:[#allocation2 + $0x31] sm:$0xff] }
  0x57   : > { %v11590_v60 = vld [vmem:[#allocation2 + $0x138] sm:$0xff]  ;;  %v11596_v61 = vld [vmem:[#allocation2 + $0x140] sm:$0xff]  ;;  %v11655_v12 = vld [vmem:[#allocation2 + $0x69] sm:$0xff] }
  0x58   : > { %v11598_v62 = vld [vmem:[#allocation2 + $0x150] sm:$0xff]  ;;  %v11604_v63 = vld [vmem:[#allocation2 + $0x158] sm:$0xff]  ;;  %v11649_v11 = vld [vmem:[#allocation2 + $0x61] sm:$0xff] }
  0x59   : > { %9594 = vmatmul.mubr.msk.f32.gmra.mrb[8].mxu0 %vm279_vm1, %v11524_v43  ;;  %v11606_v0 = vld [vmem:[#allocation2 + $0x168] sm:$0xff]  ;;  %v11612_v1 = vld [vmem:[#allocation2 + $0x170] sm:$0xff]  ;;  %v11639_v8 = vld [vmem:[#allocation2 + $0x39] sm:$0xff] }
  0x5a   : > { %9596 = vmatprep.mubr.msk.f32.mxu0 %vm279_vm1, %v11526_v44  ;;  %v11657_v13 = vld [vmem:[#allocation2 + $0x79] sm:$0xff]  ;;  %v11663_v14 = vld [vmem:[#allocation2 + $0x81] sm:$0xff]  ;;  %v11665_v15 = vld [vmem:[#allocation2 + $0x91] sm:$0xff] }
  0x5b   : > { %v11671_v16 = vld [vmem:[#allocation2 + $0x99] sm:$0xff]  ;;  %v11673_v17 = vld [vmem:[#allocation2 + $0xa9] sm:$0xff]  ;;  %v11679_v18 = vld [vmem:[#allocation2 + $0xb1] sm:$0xff] }
  0x5c   : > { %v11681_v19 = vld [vmem:[#allocation2 + $0xc1] sm:$0xff]  ;;  %v11687_v20 = vld [vmem:[#allocation2 + $0xc9] sm:$0xff]  ;;  %v11689_v21 = vld [vmem:[#allocation2 + $0xd9] sm:$0xff] }
  0x5d   : > { %9597 = vmatmul.mubr.msk.f32.gmra.mrb[10].mxu0 %vm279_vm1, %v11532_v45  ;;  %v11695_v22 = vld [vmem:[#allocation2 + $0xe1] sm:$0xff]  ;;  %v11697_v23 = vld [vmem:[#allocation2 + $0xf1] sm:$0xff]  ;;  %v11703_v24 = vld [vmem:[#allocation2 + $0xf9] sm:$0xff] }
  0x5e   : > { %9599 = vmatprep.mubr.msk.f32.mxu0 %vm279_vm1, %v11534_v46  ;;  %v11705_v25 = vld [vmem:[#allocation2 + $0x109] sm:$0xff]  ;;  %v11711_v26 = vld [vmem:[#allocation2 + $0x111] sm:$0xff]  ;;  %v11713_v27 = vld [vmem:[#allocation2 + $0x121] sm:$0xff] }
  0x5f   : > { %13602 = vst [vmem:[#allocation4_spill] sm:$0xff] %v11713_v27  ;;  %v11719_v31 = vld [vmem:[#allocation2 + $0x129] sm:$0xff]  ;;  %v11721_v32 = vld [vmem:[#allocation2 + $0x139] sm:$0xff]  ;;  %v11727_v37 = vld [vmem:[#allocation2 + $0x141] sm:$0xff] }
  0x60   : > { %13603 = vst [vmem:[#allocation5_spill] sm:$0xff] %v11719_v31  ;;  %13604 = vst [vmem:[#allocation6_spill] sm:$0xff] %v11721_v32  ;;  %v11729_v38 = vld [vmem:[#allocation2 + $0x151] sm:$0xff]  ;;  %v11745_v41 = vld [vmem:[#allocation2 + $0x159] sm:$0xff] }
  0x61   : > { %9600 = vmatmul.mubr.msk.f32.gmra.mrb[12].mxu0 %vm279_vm1, %v11540_v47  ;;  %13605 = vst [vmem:[#allocation7_spill] sm:$0xff] %v11727_v37  ;;  %13606 = vst [vmem:[#allocation8_spill] sm:$0xff] %v11729_v38  ;;  %v11732_v39 = vld [vmem:[%s11423_s11 + $0xf0] sm:$0xff]  ;;  %v11737_v40 = vld [vmem:[%s11423_s11 + $0xf8] sm:$0xff] }
  0x62   : > { %9602 = vmatprep.mubr.msk.f32.mxu0 %vm279_vm1, %v11542_v48  ;;  %13607 = vst [vmem:[#allocation9_spill] sm:$0xff] %v11732_v39  ;;  %452 = vst.msk [vmem:[#allocation2 + $0x181] sm:$0xff] %vm279_vm1, %v11732_v39  ;;  %v11747_v42 = vld [vmem:[#allocation2 + $0x169] sm:$0xff]  ;;  %v11758_v39 = vld [vmem:[#allocation2 + $0x1a] sm:$0xff] }
  0x63   : > { %13608 = vst [vmem:[#allocation10_spill] sm:$0xff] %v11737_v40  ;;  %453 = vst.msk [vmem:[#allocation2 + $0x189] sm:$0xff] %vm279_vm1, %v11737_v40  ;;  %v1242_v40 = vld [vmem:[#allocation2 + $0xa] sm:$0xff] }
  0x64   : > { %13609 = vst [vmem:[#allocation11_spill] sm:$0xff] %v11745_v41  ;;  %13610 = vst [vmem:[#allocation12_spill] sm:$0xff] %v11747_v42 }
  0x65   : > { %9603 = vmatmul.mubr.msk.f32.gmra.mrb[14].mxu0 %vm279_vm1, %v11548_v49  ;;  %13612 = vst [vmem:[#allocation14_spill] sm:$0xff] %v11758_v39 }
  0x66   : > { %9605 = vmatprep.mubr.msk.f32.mxu0 %vm279_vm1, %v11550_v50 }
  0x69   : > { %9606 = vmatmul.mubr.msk.f32.gmra.mrb[16].mxu0 %vm279_vm1, %v11556_v51 }
  0x6a   : > { %9608 = vmatprep.mubr.msk.f32.mxu0 %vm279_vm1, %v11558_v52 }
  0x6d   : > { %9609 = vmatmul.mubr.msk.f32.gmra.mrb[18].mxu0 %vm279_vm1, %v11564_v53 }
  0x6e   : > { %9611 = vmatprep.mubr.msk.f32.mxu0 %vm279_vm1, %v11566_v54 }
  0x71   : > { %9612 = vmatmul.mubr.msk.f32.gmra.mrb[20].mxu0 %vm279_vm1, %v11572_v55 }
  0x72   : > { %9614 = vmatprep.mubr.msk.f32.mxu0 %vm279_vm1, %v11574_v56 }
  0x75   : > { %9615 = vmatmul.mubr.msk.f32.gmra.mrb[22].mxu0 %vm279_vm1, %v11580_v57 }
  0x76   : > { %9617 = vmatprep.mubr.msk.f32.mxu0 %vm279_vm1, %v11582_v58 }
  0x79   : > { %9618 = vmatmul.mubr.msk.f32.gmra.mrb[24].mxu0 %vm279_vm1, %v11588_v59 }
  0x7a   : > { %9620 = vmatprep.mubr.msk.f32.mxu0 %vm279_vm1, %v11590_v60 }
  0x7d   : > { %9621 = vmatmul.mubr.msk.f32.gmra.mrb[26].mxu0 %vm279_vm1, %v11596_v61 }
  0x7e   : > { %9623 = vmatprep.mubr.msk.f32.mxu0 %vm279_vm1, %v11598_v62 }
  0x81   : > { %9624 = vmatmul.mubr.msk.f32.gmra.mrb[28].mxu0 %vm279_vm1, %v11604_v63 }
  0x82   : > { %9626 = vmatprep.mubr.msk.f32.mxu0 %vm279_vm1, %v11606_v0 }
  0x85   : > { %9627 = vmatmul.mubr.msk.f32.gmra.mrb[30].mxu0 %vm279_vm1, %v11612_v1 }
  0x86   : > { %9631 = vmatprep.mubr.msk.f32.mxu0 %vm279_vm1, %v851_v2  ;;  %v11753_v2 = vld [vmem:[#allocation2 + $0x171] sm:$0xff] }
  0x87   : > { %13611 = vst [vmem:[#allocation13_spill] sm:$0xff] %v11753_v2 }
  0x89   : > { %9632 = vmatmul.mubr.msk.f32.vlgmr.msra.gmra.mrb[0].mxu0 %vm279_vm1, %v852_v3  ;;  %v1241_v3 = vld [vmem:[#allocation2 + $0x2] sm:$0xff] }
  0x8a   : > { %9680 = vmatpush3.msk.msra.mxu0 %vm590_vm0, %v11437_v9  ;;  %9634 = vmatprep.mubr.msk.f32.mxu0 %vm279_vm1, %v11617_v4  ;;  %v11647_v9 = vld [vmem:[#allocation2 + $0x51] sm:$0xff] }
  0x8b   : > { %9729 = vmatprep.subr.msk.mxu0 %vm590_vm0, %v11622_v5 }
  0x8d   : > { %9635 = vmatmul.mubr.msk.f32.gmra.mrb[2].mxu0 %vm279_vm1, %v11629_v6 }
  0x8e   : > { %9637 = vmatprep.mubr.msk.f32.mxu0 %vm279_vm1, %v11631_v7 }
  0x91   : > { %9638 = vmatmul.mubr.msk.f32.gmra.mrb[4].mxu0 %vm279_vm1, %v11639_v8 }
  0x92   : > { %9640 = vmatprep.mubr.msk.f32.mxu0 %vm279_vm1, %v11641_v10 }
  0x95   : > { %9641 = vmatmul.mubr.msk.f32.gmra.mrb[6].mxu0 %vm279_vm1, %v11647_v9 }
  0x96   : > { %9643 = vmatprep.mubr.msk.f32.mxu0 %vm279_vm1, %v11649_v11 }
  0x99   : > { %9644 = vmatmul.mubr.msk.f32.gmra.mrb[8].mxu0 %vm279_vm1, %v11655_v12 }
  0x9a   : > { %9646 = vmatprep.mubr.msk.f32.mxu0 %vm279_vm1, %v11657_v13 }
  0x9d   : > { %9647 = vmatmul.mubr.msk.f32.gmra.mrb[10].mxu0 %vm279_vm1, %v11663_v14 }
  0x9e   : > { %9649 = vmatprep.mubr.msk.f32.mxu0 %vm279_vm1, %v11665_v15 }
  0xa1   : > { %9650 = vmatmul.mubr.msk.f32.gmra.mrb[12].mxu0 %vm279_vm1, %v11671_v16 }
  0xa2   : > { %9652 = vmatprep.mubr.msk.f32.mxu0 %vm279_vm1, %v11673_v17 }
  0xa5   : > { %9653 = vmatmul.mubr.msk.f32.gmra.mrb[14].mxu0 %vm279_vm1, %v11679_v18 }
  0xa6   : > { %9655 = vmatprep.mubr.msk.f32.mxu0 %vm279_vm1, %v11681_v19 }
  0xa9   : > { %9656 = vmatmul.mubr.msk.f32.gmra.mrb[16].mxu0 %vm279_vm1, %v11687_v20 }
  0xaa   : > { %9658 = vmatprep.mubr.msk.f32.mxu0 %vm279_vm1, %v11689_v21 }
  0xad   : > { %9659 = vmatmul.mubr.msk.f32.gmra.mrb[18].mxu0 %vm279_vm1, %v11695_v22 }
  0xae   : > { %9661 = vmatprep.mubr.msk.f32.mxu0 %vm279_vm1, %v11697_v23 }
  0xb1   : > { %9662 = vmatmul.mubr.msk.f32.gmra.mrb[20].mxu0 %vm279_vm1, %v11703_v24 }
  0xb2   : > { %9664 = vmatprep.mubr.msk.f32.mxu0 %vm279_vm1, %v11705_v25 }
  0xb5   : > { %9665 = vmatmul.mubr.msk.f32.gmra.mrb[22].mxu0 %vm279_vm1, %v11711_v26 }
  0xb6   : > { %9667 = vmatprep.mubr.msk.f32.mxu0 %vm279_vm1, %v11713_v27 }
  0xb9   : > { %9668 = vmatmul.mubr.msk.f32.gmra.mrb[24].mxu0 %vm279_vm1, %v11719_v31 }
  0xba   : > { %9670 = vmatprep.mubr.msk.f32.mxu0 %vm279_vm1, %v11721_v32 }
  0xbd   : > { %9671 = vmatmul.mubr.msk.f32.gmra.mrb[26].mxu0 %vm279_vm1, %v11727_v37 }
  0xbe   : > { %9673 = vmatprep.mubr.msk.f32.mxu0 %vm279_vm1, %v11729_v38  ;;  %v11763_v38 = vld [vmem:[%s13472_s3 + $0x10] sm:$0xf] }
  0xc1   : > { %9674 = vmatmul.mubr.msk.f32.gmra.mrb[28].mxu0 %vm279_vm1, %v11745_v41 }
  0xc2   : > { %9676 = vmatprep.mubr.msk.f32.mxu0 %vm279_vm1, %v11747_v42  ;;  %v11770_v42 = vld [vmem:[#allocation2 + $0x22] sm:$0xff] }
  0xc3   : > { %13613 = vst [vmem:[#allocation15_spill] sm:$0xff] %v11770_v42 }
  0xc5   : > { %9677 = vmatmul.mubr.msk.f32.gmra.mrb[30].mxu0 %vm279_vm1, %v11753_v2  ;;  %v11772_v2 = vld [vmem:[#allocation2 + $0x32] sm:$0xff] }
  0xc6   : > { %9681 = vmatprep.mubr.msk.f32.mxu0 %vm279_vm1, %v1241_v3  ;;  %13614 = vst [vmem:[#allocation16_spill] sm:$0xff] %v11772_v2  ;;  %v11782_v3 = vld [vmem:[#allocation2 + $0x4a] sm:$0xff] }
  0xc7   : > { %13616 = vst [vmem:[#allocation18_spill] sm:$0xff] %v11782_v3 }
  0xc9   : > { %9682 = vmatmul.mubr.msk.f32.vlgmr.msra.gmra.mrb[0].mxu0 %vm279_vm1, %v1242_v40  ;;  %v11780_v40 = vld [vmem:[#allocation2 + $0x3a] sm:$0xff] }
  0xca   : > { %9730 = vmatpush3.msk.msra.mxu0 %vm590_vm0, %v11622_v5  ;;  %9684 = vmatprep.mubr.msk.f32.mxu0 %vm279_vm1, %v11758_v39  ;;  %13615 = vst [vmem:[#allocation17_spill] sm:$0xff] %v11780_v40  ;;  %v11788_v5 = vld [vmem:[#allocation2 + $0x52] sm:$0xff]  ;;  %v11790_v39 = vld [vmem:[#allocation2 + $0x62] sm:$0xff] }
  0xcb   : > { %9779 = vmatprep.subr.msk.mxu0 %vm590_vm0, %v11763_v38  ;;  %13617 = vst [vmem:[#allocation19_spill] sm:$0xff] %v11788_v5  ;;  %13618 = vst [vmem:[#allocation20_spill] sm:$0xff] %v11790_v39 }
  0xcd   : > { %9685 = vmatmul.mubr.msk.f32.gmra.mrb[2].mxu0 %vm279_vm1, %v11770_v42  ;;  %v11798_v42 = vld [vmem:[#allocation2 + $0x7a] sm:$0xff] }
  0xce   : > { %9687 = vmatprep.mubr.msk.f32.mxu0 %vm279_vm1, %v11772_v2  ;;  %v11796_v2 = vld [vmem:[#allocation2 + $0x6a] sm:$0xff]  ;;  %13620 = vst [vmem:[#allocation22_spill] sm:$0xff] %v11798_v42 }
  0xcf   : > { %13619 = vst [vmem:[#allocation21_spill] sm:$0xff] %v11796_v2 }
  0xd1   : > { %9688 = vmatmul.mubr.msk.f32.gmra.mrb[4].mxu0 %vm279_vm1, %v11780_v40  ;;  %v11806_v40 = vld [vmem:[#allocation2 + $0x92] sm:$0xff] }
  0xd2   : > { %9690 = vmatprep.mubr.msk.f32.mxu0 %vm279_vm1, %v11782_v3  ;;  %v11804_v3 = vld [vmem:[#allocation2 + $0x82] sm:$0xff]  ;;  %13622 = vst [vmem:[#allocation24_spill] sm:$0xff] %v11806_v40 }
  0xd3   : > { %13621 = vst [vmem:[#allocation23_spill] sm:$0xff] %v11804_v3 }
  0xd5   : > { %9691 = vmatmul.mubr.msk.f32.gmra.mrb[6].mxu0 %vm279_vm1, %v11788_v5  ;;  %v11814_v5 = vld [vmem:[#allocation2 + $0xaa] sm:$0xff] }
  0xd6   : > { %9693 = vmatprep.mubr.msk.f32.mxu0 %vm279_vm1, %v11790_v39  ;;  %v11812_v39 = vld [vmem:[#allocation2 + $0x9a] sm:$0xff]  ;;  %13624 = vst [vmem:[#allocation26_spill] sm:$0xff] %v11814_v5 }
  0xd7   : > { %13623 = vst [vmem:[#allocation25_spill] sm:$0xff] %v11812_v39 }
  0xd9   : > { %9694 = vmatmul.mubr.msk.f32.gmra.mrb[8].mxu0 %vm279_vm1, %v11796_v2  ;;  %v11822_v2 = vld [vmem:[#allocation2 + $0xc2] sm:$0xff] }
  0xda   : > { %9696 = vmatprep.mubr.msk.f32.mxu0 %vm279_vm1, %v11798_v42  ;;  %v11820_v42 = vld [vmem:[#allocation2 + $0xb2] sm:$0xff]  ;;  %13626 = vst [vmem:[#allocation28_spill] sm:$0xff] %v11822_v2 }
  0xdb   : > { %13625 = vst [vmem:[#allocation27_spill] sm:$0xff] %v11820_v42 }
  0xdd   : > { %9697 = vmatmul.mubr.msk.f32.gmra.mrb[10].mxu0 %vm279_vm1, %v11804_v3  ;;  %v11830_v3 = vld [vmem:[#allocation2 + $0xda] sm:$0xff] }
  0xde   : > { %9699 = vmatprep.mubr.msk.f32.mxu0 %vm279_vm1, %v11806_v40  ;;  %v11828_v40 = vld [vmem:[#allocation2 + $0xca] sm:$0xff]  ;;  %13628 = vst [vmem:[#allocation30_spill] sm:$0xff] %v11830_v3 }
  0xdf   : > { %13627 = vst [vmem:[#allocation29_spill] sm:$0xff] %v11828_v40 }
  0xe1   : > { %9700 = vmatmul.mubr.msk.f32.gmra.mrb[12].mxu0 %vm279_vm1, %v11812_v39  ;;  %v11838_v39 = vld [vmem:[#allocation2 + $0xf2] sm:$0xff] }
  0xe2   : > { %9702 = vmatprep.mubr.msk.f32.mxu0 %vm279_vm1, %v11814_v5  ;;  %v11836_v5 = vld [vmem:[#allocation2 + $0xe2] sm:$0xff]  ;;  %13630 = vst [vmem:[#allocation32_spill] sm:$0xff] %v11838_v39 }
  0xe3   : > { %13629 = vst [vmem:[#allocation31_spill] sm:$0xff] %v11836_v5 }
  0xe5   : > { %9703 = vmatmul.mubr.msk.f32.gmra.mrb[14].mxu0 %vm279_vm1, %v11820_v42  ;;  %v11846_v42 = vld [vmem:[#allocation2 + $0x10a] sm:$0xff] }
  0xe6   : > { %9705 = vmatprep.mubr.msk.f32.mxu0 %vm279_vm1, %v11822_v2  ;;  %v11844_v2 = vld [vmem:[#allocation2 + $0xfa] sm:$0xff]  ;;  %13632 = vst [vmem:[#allocation34_spill] sm:$0xff] %v11846_v42 }
  0xe7   : > { %13631 = vst [vmem:[#allocation33_spill] sm:$0xff] %v11844_v2 }
  0xe9   : > { %9706 = vmatmul.mubr.msk.f32.gmra.mrb[16].mxu0 %vm279_vm1, %v11828_v40  ;;  %v11854_v40 = vld [vmem:[#allocation2 + $0x122] sm:$0xff] }
  0xea   : > { %9708 = vmatprep.mubr.msk.f32.mxu0 %vm279_vm1, %v11830_v3  ;;  %v11852_v3 = vld [vmem:[#allocation2 + $0x112] sm:$0xff]  ;;  %13634 = vst [vmem:[#allocation36_spill] sm:$0xff] %v11854_v40 }
  0xeb   : > { %13633 = vst [vmem:[#allocation35_spill] sm:$0xff] %v11852_v3 }
  0xed   : > { %9709 = vmatmul.mubr.msk.f32.gmra.mrb[18].mxu0 %vm279_vm1, %v11836_v5  ;;  %v11862_v5 = vld [vmem:[#allocation2 + $0x13a] sm:$0xff] }
  0xee   : > { %9711 = vmatprep.mubr.msk.f32.mxu0 %vm279_vm1, %v11838_v39  ;;  %v11860_v39 = vld [vmem:[#allocation2 + $0x12a] sm:$0xff]  ;;  %13635 = vst [vmem:[#allocation37_spill] sm:$0xff] %v11862_v5 }
  0xf1   : > { %9712 = vmatmul.mubr.msk.f32.gmra.mrb[20].mxu0 %vm279_vm1, %v11844_v2  ;;  %v11870_v2 = vld [vmem:[#allocation2 + $0x152] sm:$0xff] }
  0xf2   : > { %9714 = vmatprep.mubr.msk.f32.mxu0 %vm279_vm1, %v11846_v42  ;;  %v11868_v42 = vld [vmem:[#allocation2 + $0x142] sm:$0xff]  ;;  %13636 = vst [vmem:[#allocation38_spill] sm:$0xff] %v11870_v2 }
  0xf5   : > { %9715 = vmatmul.mubr.msk.f32.gmra.mrb[22].mxu0 %vm279_vm1, %v11852_v3  ;;  %v11878_v3 = vld [vmem:[#allocation2 + $0x16a] sm:$0xff] }
  0xf6   : > { %9717 = vmatprep.mubr.msk.f32.mxu0 %vm279_vm1, %v11854_v40  ;;  %v11876_v40 = vld [vmem:[#allocation2 + $0x15a] sm:$0xff]  ;;  %13637 = vst [vmem:[#allocation39_spill] sm:$0xff] %v11878_v3 }
  0xf9   : > { %9718 = vmatmul.mubr.msk.f32.gmra.mrb[24].mxu0 %vm279_vm1, %v11860_v39 }
  0xfa   : > { %9720 = vmatprep.mubr.msk.f32.mxu0 %vm279_vm1, %v11862_v5  ;;  %v11884_v5 = vld [vmem:[#allocation2 + $0x172] sm:$0xff] }
  0xfd   : > { %9721 = vmatmul.mubr.msk.f32.gmra.mrb[26].mxu0 %vm279_vm1, %v11868_v42 }
  0xfe   : > { %9723 = vmatprep.mubr.msk.f32.mxu0 %vm279_vm1, %v11870_v2  ;;  %v8472_v2 = vld [vmem:[%s13472_s3 + $0x14] sm:$0xf] }
 0x101   : > { %9724 = vmatmul.mubr.msk.f32.gmra.mrb[28].mxu0 %vm279_vm1, %v11876_v40 }
 0x102   : > { %9726 = vmatprep.mubr.msk.f32.mxu0 %vm279_vm1, %v11878_v3 }
 0x105   : > { %9727 = vmatmul.mubr.msk.f32.gmra.mrb[30].mxu0 %vm279_vm1, %v11884_v5 }
 0x106   : > { %9731 = vmatprep.mubr.msk.f32.mxu0 %vm279_vm1, %v11477_v28  ;;  %v11952_v28 = vld [vmem:[#allocation2 + $0x180] sm:$0xff] }
 0x109   : > { %9732 = vmatmul.mubr.msk.f32.vlgmr.msra.gmra.mrb[0].mxu0 %vm279_vm1, %v11479_v29  ;;  %v11958_v29 = vld [vmem:[#allocation2 + $0x188] sm:$0xff] }
 0x10a   : > { %9780 = vmatpush3.msk.msra.mxu0 %vm590_vm0, %v11763_v38  ;;  %9734 = vmatprep.mubr.msk.f32.mxu0 %vm279_vm1, %v11481_v30  ;;  %v8506_v38 = vld [vmem:[%s13472_s3 + $0x18] sm:$0xf] }
 0x10b   : > { %9829 = vmatprep.subr.msk.mxu0 %vm590_vm0, %v8472_v2 }
 0x10d   : > { %9735 = vmatmul.mubr.msk.f32.gmra.mrb[2].mxu0 %vm279_vm1, %v11494_v33 }
 0x10e   : > { %9737 = vmatprep.mubr.msk.f32.mxu0 %vm279_vm1, %v11498_v34 }
 0x111   : > { %9738 = vmatmul.mubr.msk.f32.gmra.mrb[4].mxu0 %vm279_vm1, %v11504_v35 }
 0x112   : > { %9740 = vmatprep.mubr.msk.f32.mxu0 %vm279_vm1, %v11506_v36 }
 0x115   : > { %9741 = vmatmul.mubr.msk.f32.gmra.mrb[6].mxu0 %vm279_vm1, %v11524_v43 }
 0x116   : > { %9743 = vmatprep.mubr.msk.f32.mxu0 %vm279_vm1, %v11526_v44 }
 0x119   : > { %9744 = vmatmul.mubr.msk.f32.gmra.mrb[8].mxu0 %vm279_vm1, %v11532_v45 }
 0x11a   : > { %9746 = vmatprep.mubr.msk.f32.mxu0 %vm279_vm1, %v11534_v46 }
 0x11d   : > { %9747 = vmatmul.mubr.msk.f32.gmra.mrb[10].mxu0 %vm279_vm1, %v11540_v47 }
 0x11e   : > { %9749 = vmatprep.mubr.msk.f32.mxu0 %vm279_vm1, %v11542_v48 }
 0x121   : > { %9750 = vmatmul.mubr.msk.f32.gmra.mrb[12].mxu0 %vm279_vm1, %v11548_v49 }
 0x122   : > { %9752 = vmatprep.mubr.msk.f32.mxu0 %vm279_vm1, %v11550_v50 }
 0x125   : > { %9753 = vmatmul.mubr.msk.f32.gmra.mrb[14].mxu0 %vm279_vm1, %v11556_v51 }
 0x126   : > { %9755 = vmatprep.mubr.msk.f32.mxu0 %vm279_vm1, %v11558_v52 }
 0x129   : > { %9756 = vmatmul.mubr.msk.f32.gmra.mrb[16].mxu0 %vm279_vm1, %v11564_v53 }
 0x12a   : > { %9758 = vmatprep.mubr.msk.f32.mxu0 %vm279_vm1, %v11566_v54 }
 0x12d   : > { %9759 = vmatmul.mubr.msk.f32.gmra.mrb[18].mxu0 %vm279_vm1, %v11572_v55 }
 0x12e   : > { %9761 = vmatprep.mubr.msk.f32.mxu0 %vm279_vm1, %v11574_v56 }
 0x131   : > { %9762 = vmatmul.mubr.msk.f32.gmra.mrb[20].mxu0 %vm279_vm1, %v11580_v57 }
 0x132   : > { %9764 = vmatprep.mubr.msk.f32.mxu0 %vm279_vm1, %v11582_v58 }
 0x135   : > { %9765 = vmatmul.mubr.msk.f32.gmra.mrb[22].mxu0 %vm279_vm1, %v11588_v59 }
 0x136   : > { %9767 = vmatprep.mubr.msk.f32.mxu0 %vm279_vm1, %v11590_v60 }
 0x139   : > { %9768 = vmatmul.mubr.msk.f32.gmra.mrb[24].mxu0 %vm279_vm1, %v11596_v61 }
 0x13a   : > { %9770 = vmatprep.mubr.msk.f32.mxu0 %vm279_vm1, %v11598_v62 }
 0x13d   : > { %9771 = vmatmul.mubr.msk.f32.gmra.mrb[26].mxu0 %vm279_vm1, %v11604_v63 }
 0x13e   : > { %9773 = vmatprep.mubr.msk.f32.mxu0 %vm279_vm1, %v11606_v0 }
 0x141   : > { %9774 = vmatmul.mubr.msk.f32.gmra.mrb[28].mxu0 %vm279_vm1, %v11612_v1 }
 0x142   : > { %9776 = vmatprep.mubr.msk.f32.mxu0 %vm279_vm1, %v11952_v28 }
 0x145   : > { %9777 = vmatmul.mubr.msk.f32.gmra.mrb[30].mxu0 %vm279_vm1, %v11958_v29 }
 0x146   : > { %9781 = vmatprep.mubr.msk.f32.mxu0 %vm279_vm1, %v11617_v4  ;;  %v13638_v4 = vld [vmem:[#allocation8_spill] sm:$0xff] }
 0x149   : > { %9782 = vmatmul.mubr.msk.f32.vlgmr.msra.gmra.mrb[0].mxu0 %vm279_vm1, %v11629_v6  ;;  %v13639_v6 = vld [vmem:[#allocation12_spill] sm:$0xff] }
 0x14a   : > { %9830 = vmatpush3.msk.msra.mxu0 %vm590_vm0, %v8472_v2  ;;  %9784 = vmatprep.mubr.msk.f32.mxu0 %vm279_vm1, %v11631_v7  ;;  %v12025_v2 = vld [vmem:[#allocation2 + $0x181] sm:$0xff] }
 0x14b   : > { %9879 = vmatprep.subr.msk.mxu0 %vm590_vm0, %v8506_v38  ;;  %13640 = vst [vmem:[#allocation40_spill] sm:$0xff] %v12025_v2 }
 0x14d   : > { %9785 = vmatmul.mubr.msk.f32.gmra.mrb[2].mxu0 %vm279_vm1, %v11639_v8 }
 0x14e   : > { %9787 = vmatprep.mubr.msk.f32.mxu0 %vm279_vm1, %v11641_v10 }
 0x151   : > { %9788 = vmatmul.mubr.msk.f32.gmra.mrb[4].mxu0 %vm279_vm1, %v11647_v9 }
 0x152   : > { %9790 = vmatprep.mubr.msk.f32.mxu0 %vm279_vm1, %v11649_v11 }
 0x155   : > { %9791 = vmatmul.mubr.msk.f32.gmra.mrb[6].mxu0 %vm279_vm1, %v11655_v12 }
 0x156   : > { %9793 = vmatprep.mubr.msk.f32.mxu0 %vm279_vm1, %v11657_v13 }
 0x159   : > { %9794 = vmatmul.mubr.msk.f32.gmra.mrb[8].mxu0 %vm279_vm1, %v11663_v14 }
 0x15a   : > { %9796 = vmatprep.mubr.msk.f32.mxu0 %vm279_vm1, %v11665_v15 }
 0x15d   : > { %9797 = vmatmul.mubr.msk.f32.gmra.mrb[10].mxu0 %vm279_vm1, %v11671_v16 }
 0x15e   : > { %9799 = vmatprep.mubr.msk.f32.mxu0 %vm279_vm1, %v11673_v17 }
 0x161   : > { %9800 = vmatmul.mubr.msk.f32.gmra.mrb[12].mxu0 %vm279_vm1, %v11679_v18 }
 0x162   : > { %9802 = vmatprep.mubr.msk.f32.mxu0 %vm279_vm1, %v11681_v19 }
 0x165   : > { %9803 = vmatmul.mubr.msk.f32.gmra.mrb[14].mxu0 %vm279_vm1, %v11687_v20 }
 0x166   : > { %9805 = vmatprep.mubr.msk.f32.mxu0 %vm279_vm1, %v11689_v21 }
 0x169   : > { %9806 = vmatmul.mubr.msk.f32.gmra.mrb[16].mxu0 %vm279_vm1, %v11695_v22 }
 0x16a   : > { %9808 = vmatprep.mubr.msk.f32.mxu0 %vm279_vm1, %v11697_v23 }
 0x16d   : > { %9809 = vmatmul.mubr.msk.f32.gmra.mrb[18].mxu0 %vm279_vm1, %v11703_v24 }
 0x16e   : > { %9811 = vmatprep.mubr.msk.f32.mxu0 %vm279_vm1, %v11705_v25 }
 0x171   : > { %9812 = vmatmul.mubr.msk.f32.gmra.mrb[20].mxu0 %vm279_vm1, %v11711_v26 }
 0x172   : > { %9814 = vmatprep.mubr.msk.f32.mxu0 %vm279_vm1, %v11713_v27  ;;  %v13641_v27 = vld [vmem:[#allocation13_spill] sm:$0xff] }
 0x175   : > { %9815 = vmatmul.mubr.msk.f32.gmra.mrb[22].mxu0 %vm279_vm1, %v11719_v31  ;;  %v13653_v31 = vld [vmem:[#allocation24_spill] sm:$0xff] }
 0x176   : > { %9817 = vmatprep.mubr.msk.f32.mxu0 %vm279_vm1, %v11721_v32  ;;  %v12031_v32 = vld [vmem:[#allocation2 + $0x189] sm:$0xff] }
 0x177   : > { %13642 = vst [vmem:[#allocation41_spill] sm:$0xff] %v12031_v32 }
 0x179   : > { %9818 = vmatmul.mubr.msk.f32.gmra.mrb[24].mxu0 %vm279_vm1, %v11727_v37  ;;  %v13649_v37 = vld [vmem:[#allocation20_spill] sm:$0xff] }
 0x17a   : > { %9820 = vmatprep.mubr.msk.f32.mxu0 %vm279_vm1, %v13638_v4  ;;  %v13643_v4 = vld [vmem:[#allocation14_spill] sm:$0xff] }
 0x17d   : > { %9821 = vmatmul.mubr.msk.f32.gmra.mrb[26].mxu0 %vm279_vm1, %v11745_v41  ;;  %v13644_v41 = vld [vmem:[#allocation15_spill] sm:$0xff] }
 0x17e   : > { %9823 = vmatprep.mubr.msk.f32.mxu0 %vm279_vm1, %v13639_v6  ;;  %v8540_v6 = vld [vmem:[%s13472_s3 + $0x1c] sm:$0xf] }
 0x181   : > { %9824 = vmatmul.mubr.msk.f32.gmra.mrb[28].mxu0 %vm279_vm1, %v13641_v27  ;;  %v13645_v27 = vld [vmem:[#allocation16_spill] sm:$0xff] }
 0x182   : > { %9826 = vmatprep.mubr.msk.f32.mxu0 %vm279_vm1, %v12025_v2  ;;  %v13646_v2 = vld [vmem:[#allocation17_spill] sm:$0xff] }
 0x185   : > { %9827 = vmatmul.mubr.msk.f32.gmra.mrb[30].mxu0 %vm279_vm1, %v12031_v32  ;;  %v13647_v32 = vld [vmem:[#allocation18_spill] sm:$0xff] }
 0x186   : > { %9831 = vmatprep.mubr.msk.f32.mxu0 %vm279_vm1, %v13643_v4  ;;  %v13648_v4 = vld [vmem:[#allocation19_spill] sm:$0xff] }
 0x189   : > { %9832 = vmatmul.mubr.msk.f32.vlgmr.msra.gmra.mrb[0].mxu0 %vm279_vm1, %v13644_v41  ;;  %v13650_v41 = vld [vmem:[#allocation21_spill] sm:$0xff] }
 0x18a   : > { %9880 = vmatpush3.msk.msra.mxu0 %vm590_vm0, %v8506_v38  ;;  %9834 = vmatprep.mubr.msk.f32.mxu0 %vm279_vm1, %v13645_v27  ;;  %v13651_v38 = vld [vmem:[#allocation22_spill] sm:$0xff]  ;;  %v13652_v27 = vld [vmem:[#allocation23_spill] sm:$0xff] }
 0x18b   : > { %9929 = vmatprep.subr.msk.mxu0 %vm590_vm0, %v8540_v6 }
 0x18d   : > { %9835 = vmatmul.mubr.msk.f32.gmra.mrb[2].mxu0 %vm279_vm1, %v13646_v2  ;;  %v13654_v2 = vld [vmem:[#allocation25_spill] sm:$0xff] }
 0x18e   : > { %9837 = vmatprep.mubr.msk.f32.mxu0 %vm279_vm1, %v13647_v32  ;;  %v13655_v32 = vld [vmem:[#allocation26_spill] sm:$0xff] }
 0x191   : > { %9838 = vmatmul.mubr.msk.f32.gmra.mrb[4].mxu0 %vm279_vm1, %v13648_v4  ;;  %v13656_v4 = vld [vmem:[#allocation27_spill] sm:$0xff] }
 0x192   : > { %9840 = vmatprep.mubr.msk.f32.mxu0 %vm279_vm1, %v13649_v37  ;;  %v13657_v37 = vld [vmem:[#allocation28_spill] sm:$0xff] }
 0x195   : > { %9841 = vmatmul.mubr.msk.f32.gmra.mrb[6].mxu0 %vm279_vm1, %v13650_v41  ;;  %v13658_v41 = vld [vmem:[#allocation29_spill] sm:$0xff] }
 0x196   : > { %9843 = vmatprep.mubr.msk.f32.mxu0 %vm279_vm1, %v13651_v38  ;;  %v13659_v38 = vld [vmem:[#allocation30_spill] sm:$0xff] }
 0x199   : > { %9844 = vmatmul.mubr.msk.f32.gmra.mrb[8].mxu0 %vm279_vm1, %v13652_v27  ;;  %v13660_v27 = vld [vmem:[#allocation31_spill] sm:$0xff] }
 0x19a   : > { %9846 = vmatprep.mubr.msk.f32.mxu0 %vm279_vm1, %v13653_v31  ;;  %v13661_v31 = vld [vmem:[#allocation32_spill] sm:$0xff] }
 0x19d   : > { %9847 = vmatmul.mubr.msk.f32.gmra.mrb[10].mxu0 %vm279_vm1, %v13654_v2  ;;  %v13662_v2 = vld [vmem:[#allocation33_spill] sm:$0xff] }
 0x19e   : > { %9849 = vmatprep.mubr.msk.f32.mxu0 %vm279_vm1, %v13655_v32  ;;  %v13663_v32 = vld [vmem:[#allocation34_spill] sm:$0xff] }
 0x1a1   : > { %9850 = vmatmul.mubr.msk.f32.gmra.mrb[12].mxu0 %vm279_vm1, %v13656_v4  ;;  %v13664_v4 = vld [vmem:[#allocation35_spill] sm:$0xff] }
 0x1a2   : > { %9852 = vmatprep.mubr.msk.f32.mxu0 %vm279_vm1, %v13657_v37  ;;  %v13665_v37 = vld [vmem:[#allocation36_spill] sm:$0xff] }
 0x1a5   : > { %9853 = vmatmul.mubr.msk.f32.gmra.mrb[14].mxu0 %vm279_vm1, %v13658_v41 }
 0x1a6   : > { %9855 = vmatprep.mubr.msk.f32.mxu0 %vm279_vm1, %v13659_v38  ;;  %v13666_v38 = vld [vmem:[#allocation37_spill] sm:$0xff] }
 0x1a9   : > { %9856 = vmatmul.mubr.msk.f32.gmra.mrb[16].mxu0 %vm279_vm1, %v13660_v27 }
 0x1aa   : > { %9858 = vmatprep.mubr.msk.f32.mxu0 %vm279_vm1, %v13661_v31  ;;  %v13667_v31 = vld [vmem:[#allocation38_spill] sm:$0xff] }
 0x1ad   : > { %9859 = vmatmul.mubr.msk.f32.gmra.mrb[18].mxu0 %vm279_vm1, %v13662_v2 }
 0x1ae   : > { %9861 = vmatprep.mubr.msk.f32.mxu0 %vm279_vm1, %v13663_v32 }
 0x1b1   : > { %9862 = vmatmul.mubr.msk.f32.gmra.mrb[20].mxu0 %vm279_vm1, %v13664_v4  ;;  %v12098_v4 = vld [vmem:[#allocation2 + $0x182] sm:$0xff] }
 0x1b2   : > { %9864 = vmatprep.mubr.msk.f32.mxu0 %vm279_vm1, %v13665_v37 }
 0x1b5   : > { %9865 = vmatmul.mubr.msk.f32.gmra.mrb[22].mxu0 %vm279_vm1, %v11860_v39 }
 0x1b6   : > { %9867 = vmatprep.mubr.msk.f32.mxu0 %vm279_vm1, %v13666_v38  ;;  %v12104_v38 = vld [vmem:[#allocation2 + $0x18a] sm:$0xff] }
 0x1b9   : > { %9868 = vmatmul.mubr.msk.f32.gmra.mrb[24].mxu0 %vm279_vm1, %v11868_v42 }
 0x1ba   : > { %9870 = vmatprep.mubr.msk.f32.mxu0 %vm279_vm1, %v13667_v31 }
 0x1bd   : > { %9871 = vmatmul.mubr.msk.f32.gmra.mrb[26].mxu0 %vm279_vm1, %v11876_v40 }
 0x1be   : > { %9873 = vmatprep.mubr.msk.f32.mxu0 %vm279_vm1, %v11878_v3  ;;  %v8574_v3 = vld [vmem:[%s13472_s3 + $0x20] sm:$0xf] }
 0x1c1   : > { %9874 = vmatmul.mubr.msk.f32.gmra.mrb[28].mxu0 %vm279_vm1, %v11884_v5 }
 0x1c2   : > { %9876 = vmatprep.mubr.msk.f32.mxu0 %vm279_vm1, %v12098_v4 }
 0x1c5   : > { %9877 = vmatmul.mubr.msk.f32.gmra.mrb[30].mxu0 %vm279_vm1, %v12104_v38 }
 0x1c6   : > { %9881 = vmatprep.mubr.msk.f32.mxu0 %vm279_vm1, %v11481_v30  ;;  %v2832_v30 = vld [vmem:[#allocation2 + $0x198] sm:$0xff] }
 0x1c9   : > { %9882 = vmatmul.mubr.msk.f32.vlgmr.msra.gmra.mrb[0].mxu0 %vm279_vm1, %v11494_v33  ;;  %v2833_v33 = vld [vmem:[#allocation2 + $0x1a0] sm:$0xff] }
 0x1ca   : > { %9930 = vmatpush3.msk.msra.mxu0 %vm590_vm0, %v8540_v6  ;;  %9884 = vmatprep.mubr.msk.f32.mxu0 %vm279_vm1, %v11498_v34  ;;  %v12178_v34 = vld [vmem:[%s13470_s1] sm:$0xf] }
 0x1cb   : > { %9979 = vmatprep.subr.msk.mxu0 %vm590_vm0, %v8574_v3  ;;  %10529 = vmatprep.subr.msk.mxu1 %vm590_vm0, %v12178_v34 }
 0x1cc   : > { %10530 = vmatpush3.msk.msra.mxu1 %vm590_vm0, %v12178_v34 }
 0x1cd   : > { %9885 = vmatmul.mubr.msk.f32.gmra.mrb[2].mxu0 %vm279_vm1, %v11504_v35  ;;  %v4117_v35 = vld [vmem:[%s11423_s11 + $0x80] sm:$0xff] }
 0x1ce   : > { %9887 = vmatprep.mubr.msk.f32.mxu0 %vm279_vm1, %v11506_v36  ;;  %v4118_v36 = vld [vmem:[%s11423_s11 + $0x88] sm:$0xff]  ;;  %10055 = vmatprep.mubr.msk.f32.mxu1 %vm279_vm1, %v4117_v35 }
 0x1cf   : > { %10056 = vmatmul.mubr.msk.f32.vlgmr.msra.gmra.mrb[0].mxu1 %vm279_vm1, %v4118_v36 }
 0x1d1   : > { %9888 = vmatmul.mubr.msk.f32.gmra.mrb[4].mxu0 %vm279_vm1, %v11524_v43  ;;  %v4600_v43 = vld [vmem:[%s13474_s5] sm:$0xf] }
 0x1d2   : > { %9890 = vmatprep.mubr.msk.f32.mxu0 %vm279_vm1, %v11526_v44  ;;  %v4119_v44 = vld [vmem:[%s11423_s11 + $0x90] sm:$0xff]  ;;  %10079 = vmatprep.subr.msk.mxu1 %vm590_vm0, %v4600_v43 }
 0x1d3   : > { %10058 = vmatprep.mubr.msk.f32.mxu1 %vm279_vm1, %v4119_v44  ;;  %10080 = vmatpush3.msk.msra.mxu1 %vm590_vm0, %v4600_v43 }
 0x1d5   : > { %9891 = vmatmul.mubr.msk.f32.gmra.mrb[6].mxu0 %vm279_vm1, %v11532_v45  ;;  %v4120_v45 = vld [vmem:[%s11423_s11 + $0x98] sm:$0xff] }
 0x1d6   : > { %9893 = vmatprep.mubr.msk.f32.mxu0 %vm279_vm1, %v11534_v46  ;;  %v4121_v46 = vld [vmem:[%s11423_s11 + $0xa0] sm:$0xff]  ;;  %10059 = vmatmul.mubr.msk.f32.gmra.mrb[2].mxu1 %vm279_vm1, %v4120_v45 }
 0x1d7   : > { %10061 = vmatprep.mubr.msk.f32.mxu1 %vm279_vm1, %v4121_v46 }
 0x1d9   : > { %9894 = vmatmul.mubr.msk.f32.gmra.mrb[8].mxu0 %vm279_vm1, %v11540_v47  ;;  %v4122_v47 = vld [vmem:[%s11423_s11 + $0xa8] sm:$0xff] }
 0x1da   : > { %9896 = vmatprep.mubr.msk.f32.mxu0 %vm279_vm1, %v11542_v48  ;;  %v4123_v48 = vld [vmem:[%s11423_s11 + $0xb0] sm:$0xff]  ;;  %10062 = vmatmul.mubr.msk.f32.gmra.mrb[4].mxu1 %vm279_vm1, %v4122_v47 }
 0x1db   : > { %10064 = vmatprep.mubr.msk.f32.mxu1 %vm279_vm1, %v4123_v48 }
 0x1dd   : > { %9897 = vmatmul.mubr.msk.f32.gmra.mrb[10].mxu0 %vm279_vm1, %v11548_v49  ;;  %v4124_v49 = vld [vmem:[%s11423_s11 + $0xb8] sm:$0xff] }
 0x1de   : > { %9899 = vmatprep.mubr.msk.f32.mxu0 %vm279_vm1, %v11550_v50  ;;  %v4125_v50 = vld [vmem:[%s11423_s11 + $0xc0] sm:$0xff]  ;;  %10065 = vmatmul.mubr.msk.f32.gmra.mrb[6].mxu1 %vm279_vm1, %v4124_v49 }
 0x1df   : > { %10067 = vmatprep.mubr.msk.f32.mxu1 %vm279_vm1, %v4125_v50 }
 0x1e1   : > { %9900 = vmatmul.mubr.msk.f32.gmra.mrb[12].mxu0 %vm279_vm1, %v11556_v51  ;;  %v4126_v51 = vld [vmem:[%s11423_s11 + $0xc8] sm:$0xff] }
 0x1e2   : > { %9902 = vmatprep.mubr.msk.f32.mxu0 %vm279_vm1, %v11558_v52  ;;  %v4127_v52 = vld [vmem:[%s11423_s11 + $0xd0] sm:$0xff]  ;;  %10068 = vmatmul.mubr.msk.f32.gmra.mrb[8].mxu1 %vm279_vm1, %v4126_v51 }
 0x1e3   : > { %10070 = vmatprep.mubr.msk.f32.mxu1 %vm279_vm1, %v4127_v52 }
 0x1e5   : > { %9903 = vmatmul.mubr.msk.f32.gmra.mrb[14].mxu0 %vm279_vm1, %v11564_v53  ;;  %v4128_v53 = vld [vmem:[%s11423_s11 + $0xd8] sm:$0xff] }
 0x1e6   : > { %9905 = vmatprep.mubr.msk.f32.mxu0 %vm279_vm1, %v11566_v54  ;;  %10071 = vmatmul.mubr.msk.f32.gmra.mrb[10].mxu1 %vm279_vm1, %v4128_v53  ;;  %v13668_v54 = vld [vmem:[#allocation4_spill] sm:$0xff] }
 0x1e9   : > { %9906 = vmatmul.mubr.msk.f32.gmra.mrb[16].mxu0 %vm279_vm1, %v11572_v55  ;;  %v13669_v55 = vld [vmem:[#allocation5_spill] sm:$0xff] }
 0x1ea   : > { %9908 = vmatprep.mubr.msk.f32.mxu0 %vm279_vm1, %v11574_v56  ;;  %v13670_v56 = vld [vmem:[#allocation6_spill] sm:$0xff] }
 0x1ed   : > { %9909 = vmatmul.mubr.msk.f32.gmra.mrb[18].mxu0 %vm279_vm1, %v11580_v57  ;;  %v13671_v57 = vld [vmem:[#allocation7_spill] sm:$0xff] }
 0x1ee   : > { %9911 = vmatprep.mubr.msk.f32.mxu0 %vm279_vm1, %v11582_v58  ;;  %v13672_v58 = vld [vmem:[#allocation8_spill] sm:$0xff] }
 0x1f1   : > { %9912 = vmatmul.mubr.msk.f32.gmra.mrb[20].mxu0 %vm279_vm1, %v11588_v59  ;;  %v13673_v59 = vld [vmem:[#allocation11_spill] sm:$0xff] }
 0x1f2   : > { %9914 = vmatprep.mubr.msk.f32.mxu0 %vm279_vm1, %v11590_v60  ;;  %v13674_v60 = vld [vmem:[#allocation12_spill] sm:$0xff] }
 0x1f5   : > { %9915 = vmatmul.mubr.msk.f32.gmra.mrb[22].mxu0 %vm279_vm1, %v11596_v61  ;;  %v13675_v61 = vld [vmem:[#allocation13_spill] sm:$0xff] }
 0x1f6   : > { %9917 = vmatprep.mubr.msk.f32.mxu0 %vm279_vm1, %v11598_v62  ;;  %v13676_v62 = vld [vmem:[#allocation40_spill] sm:$0xff] }
 0x1f9   : > { %9918 = vmatmul.mubr.msk.f32.gmra.mrb[24].mxu0 %vm279_vm1, %v11604_v63  ;;  %v3222_v63 = vld [vmem:[#allocation2 + $0x199] sm:$0xff] }
 0x1fa   : > { %9920 = vmatprep.mubr.msk.f32.mxu0 %vm279_vm1, %v11606_v0  ;;  %v13677_v0 = vld [vmem:[#allocation41_spill] sm:$0xff] }
 0x1fd   : > { %9921 = vmatmul.mubr.msk.f32.gmra.mrb[26].mxu0 %vm279_vm1, %v11612_v1  ;;  %v3223_v1 = vld [vmem:[#allocation2 + $0x1a1] sm:$0xff] }
 0x1fe   : > { %9923 = vmatprep.mubr.msk.f32.mxu0 %vm279_vm1, %v11952_v28 }
 0x201   : > { %9924 = vmatmul.mubr.msk.f32.gmra.mrb[28].mxu0 %vm279_vm1, %v11958_v29 }
 0x202   : > { %9926 = vmatprep.mubr.msk.f32.mxu0 %vm279_vm1, %v2832_v30 }
 0x205   : > { %9927 = vmatmul.mubr.msk.f32.gmra.mrb[30].mxu0 %vm279_vm1, %v2833_v33 }
 0x206   : > { %9931 = vmatprep.mubr.msk.f32.mxu0 %vm279_vm1, %v11631_v7  ;;  %v13678_v7 = vld [vmem:[#allocation16_spill] sm:$0xff] }
 0x209   : > { %9932 = vmatmul.mubr.msk.f32.vlgmr.msra.gmra.mrb[0].mxu0 %vm279_vm1, %v11639_v8  ;;  %v13679_v8 = vld [vmem:[#allocation17_spill] sm:$0xff] }
 0x20a   : > { %9980 = vmatpush3.msk.msra.mxu0 %vm590_vm0, %v8574_v3  ;;  %9934 = vmatprep.mubr.msk.f32.mxu0 %vm279_vm1, %v11641_v10  ;;  %v13680_v10 = vld [vmem:[#allocation18_spill] sm:$0xff]  ;;  %v12360_v3 = vld [vmem:[%s13474_s5 + $0x8] sm:$0xf] }
 0x20b   : > { %10029 = vmatprep.subr.msk.mxu0 %vm590_vm0, %v12178_v34 }
 0x20d   : > { %9935 = vmatmul.mubr.msk.f32.gmra.mrb[2].mxu0 %vm279_vm1, %v11647_v9  ;;  %v13681_v9 = vld [vmem:[#allocation19_spill] sm:$0xff] }
 0x20e   : > { %9937 = vmatprep.mubr.msk.f32.mxu0 %vm279_vm1, %v11649_v11  ;;  %v13682_v11 = vld [vmem:[#allocation20_spill] sm:$0xff] }
 0x211   : > { %9938 = vmatmul.mubr.msk.f32.gmra.mrb[4].mxu0 %vm279_vm1, %v11655_v12  ;;  %v13683_v12 = vld [vmem:[#allocation21_spill] sm:$0xff] }
 0x212   : > { %9940 = vmatprep.mubr.msk.f32.mxu0 %vm279_vm1, %v11657_v13  ;;  %v13684_v13 = vld [vmem:[#allocation22_spill] sm:$0xff] }
 0x215   : > { %9941 = vmatmul.mubr.msk.f32.gmra.mrb[6].mxu0 %vm279_vm1, %v11663_v14  ;;  %v13685_v14 = vld [vmem:[#allocation23_spill] sm:$0xff] }
 0x216   : > { %9943 = vmatprep.mubr.msk.f32.mxu0 %vm279_vm1, %v11665_v15  ;;  %v13686_v15 = vld [vmem:[#allocation24_spill] sm:$0xff] }
 0x219   : > { %9944 = vmatmul.mubr.msk.f32.gmra.mrb[8].mxu0 %vm279_vm1, %v11671_v16  ;;  %v13687_v16 = vld [vmem:[#allocation25_spill] sm:$0xff] }
 0x21a   : > { %9946 = vmatprep.mubr.msk.f32.mxu0 %vm279_vm1, %v11673_v17  ;;  %v13688_v17 = vld [vmem:[#allocation26_spill] sm:$0xff] }
 0x21d   : > { %9947 = vmatmul.mubr.msk.f32.gmra.mrb[10].mxu0 %vm279_vm1, %v11679_v18  ;;  %v13689_v18 = vld [vmem:[#allocation27_spill] sm:$0xff] }
 0x21e   : > { %9949 = vmatprep.mubr.msk.f32.mxu0 %vm279_vm1, %v11681_v19  ;;  %v13690_v19 = vld [vmem:[#allocation28_spill] sm:$0xff] }
 0x221   : > { %9950 = vmatmul.mubr.msk.f32.gmra.mrb[12].mxu0 %vm279_vm1, %v11687_v20  ;;  %v13691_v20 = vld [vmem:[#allocation30_spill] sm:$0xff] }
 0x222   : > { %9952 = vmatprep.mubr.msk.f32.mxu0 %vm279_vm1, %v11689_v21  ;;  %v13692_v21 = vld [vmem:[#allocation32_spill] sm:$0xff] }
 0x225   : > { %9953 = vmatmul.mubr.msk.f32.gmra.mrb[14].mxu0 %vm279_vm1, %v11695_v22  ;;  %v13693_v22 = vld [vmem:[#allocation35_spill] sm:$0xff] }
 0x226   : > { %9955 = vmatprep.mubr.msk.f32.mxu0 %vm279_vm1, %v11697_v23  ;;  %v13694_v23 = vld [vmem:[#allocation37_spill] sm:$0xff] }
 0x229   : > { %9956 = vmatmul.mubr.msk.f32.gmra.mrb[16].mxu0 %vm279_vm1, %v11703_v24  ;;  %v13695_v24 = vld [vmem:[#allocation39_spill] sm:$0xff] }
 0x22a   : > { %9958 = vmatprep.mubr.msk.f32.mxu0 %vm279_vm1, %v11705_v25  ;;  %v3612_v25 = vld [vmem:[#allocation2 + $0x19a] sm:$0xff] }
 0x22d   : > { %9959 = vmatmul.mubr.msk.f32.gmra.mrb[18].mxu0 %vm279_vm1, %v11711_v26  ;;  %v3613_v26 = vld [vmem:[#allocation2 + $0x1a2] sm:$0xff] }
 0x22e   : > { %9961 = vmatprep.mubr.msk.f32.mxu0 %vm279_vm1, %v13668_v54 }
 0x231   : > { %9962 = vmatmul.mubr.msk.f32.gmra.mrb[20].mxu0 %vm279_vm1, %v13669_v55 }
 0x232   : > { %9964 = vmatprep.mubr.msk.f32.mxu0 %vm279_vm1, %v13670_v56 }
 0x235   : > { %9965 = vmatmul.mubr.msk.f32.gmra.mrb[22].mxu0 %vm279_vm1, %v13671_v57 }
 0x236   : > { %9967 = vmatprep.mubr.msk.f32.mxu0 %vm279_vm1, %v13672_v58 }
 0x239   : > { %9968 = vmatmul.mubr.msk.f32.gmra.mrb[24].mxu0 %vm279_vm1, %v13673_v59 }
 0x23a   : > { %9970 = vmatprep.mubr.msk.f32.mxu0 %vm279_vm1, %v13674_v60 }
 0x23d   : > { %9971 = vmatmul.mubr.msk.f32.gmra.mrb[26].mxu0 %vm279_vm1, %v13675_v61 }
 0x23e   : > { %9973 = vmatprep.mubr.msk.f32.mxu0 %vm279_vm1, %v13676_v62 }
 0x241   : > { %9974 = vmatmul.mubr.msk.f32.gmra.mrb[28].mxu0 %vm279_vm1, %v13677_v0 }
 0x242   : > { %9976 = vmatprep.mubr.msk.f32.mxu0 %vm279_vm1, %v3222_v63 }
 0x245   : > { %9977 = vmatmul.mubr.msk.f32.gmra.mrb[30].mxu0 %vm279_vm1, %v3223_v1 }
 0x246   : > { %9981 = vmatprep.mubr.msk.f32.mxu0 %vm279_vm1, %v13678_v7 }
 0x249   : > { %9982 = vmatmul.mubr.msk.f32.vlgmr.msra.gmra.mrb[0].mxu0 %vm279_vm1, %v13679_v8 }
 0x24a   : > { %9984 = vmatprep.mubr.msk.f32.mxu0 %vm279_vm1, %v13680_v10  ;;  %10030 = vmatpush3.msk.msra.mxu0 %vm590_vm0, %v12178_v34 }
 0x24d   : > { %9985 = vmatmul.mubr.msk.f32.gmra.mrb[2].mxu0 %vm279_vm1, %v13681_v9 }
 0x24e   : > { %9987 = vmatprep.mubr.msk.f32.mxu0 %vm279_vm1, %v13682_v11 }
 0x251   : > { %9988 = vmatmul.mubr.msk.f32.gmra.mrb[4].mxu0 %vm279_vm1, %v13683_v12 }
 0x252   : > { %9990 = vmatprep.mubr.msk.f32.mxu0 %vm279_vm1, %v13684_v13 }
 0x255   : > { %9991 = vmatmul.mubr.msk.f32.gmra.mrb[6].mxu0 %vm279_vm1, %v13685_v14 }
 0x256   : > { %9993 = vmatprep.mubr.msk.f32.mxu0 %vm279_vm1, %v13686_v15 }
 0x259   : > { %9994 = vmatmul.mubr.msk.f32.gmra.mrb[8].mxu0 %vm279_vm1, %v13687_v16 }
 0x25a   : > { %9996 = vmatprep.mubr.msk.f32.mxu0 %vm279_vm1, %v13688_v17 }
 0x25d   : > { %9997 = vmatmul.mubr.msk.f32.gmra.mrb[10].mxu0 %vm279_vm1, %v13689_v18 }
 0x25e   : > { %9999 = vmatprep.mubr.msk.f32.mxu0 %vm279_vm1, %v13690_v19 }
 0x261   : > { %10000 = vmatmul.mubr.msk.f32.gmra.mrb[12].mxu0 %vm279_vm1, %v13658_v41 }
 0x262   : > { %10002 = vmatprep.mubr.msk.f32.mxu0 %vm279_vm1, %v13691_v20 }
 0x265   : > { %10003 = vmatmul.mubr.msk.f32.gmra.mrb[14].mxu0 %vm279_vm1, %v13660_v27  ;;  %v4129_v27 = vld [vmem:[%s11423_s11 + $0xe0] sm:$0xff] }
 0x266   : > { %10005 = vmatprep.mubr.msk.f32.mxu0 %vm279_vm1, %v13692_v21  ;;  %10073 = vmatprep.mubr.msk.f32.mxu1 %vm279_vm1, %v4129_v27 }
 0x269   : > { %10006 = vmatmul.mubr.msk.f32.gmra.mrb[16].mxu0 %vm279_vm1, %v13662_v2 }
 0x26a   : > { %10008 = vmatprep.mubr.msk.f32.mxu0 %vm279_vm1, %v13663_v32  ;;  %v13696_v32 = vld [vmem:[#allocation9_spill] sm:$0xff] }
 0x26d   : > { %10009 = vmatmul.mubr.msk.f32.gmra.mrb[18].mxu0 %vm279_vm1, %v13693_v22 }
 0x26e   : > { %10011 = vmatprep.mubr.msk.f32.mxu0 %vm279_vm1, %v13665_v37  ;;  %v13697_v37 = vld [vmem:[#allocation10_spill] sm:$0xff] }
 0x271   : > { %10012 = vmatmul.mubr.msk.f32.gmra.mrb[20].mxu0 %vm279_vm1, %v11860_v39  ;;  %v4568_v39 = vld [vmem:[#allocation3] sm:$0xff] }
 0x272   : > { %10014 = vmatprep.mubr.msk.f32.mxu0 %vm279_vm1, %v13694_v23 }
 0x275   : > { %10015 = vmatmul.mubr.msk.f32.gmra.mrb[22].mxu0 %vm279_vm1, %v11868_v42  ;;  %v4569_v42 = vld [vmem:[#allocation3 + $0x8] sm:$0xff] }
 0x276   : > { %10017 = vmatprep.mubr.msk.f32.mxu0 %vm279_vm1, %v13667_v31  ;;  %v4130_v31 = vld [vmem:[%s11423_s11 + $0xe8] sm:$0xff] }
 0x277   : > { %10074 = vmatmul.mubr.msk.f32.gmra.mrb[12].mxu1 %vm279_vm1, %v4130_v31 }
 0x278   : > { %10076 = vmatprep.mubr.msk.f32.mxu1 %vm279_vm1, %v13696_v32 }
 0x279   : > { %10018 = vmatmul.mubr.msk.f32.gmra.mrb[24].mxu0 %vm279_vm1, %v11876_v40  ;;  %v8676_v40 = vld [vmem:[%s13474_s5 + $0x4] sm:$0xf] }
 0x27a   : > { %10020 = vmatprep.mubr.msk.f32.mxu0 %vm279_vm1, %v13695_v24  ;;  %10129 = vmatprep.subr.msk.mxu1 %vm590_vm0, %v8676_v40 }
 0x27b   : > { %10077 = vmatmul.mubr.msk.f32.gmra.mrb[14].mxu1 %vm279_vm1, %v13697_v37 }
 0x27c   : > { %10081 = vmatprep.mubr.msk.f32.mxu1 %vm279_vm1, %v4568_v39 }
 0x27d   : > { %10021 = vmatmul.mubr.msk.f32.gmra.mrb[26].mxu0 %vm279_vm1, %v11884_v5  ;;  %v12367_v5 = vld [vmem:[%s13473_s4] ss:$0 sm:$0xff] }
 0x27e   : > { %10023 = vmatprep.mubr.msk.f32.mxu0 %vm279_vm1, %v12098_v4 }
 0x27f   : > { %10082 = vmatmul.mubr.msk.f32.vlgmr.msra.gmra.mrb[16].mxu1 %vm279_vm1, %v4569_v42 }
 0x280   : > { %10130 = vmatpush3.msk.msra.mxu1 %vm590_vm0, %v8676_v40 }
 0x281   : > { %10024 = vmatmul.mubr.msk.f32.gmra.mrb[28].mxu0 %vm279_vm1, %v12104_v38  ;;  %10179 = vmatprep.subr.msk.mxu1 %vm590_vm0, %v12360_v3 }
 0x282   : > { %10026 = vmatprep.mubr.msk.f32.mxu0 %vm279_vm1, %v3612_v25 }
 0x285   : > { %10027 = vmatmul.mubr.msk.f32.gmra.mrb[30].mxu0 %vm279_vm1, %v3613_v26 }
 0x31c   : > { %v9983_v28 = vpop.f32.mrb[0].mxu0 }
 0x31d   : > { %v10531_v29 = vadd.f32 %v9983_v28, %v12367_v5  ;;  %v3781_v6 = vpop.f32.mrb[1].mxu0 }
 0x31e   : > { %v10532_v2 = vadd.f32 %v12367_v5, %v3781_v6 }
 0x31f   : > { %vm3973_vm3 = vcmp.gt.f32.partialorder %v10531_v29, 0.0  ;;  %v4005_v4 = vmul.f32 0.2, %v10531_v29 }
 0x320   : > { %vm3972_vm4 = vcmp.gt.f32.partialorder %v10532_v2, 0.0  ;;  %v4004_v41 = vmul.f32 0.2, %v10532_v2  ;;  %v9986_v38 = vpop.f32.mrb[2].mxu0 }
 0x321   : > { %v4037_v30 = vsel %vm3973_vm3, %v10531_v29, %v4005_v4  ;;  %v10533_v33 = vadd.f32 %v9986_v38, %v12367_v5  ;;  %v3791_v34 = vpop.f32.mrb[3].mxu0 }
 0x322   : > { %4070 = vst.msk [vmem:[#allocation3 + $0x21] sm:$0xff] %vm279_vm1, %v4037_v30  ;;  %v4036_v35 = vsel %vm3972_vm4, %v10532_v2, %v4004_v41  ;;  %v10534_v36 = vadd.f32 %v12367_v5, %v3791_v34 }
 0x323   : > { %4069 = vst.msk [vmem:[#allocation3 + $0x19] sm:$0xff] %vm279_vm1, %v4036_v35  ;;  %vm3975_vm5 = vcmp.gt.f32.partialorder %v10533_v33, 0.0  ;;  %v4007_v43 = vmul.f32 0.2, %v10533_v33 }
 0x324   : > { %vm3974_vm6 = vcmp.gt.f32.partialorder %v10534_v36, 0.0  ;;  %v4006_v44 = vmul.f32 0.2, %v10534_v36  ;;  %v9989_v45 = vpop.f32.mrb[4].mxu0 }
 0x325   : > { %v4039_v46 = vsel %vm3975_vm5, %v10533_v33, %v4007_v43  ;;  %v10535_v47 = vadd.f32 %v9989_v45, %v12367_v5  ;;  %v3801_v48 = vpop.f32.mrb[5].mxu0 }
 0x326   : > { %4072 = vst.msk [vmem:[#allocation3 + $0x39] sm:$0xff] %vm279_vm1, %v4039_v46  ;;  %v4038_v49 = vsel %vm3974_vm6, %v10534_v36, %v4006_v44  ;;  %v10536_v50 = vadd.f32 %v12367_v5, %v3801_v48 }
 0x327   : > { %4071 = vst.msk [vmem:[#allocation3 + $0x31] sm:$0xff] %vm279_vm1, %v4038_v49  ;;  %vm3977_vm7 = vcmp.gt.f32.partialorder %v10535_v47, 0.0  ;;  %v4009_v51 = vmul.f32 0.2, %v10535_v47 }
 0x328   : > { %vm3976_vm8 = vcmp.gt.f32.partialorder %v10536_v50, 0.0  ;;  %v4008_v52 = vmul.f32 0.2, %v10536_v50  ;;  %v9992_v53 = vpop.f32.mrb[6].mxu0 }
 0x329   : > { %v4041_v54 = vsel %vm3977_vm7, %v10535_v47, %v4009_v51  ;;  %v10537_v55 = vadd.f32 %v9992_v53, %v12367_v5  ;;  %v3811_v56 = vpop.f32.mrb[7].mxu0 }
 0x32a   : > { %4074 = vst.msk [vmem:[#allocation3 + $0x51] sm:$0xff] %vm279_vm1, %v4041_v54  ;;  %v4040_v57 = vsel %vm3976_vm8, %v10536_v50, %v4008_v52  ;;  %v10538_v58 = vadd.f32 %v12367_v5, %v3811_v56  ;;  %v12382_v59 = vld [vmem:[#allocation3 + $0x18] sm:$0xff]  ;;  %v12384_v60 = vld [vmem:[#allocation3 + $0x20] sm:$0xff] }
 0x32b   : > { %4073 = vst.msk [vmem:[#allocation3 + $0x49] sm:$0xff] %vm279_vm1, %v4040_v57  ;;  %vm3979_vm9 = vcmp.gt.f32.partialorder %v10537_v55, 0.0  ;;  %v4011_v61 = vmul.f32 0.2, %v10537_v55  ;;  %10084 = vmatprep.mubr.msk.f32.mxu1 %vm279_vm1, %v12382_v59 }
 0x32c   : > { %vm3978_vm10 = vcmp.gt.f32.partialorder %v10538_v58, 0.0  ;;  %v4010_v62 = vmul.f32 0.2, %v10538_v58  ;;  %v9995_v63 = vpop.f32.mrb[8].mxu0  ;;  %10085 = vmatmul.mubr.msk.f32.gmra.mrb[18].mxu1 %vm279_vm1, %v12384_v60 }
 0x32d   : > { %v4043_v0 = vsel %vm3979_vm9, %v10537_v55, %v4011_v61  ;;  %v10539_v1 = vadd.f32 %v9995_v63, %v12367_v5  ;;  %v3821_v7 = vpop.f32.mrb[9].mxu0 }
 0x32e   : > { %4076 = vst.msk [vmem:[#allocation3 + $0x69] sm:$0xff] %vm279_vm1, %v4043_v0  ;;  %v4042_v8 = vsel %vm3978_vm10, %v10538_v58, %v4010_v62  ;;  %v10540_v10 = vadd.f32 %v12367_v5, %v3821_v7  ;;  %v12394_v9 = vld [vmem:[#allocation3 + $0x30] sm:$0xff]  ;;  %v12396_v11 = vld [vmem:[#allocation3 + $0x38] sm:$0xff] }
 0x32f   : > { %4075 = vst.msk [vmem:[#allocation3 + $0x61] sm:$0xff] %vm279_vm1, %v4042_v8  ;;  %vm3981_vm11 = vcmp.gt.f32.partialorder %v10539_v1, 0.0  ;;  %v4013_v12 = vmul.f32 0.2, %v10539_v1  ;;  %10087 = vmatprep.mubr.msk.f32.mxu1 %vm279_vm1, %v12394_v9 }
 0x330   : > { %vm3980_vm12 = vcmp.gt.f32.partialorder %v10540_v10, 0.0  ;;  %v4012_v13 = vmul.f32 0.2, %v10540_v10  ;;  %v9998_v14 = vpop.f32.mrb[10].mxu0  ;;  %10088 = vmatmul.mubr.msk.f32.gmra.mrb[20].mxu1 %vm279_vm1, %v12396_v11 }
 0x331   : > { %v4045_v15 = vsel %vm3981_vm11, %v10539_v1, %v4013_v12  ;;  %v10541_v16 = vadd.f32 %v9998_v14, %v12367_v5  ;;  %v3831_v17 = vpop.f32.mrb[11].mxu0 }
 0x332   : > { %4078 = vst.msk [vmem:[#allocation3 + $0x81] sm:$0xff] %vm279_vm1, %v4045_v15  ;;  %v4044_v18 = vsel %vm3980_vm12, %v10540_v10, %v4012_v13  ;;  %v10542_v19 = vadd.f32 %v12367_v5, %v3831_v17  ;;  %v12406_v20 = vld [vmem:[#allocation3 + $0x48] sm:$0xff]  ;;  %v12408_v21 = vld [vmem:[#allocation3 + $0x50] sm:$0xff] }
 0x333   : > { %4077 = vst.msk [vmem:[#allocation3 + $0x79] sm:$0xff] %vm279_vm1, %v4044_v18  ;;  %vm3983_vm13 = vcmp.gt.f32.partialorder %v10541_v16, 0.0  ;;  %v4015_v22 = vmul.f32 0.2, %v10541_v16  ;;  %10090 = vmatprep.mubr.msk.f32.mxu1 %vm279_vm1, %v12406_v20 }
 0x334   : > { %vm3982_vm14 = vcmp.gt.f32.partialorder %v10542_v19, 0.0  ;;  %v4014_v23 = vmul.f32 0.2, %v10542_v19  ;;  %v10001_v24 = vpop.f32.mrb[12].mxu0  ;;  %10091 = vmatmul.mubr.msk.f32.gmra.mrb[22].mxu1 %vm279_vm1, %v12408_v21 }
 0x335   : > { %v4047_v25 = vsel %vm3983_vm13, %v10541_v16, %v4015_v22  ;;  %v10543_v26 = vadd.f32 %v10001_v24, %v12367_v5  ;;  %v3841_v27 = vpop.f32.mrb[13].mxu0 }
 0x336   : > { %4080 = vst.msk [vmem:[#allocation3 + $0x99] sm:$0xff] %vm279_vm1, %v4047_v25  ;;  %v4046_v31 = vsel %vm3982_vm14, %v10542_v19, %v4014_v23  ;;  %v10544_v32 = vadd.f32 %v12367_v5, %v3841_v27  ;;  %v12418_v37 = vld [vmem:[#allocation3 + $0x60] sm:$0xff]  ;;  %v12420_v39 = vld [vmem:[#allocation3 + $0x68] sm:$0xff] }
 0x337   : > { %4079 = vst.msk [vmem:[#allocation3 + $0x91] sm:$0xff] %vm279_vm1, %v4046_v31  ;;  %vm3985_vm15 = vcmp.gt.f32.partialorder %v10543_v26, 0.0  ;;  %v4017_v42 = vmul.f32 0.2, %v10543_v26  ;;  %10093 = vmatprep.mubr.msk.f32.mxu1 %vm279_vm1, %v12418_v37 }
 0x338   : > { %vm3984_vm2 = vcmp.gt.f32.partialorder %v10544_v32, 0.0  ;;  %v4016_v40 = vmul.f32 0.2, %v10544_v32  ;;  %v10004_v28 = vpop.f32.mrb[14].mxu0  ;;  %10094 = vmatmul.mubr.msk.f32.gmra.mrb[24].mxu1 %vm279_vm1, %v12420_v39 }
 0x339   : > { %v4049_v29 = vsel %vm3985_vm15, %v10543_v26, %v4017_v42  ;;  %v10545_v6 = vadd.f32 %v10004_v28, %v12367_v5  ;;  %v3851_v2 = vpop.f32.mrb[15].mxu0 }
 0x33a   : > { %4082 = vst.msk [vmem:[#allocation3 + $0xb1] sm:$0xff] %vm279_vm1, %v4049_v29  ;;  %v4048_v4 = vsel %vm3984_vm2, %v10544_v32, %v4016_v40  ;;  %v10546_v41 = vadd.f32 %v12367_v5, %v3851_v2  ;;  %v12430_v38 = vld [vmem:[#allocation3 + $0x78] sm:$0xff]  ;;  %v12432_v30 = vld [vmem:[#allocation3 + $0x80] sm:$0xff] }
 0x33b   : > { %4081 = vst.msk [vmem:[#allocation3 + $0xa9] sm:$0xff] %vm279_vm1, %v4048_v4  ;;  %vm3987_vm3 = vcmp.gt.f32.partialorder %v10545_v6, 0.0  ;;  %v4019_v33 = vmul.f32 0.2, %v10545_v6  ;;  %10096 = vmatprep.mubr.msk.f32.mxu1 %vm279_vm1, %v12430_v38 }
 0x33c   : > { %vm3986_vm4 = vcmp.gt.f32.partialorder %v10546_v41, 0.0  ;;  %v4018_v34 = vmul.f32 0.2, %v10546_v41  ;;  %v10007_v35 = vpop.f32.mrb[16].mxu0  ;;  %10097 = vmatmul.mubr.msk.f32.gmra.mrb[26].mxu1 %vm279_vm1, %v12432_v30 }
 0x33d   : > { %v4051_v36 = vsel %vm3987_vm3, %v10545_v6, %v4019_v33  ;;  %v10547_v43 = vadd.f32 %v10007_v35, %v12367_v5  ;;  %v3861_v44 = vpop.f32.mrb[17].mxu0 }
 0x33e   : > { %4084 = vst.msk [vmem:[#allocation3 + $0xc9] sm:$0xff] %vm279_vm1, %v4051_v36  ;;  %v4050_v45 = vsel %vm3986_vm4, %v10546_v41, %v4018_v34  ;;  %v10548_v46 = vadd.f32 %v12367_v5, %v3861_v44  ;;  %v12442_v47 = vld [vmem:[#allocation3 + $0x90] sm:$0xff]  ;;  %v12444_v48 = vld [vmem:[#allocation3 + $0x98] sm:$0xff] }
 0x33f   : > { %4083 = vst.msk [vmem:[#allocation3 + $0xc1] sm:$0xff] %vm279_vm1, %v4050_v45  ;;  %vm3989_vm5 = vcmp.gt.f32.partialorder %v10547_v43, 0.0  ;;  %v4021_v49 = vmul.f32 0.2, %v10547_v43  ;;  %10099 = vmatprep.mubr.msk.f32.mxu1 %vm279_vm1, %v12442_v47 }
 0x340   : > { %vm3988_vm6 = vcmp.gt.f32.partialorder %v10548_v46, 0.0  ;;  %v4020_v50 = vmul.f32 0.2, %v10548_v46  ;;  %v10010_v51 = vpop.f32.mrb[18].mxu0  ;;  %10100 = vmatmul.mubr.msk.f32.gmra.mrb[28].mxu1 %vm279_vm1, %v12444_v48 }
 0x341   : > { %v4053_v52 = vsel %vm3989_vm5, %v10547_v43, %v4021_v49  ;;  %v10549_v53 = vadd.f32 %v10010_v51, %v12367_v5  ;;  %v3871_v54 = vpop.f32.mrb[19].mxu0 }
 0x342   : > { %4086 = vst.msk [vmem:[#allocation3 + $0xe1] sm:$0xff] %vm279_vm1, %v4053_v52  ;;  %v4052_v55 = vsel %vm3988_vm6, %v10548_v46, %v4020_v50  ;;  %v10550_v56 = vadd.f32 %v12367_v5, %v3871_v54  ;;  %v12454_v57 = vld [vmem:[#allocation3 + $0xa8] sm:$0xff]  ;;  %v12456_v58 = vld [vmem:[#allocation3 + $0xb0] sm:$0xff] }
 0x343   : > { %4085 = vst.msk [vmem:[#allocation3 + $0xd9] sm:$0xff] %vm279_vm1, %v4052_v55  ;;  %vm3991_vm7 = vcmp.gt.f32.partialorder %v10549_v53, 0.0  ;;  %v4023_v61 = vmul.f32 0.2, %v10549_v53  ;;  %10102 = vmatprep.mubr.msk.f32.mxu1 %vm279_vm1, %v12454_v57  ;;  %v12512_v55 = vpop.f32.mrb[0].mxu1 }
 0x344   : > { %vm3990_vm8 = vcmp.gt.f32.partialorder %v10550_v56, 0.0  ;;  %v4022_v62 = vmul.f32 0.2, %v10550_v56  ;;  %v10013_v63 = vpop.f32.mrb[20].mxu0  ;;  %10103 = vmatmul.mubr.msk.f32.gmra.mrb[30].mxu1 %vm279_vm1, %v12456_v58  ;;  %13698 = vst [vmem:[#allocation14_spill] sm:$0xff] %v12512_v55 }
 0x345   : > { %v4055_v0 = vsel %vm3991_vm7, %v10549_v53, %v4023_v61  ;;  %v10551_v1 = vadd.f32 %v10013_v63, %v12367_v5  ;;  %v3881_v7 = vpop.f32.mrb[21].mxu0  ;;  %v12720_v55 = vld [vmem:[%s13474_s5 + $0x10] sm:$0xf] }
 0x346   : > { %4088 = vst.msk [vmem:[#allocation3 + $0xf9] sm:$0xff] %vm279_vm1, %v4055_v0  ;;  %v4054_v8 = vsel %vm3990_vm8, %v10550_v56, %v4022_v62  ;;  %v10552_v10 = vadd.f32 %v12367_v5, %v3881_v7  ;;  %v12466_v12 = vld [vmem:[#allocation3 + $0xc0] sm:$0xff]  ;;  %v12468_v13 = vld [vmem:[#allocation3 + $0xc8] sm:$0xff] }
 0x347   : > { %4087 = vst.msk [vmem:[#allocation3 + $0xf1] sm:$0xff] %vm279_vm1, %v4054_v8  ;;  %vm3993_vm9 = vcmp.gt.f32.partialorder %v10551_v1, 0.0  ;;  %v4025_v14 = vmul.f32 0.2, %v10551_v1  ;;  %10105 = vmatprep.mubr.msk.f32.mxu1 %vm279_vm1, %v12466_v12  ;;  %v12525_v8 = vpop.f32.mrb[1].mxu1 }
 0x348   : > { %vm3992_vm10 = vcmp.gt.f32.partialorder %v10552_v10, 0.0  ;;  %v4024_v15 = vmul.f32 0.2, %v10552_v10  ;;  %v10016_v16 = vpop.f32.mrb[22].mxu0  ;;  %10106 = vmatmul.mubr.msk.f32.gmra.mrb[32].mxu1 %vm279_vm1, %v12468_v13  ;;  %13699 = vst [vmem:[#allocation15_spill] sm:$0xff] %v12525_v8  ;;  %v5348_v8 = vld [vmem:[#allocation3 + $0xa] sm:$0xff] }
 0x349   : > { %v4057_v17 = vsel %vm3993_vm9, %v10551_v1, %v4025_v14  ;;  %v10553_v18 = vadd.f32 %v10016_v16, %v12367_v5  ;;  %v3891_v19 = vpop.f32.mrb[23].mxu0  ;;  %v12528_v16 = vpop.f32.mrb[2].mxu1 }
 0x34a   : > { %4090 = vst.msk [vmem:[#allocation3 + $0x111] sm:$0xff] %vm279_vm1, %v4057_v17  ;;  %v4056_v22 = vsel %vm3992_vm10, %v10552_v10, %v4024_v15  ;;  %v10554_v23 = vadd.f32 %v12367_v5, %v3891_v19  ;;  %v12478_v24 = vld [vmem:[#allocation3 + $0xd8] sm:$0xff]  ;;  %v12480_v25 = vld [vmem:[#allocation3 + $0xe0] sm:$0xff]  ;;  %13700 = vst [vmem:[#allocation29_spill] sm:$0xff] %v12528_v16 }
 0x34b   : > { %4089 = vst.msk [vmem:[#allocation3 + $0x109] sm:$0xff] %vm279_vm1, %v4056_v22  ;;  %vm3995_vm11 = vcmp.gt.f32.partialorder %v10553_v18, 0.0  ;;  %v4027_v26 = vmul.f32 0.2, %v10553_v18  ;;  %10108 = vmatprep.mubr.msk.f32.mxu1 %vm279_vm1, %v12478_v24 }
 0x34c   : > { %vm3994_vm12 = vcmp.gt.f32.partialorder %v10554_v23, 0.0  ;;  %v4026_v27 = vmul.f32 0.2, %v10554_v23  ;;  %v10019_v31 = vpop.f32.mrb[24].mxu0  ;;  %10109 = vmatmul.mubr.msk.f32.gmra.mrb[34].mxu1 %vm279_vm1, %v12480_v25 }
 0x34d   : > { %v4059_v32 = vsel %vm3995_vm11, %v10553_v18, %v4027_v26  ;;  %v10555_v42 = vadd.f32 %v10019_v31, %v12367_v5  ;;  %v3901_v40 = vpop.f32.mrb[25].mxu0  ;;  %v12541_v31 = vpop.f32.mrb[3].mxu1 }
 0x34e   : > { %4092 = vst.msk [vmem:[#allocation3 + $0x129] sm:$0xff] %vm279_vm1, %v4059_v32  ;;  %v4058_v28 = vsel %vm3994_vm12, %v10554_v23, %v4026_v27  ;;  %v10556_v29 = vadd.f32 %v12367_v5, %v3901_v40  ;;  %v12490_v6 = vld [vmem:[#allocation3 + $0xf0] sm:$0xff]  ;;  %v12492_v2 = vld [vmem:[#allocation3 + $0xf8] sm:$0xff]  ;;  %13701 = vst [vmem:[#allocation31_spill] sm:$0xff] %v12541_v31  ;;  %v12548_v40 = vpop.f32.mrb[4].mxu1 }
 0x34f   : > { %4091 = vst.msk [vmem:[#allocation3 + $0x121] sm:$0xff] %vm279_vm1, %v4058_v28  ;;  %vm3997_vm13 = vcmp.gt.f32.partialorder %v10555_v42, 0.0  ;;  %v4029_v4 = vmul.f32 0.2, %v10555_v42  ;;  %10111 = vmatprep.mubr.msk.f32.mxu1 %vm279_vm1, %v12490_v6  ;;  %13702 = vst [vmem:[#allocation33_spill] sm:$0xff] %v12548_v40  ;;  %v12555_v28 = vpop.f32.mrb[5].mxu1 }
 0x350   : > { %vm3996_vm14 = vcmp.gt.f32.partialorder %v10556_v29, 0.0  ;;  %v4028_v41 = vmul.f32 0.2, %v10556_v29  ;;  %v10022_v33 = vpop.f32.mrb[26].mxu0  ;;  %10112 = vmatmul.mubr.msk.f32.gmra.mrb[36].mxu1 %vm279_vm1, %v12492_v2  ;;  %13703 = vst [vmem:[#allocation34_spill] sm:$0xff] %v12555_v28  ;;  %v5347_v31 = vld [vmem:[#allocation3 + $0x2] sm:$0xff] }
 0x351   : > { %v4061_v34 = vsel %vm3997_vm13, %v10555_v42, %v4029_v4  ;;  %v10557_v35 = vadd.f32 %v10022_v33, %v12367_v5  ;;  %v3911_v36 = vpop.f32.mrb[27].mxu0  ;;  %v4957_v33 = vld [vmem:[#allocation3 + $0x1] sm:$0xff] }
 0x352   : > { %4094 = vst.msk [vmem:[#allocation3 + $0x141] sm:$0xff] %vm279_vm1, %v4061_v34  ;;  %v4060_v43 = vsel %vm3996_vm14, %v10556_v29, %v4028_v41  ;;  %v10558_v44 = vadd.f32 %v12367_v5, %v3911_v36  ;;  %v12502_v45 = vld [vmem:[#allocation3 + $0x108] sm:$0xff]  ;;  %v12504_v46 = vld [vmem:[#allocation3 + $0x110] sm:$0xff]  ;;  %v12557_v29 = vpop.f32.mrb[6].mxu1 }
 0x353   : > { %4093 = vst.msk [vmem:[#allocation3 + $0x139] sm:$0xff] %vm279_vm1, %v4060_v43  ;;  %vm3999_vm15 = vcmp.gt.f32.partialorder %v10557_v35, 0.0  ;;  %v4031_v49 = vmul.f32 0.2, %v10557_v35  ;;  %10114 = vmatprep.mubr.msk.f32.mxu1 %vm279_vm1, %v12502_v45  ;;  %13704 = vst [vmem:[#allocation36_spill] sm:$0xff] %v12557_v29  ;;  %v12567_v34 = vpop.f32.mrb[7].mxu1 }
 0x354   : > { %vm3998_vm2 = vcmp.gt.f32.partialorder %v10558_v44, 0.0  ;;  %v4030_v50 = vmul.f32 0.2, %v10558_v44  ;;  %v10025_v51 = vpop.f32.mrb[28].mxu0  ;;  %10115 = vmatmul.mubr.msk.f32.gmra.mrb[38].mxu1 %vm279_vm1, %v12504_v46  ;;  %13705 = vst [vmem:[#allocation38_spill] sm:$0xff] %v12567_v34  ;;  %v12570_v36 = vpop.f32.mrb[8].mxu1 }
 0x355   : > { %v4063_v52 = vsel %vm3999_vm15, %v10557_v35, %v4031_v49  ;;  %v10559_v53 = vadd.f32 %v10025_v51, %v12367_v5  ;;  %v3921_v54 = vpop.f32.mrb[29].mxu0  ;;  %v4958_v35 = vld [vmem:[#allocation3 + $0x9] sm:$0xff]  ;;  %13706 = vst [vmem:[#allocation4_spill] sm:$0xff] %v12570_v36  ;;  %v12575_v43 = vld [vmem:[%s13474_s5 + $0xc] sm:$0xf]  ;;  %v12584_v49 = vpop.f32.mrb[9].mxu1 }
 0x356   : > { %4096 = vst.msk [vmem:[#allocation3 + $0x159] sm:$0xff] %vm279_vm1, %v4063_v52  ;;  %v4062_v56 = vsel %vm3998_vm2, %v10558_v44, %v4030_v50  ;;  %v10560_v61 = vadd.f32 %v12367_v5, %v3921_v54  ;;  %v12516_v62 = vld [vmem:[#allocation3 + $0x120] sm:$0xff]  ;;  %v12518_v63 = vld [vmem:[#allocation3 + $0x128] sm:$0xff]  ;;  %13707 = vst [vmem:[#allocation5_spill] sm:$0xff] %v12584_v49  ;;  %v12588_v50 = vpop.f32.mrb[10].mxu1 }
 0x357   : > { %4095 = vst.msk [vmem:[#allocation3 + $0x151] sm:$0xff] %vm279_vm1, %v4062_v56  ;;  %vm4001_vm3 = vcmp.gt.f32.partialorder %v10559_v53, 0.0  ;;  %v4033_v0 = vmul.f32 0.2, %v10559_v53  ;;  %10117 = vmatprep.mubr.msk.f32.mxu1 %vm279_vm1, %v12516_v62  ;;  %v12578_v44 = vld [vmem:[#allocation3 + $0x19] sm:$0xff]  ;;  %13708 = vst [vmem:[#allocation6_spill] sm:$0xff] %v12588_v50 }
 0x358   : > { %vm4000_vm4 = vcmp.gt.f32.partialorder %v10560_v61, 0.0  ;;  %v4032_v1 = vmul.f32 0.2, %v10560_v61  ;;  %v10028_v7 = vpop.f32.mrb[30].mxu0  ;;  %10118 = vmatmul.mubr.msk.f32.gmra.mrb[40].mxu1 %vm279_vm1, %v12518_v63  ;;  %v12590_v51 = vld [vmem:[#allocation3 + $0x21] sm:$0xff]  ;;  %v12594_v52 = vld [vmem:[#allocation3 + $0x31] sm:$0xff] }
 0x359   : > { %v4065_v10 = vsel %vm4001_vm3, %v10559_v53, %v4033_v0  ;;  %v10561_v14 = vadd.f32 %v10028_v7, %v12367_v5  ;;  %v3931_v15 = vpop.f32.mrb[31].mxu0  ;;  %v12596_v53 = vpop.f32.mrb[11].mxu1  ;;  %v12604_v54 = vld [vmem:[#allocation3 + $0x49] sm:$0xff]  ;;  %v12612_v0 = vld [vmem:[#allocation3 + $0x51] sm:$0xff]  ;;  %v12684_v50 = vld [vmem:[#allocation3 + $0x121] sm:$0xff] }
 0x35a   : > { %4098 = vst.msk [vmem:[#allocation3 + $0x171] sm:$0xff] %vm279_vm1, %v4065_v10  ;;  %v4064_v17 = vsel %vm4000_vm4, %v10560_v61, %v4032_v1  ;;  %v10562_v18 = vadd.f32 %v12367_v5, %v3931_v15  ;;  %v12532_v19 = vld [vmem:[#allocation3 + $0x138] sm:$0xff]  ;;  %v12534_v22 = vld [vmem:[#allocation3 + $0x140] sm:$0xff]  ;;  %13709 = vst [vmem:[#allocation7_spill] sm:$0xff] %v12596_v53  ;;  %v12606_v56 = vpop.f32.mrb[12].mxu1 }
 0x35b   : > { %4097 = vst.msk [vmem:[#allocation3 + $0x169] sm:$0xff] %vm279_vm1, %v4064_v17  ;;  %vm4003_vm5 = vcmp.gt.f32.partialorder %v10561_v14, 0.0  ;;  %v4035_v23 = vmul.f32 0.2, %v10561_v14  ;;  %10120 = vmatprep.mubr.msk.f32.mxu1 %vm279_vm1, %v12532_v19  ;;  %13710 = vst [vmem:[#allocation8_spill] sm:$0xff] %v12606_v56  ;;  %v12610_v61 = vpop.f32.mrb[13].mxu1 }
 0x35c   : > { %vm4002_vm6 = vcmp.gt.f32.partialorder %v10562_v18, 0.0  ;;  %v4034_v26 = vmul.f32 0.2, %v10562_v18  ;;  %10121 = vmatmul.mubr.msk.f32.gmra.mrb[42].mxu1 %vm279_vm1, %v12534_v22  ;;  %13711 = vst [vmem:[#allocation11_spill] sm:$0xff] %v12610_v61  ;;  %v12616_v1 = vld [vmem:[#allocation3 + $0x61] sm:$0xff]  ;;  %v12618_v7 = vpop.f32.mrb[14].mxu1 }
 0x35d   : > { %v4067_v27 = vsel %vm4003_vm5, %v10561_v14, %v4035_v23  ;;  %13712 = vst [vmem:[#allocation12_spill] sm:$0xff] %v12618_v7  ;;  %v12622_v10 = vpop.f32.mrb[15].mxu1  ;;  %v12624_v14 = vld [vmem:[#allocation3 + $0x69] sm:$0xff]  ;;  %v12628_v15 = vld [vmem:[#allocation3 + $0x79] sm:$0xff]  ;;  %v12632_v17 = vld [vmem:[#allocation3 + $0x81] sm:$0xff] }
 0x35e   : > { %4100 = vst.msk [vmem:[#allocation3 + $0x189] sm:$0xff] %vm279_vm1, %v4067_v27  ;;  %v4066_v5 = vsel %vm4002_vm6, %v10562_v18, %v4034_v26  ;;  %v12544_v32 = vld [vmem:[#allocation3 + $0x150] sm:$0xff]  ;;  %v12546_v42 = vld [vmem:[#allocation3 + $0x158] sm:$0xff]  ;;  %13713 = vst [vmem:[#allocation13_spill] sm:$0xff] %v12622_v10 }
 0x35f   : > { %4099 = vst.msk [vmem:[#allocation3 + $0x181] sm:$0xff] %vm279_vm1, %v4066_v5  ;;  %10123 = vmatprep.mubr.msk.f32.mxu1 %vm279_vm1, %v12544_v32  ;;  %v12636_v18 = vld [vmem:[#allocation3 + $0x91] sm:$0xff]  ;;  %v12640_v23 = vld [vmem:[#allocation3 + $0x99] sm:$0xff]  ;;  %v12644_v26 = vld [vmem:[#allocation3 + $0xa9] sm:$0xff] }
 0x360   : > { %10124 = vmatmul.mubr.msk.f32.gmra.mrb[44].mxu1 %vm279_vm1, %v12546_v42  ;;  %v12648_v27 = vld [vmem:[#allocation3 + $0xb1] sm:$0xff]  ;;  %v12652_v5 = vld [vmem:[#allocation3 + $0xc1] sm:$0xff]  ;;  %v12672_v61 = vld [vmem:[#allocation3 + $0xf9] sm:$0xff] }
 0x361   : > { %v12664_v10 = vld [vmem:[#allocation3 + $0xe1] sm:$0xff]  ;;  %v12668_v7 = vld [vmem:[#allocation3 + $0xf1] sm:$0xff]  ;;  %v12676_v56 = vld [vmem:[#allocation3 + $0x109] sm:$0xff] }
 0x362   : > { %v12559_v4 = vld [vmem:[#allocation3 + $0x168] sm:$0xff]  ;;  %v12561_v41 = vld [vmem:[#allocation3 + $0x170] sm:$0xff]  ;;  %v12692_v36 = vld [vmem:[#allocation3 + $0x139] sm:$0xff] }
 0x363   : > { %10126 = vmatprep.mubr.msk.f32.mxu1 %vm279_vm1, %v12559_v4  ;;  %v12680_v53 = vld [vmem:[#allocation3 + $0x111] sm:$0xff]  ;;  %v12688_v49 = vld [vmem:[#allocation3 + $0x129] sm:$0xff]  ;;  %v12696_v34 = vld [vmem:[#allocation3 + $0x141] sm:$0xff] }
 0x364   : > { %10127 = vmatmul.mubr.msk.f32.gmra.mrb[46].mxu1 %vm279_vm1, %v12561_v41  ;;  %v12700_v29 = vld [vmem:[#allocation3 + $0x151] sm:$0xff]  ;;  %v12704_v28 = vld [vmem:[#allocation3 + $0x159] sm:$0xff]  ;;  %v12708_v40 = vld [vmem:[#allocation3 + $0x169] sm:$0xff] }
 0x365   : > { %10131 = vmatprep.mubr.msk.f32.mxu1 %vm279_vm1, %v4957_v33  ;;  %v12656_v33 = vld [vmem:[#allocation3 + $0xc9] sm:$0xff]  ;;  %13714 = vst [vmem:[#allocation40_spill] sm:$0xff] %v12704_v28  ;;  %v12712_v16 = vld [vmem:[#allocation3 + $0x171] sm:$0xff] }
 0x366   : > { %13715 = vst [vmem:[#allocation41_spill] sm:$0xff] %v12712_v16 }
 0x368   : > { %10132 = vmatmul.mubr.msk.f32.vlgmr.msra.gmra.mrb[16].mxu1 %vm279_vm1, %v4958_v35  ;;  %v12660_v35 = vld [vmem:[#allocation3 + $0xd9] sm:$0xff] }
 0x369   : > { %10180 = vmatpush3.msk.msra.mxu1 %vm590_vm0, %v12360_v3  ;;  %10134 = vmatprep.mubr.msk.f32.mxu1 %vm279_vm1, %v12578_v44  ;;  %v12600_v3 = vld [vmem:[#allocation3 + $0x39] sm:$0xff] }
 0x36a   : > { %10229 = vmatprep.subr.msk.mxu1 %vm590_vm0, %v12575_v43 }
 0x36c   : > { %10135 = vmatmul.mubr.msk.f32.gmra.mrb[18].mxu1 %vm279_vm1, %v12590_v51 }
 0x36d   : > { %10137 = vmatprep.mubr.msk.f32.mxu1 %vm279_vm1, %v12594_v52 }
 0x370   : > { %10138 = vmatmul.mubr.msk.f32.gmra.mrb[20].mxu1 %vm279_vm1, %v12600_v3 }
 0x371   : > { %10140 = vmatprep.mubr.msk.f32.mxu1 %vm279_vm1, %v12604_v54 }
 0x374   : > { %10141 = vmatmul.mubr.msk.f32.gmra.mrb[22].mxu1 %vm279_vm1, %v12612_v0 }
 0x375   : > { %10143 = vmatprep.mubr.msk.f32.mxu1 %vm279_vm1, %v12616_v1 }
 0x378   : > { %10144 = vmatmul.mubr.msk.f32.gmra.mrb[24].mxu1 %vm279_vm1, %v12624_v14 }
 0x379   : > { %10146 = vmatprep.mubr.msk.f32.mxu1 %vm279_vm1, %v12628_v15 }
 0x37c   : > { %10147 = vmatmul.mubr.msk.f32.gmra.mrb[26].mxu1 %vm279_vm1, %v12632_v17 }
 0x37d   : > { %10149 = vmatprep.mubr.msk.f32.mxu1 %vm279_vm1, %v12636_v18 }
 0x380   : > { %10150 = vmatmul.mubr.msk.f32.gmra.mrb[28].mxu1 %vm279_vm1, %v12640_v23 }
 0x381   : > { %10152 = vmatprep.mubr.msk.f32.mxu1 %vm279_vm1, %v12644_v26 }
 0x384   : > { %10153 = vmatmul.mubr.msk.f32.gmra.mrb[30].mxu1 %vm279_vm1, %v12648_v27 }
 0x385   : > { %10155 = vmatprep.mubr.msk.f32.mxu1 %vm279_vm1, %v12652_v5 }
 0x388   : > { %10156 = vmatmul.mubr.msk.f32.gmra.mrb[32].mxu1 %vm279_vm1, %v12656_v33 }
 0x389   : > { %10158 = vmatprep.mubr.msk.f32.mxu1 %vm279_vm1, %v12660_v35 }
 0x38c   : > { %10159 = vmatmul.mubr.msk.f32.gmra.mrb[34].mxu1 %vm279_vm1, %v12664_v10 }
 0x38d   : > { %10161 = vmatprep.mubr.msk.f32.mxu1 %vm279_vm1, %v12668_v7 }
 0x390   : > { %10162 = vmatmul.mubr.msk.f32.gmra.mrb[36].mxu1 %vm279_vm1, %v12672_v61 }
 0x391   : > { %10164 = vmatprep.mubr.msk.f32.mxu1 %vm279_vm1, %v12676_v56 }
 0x394   : > { %10165 = vmatmul.mubr.msk.f32.gmra.mrb[38].mxu1 %vm279_vm1, %v12680_v53 }
 0x395   : > { %10167 = vmatprep.mubr.msk.f32.mxu1 %vm279_vm1, %v12684_v50 }
 0x398   : > { %10168 = vmatmul.mubr.msk.f32.gmra.mrb[40].mxu1 %vm279_vm1, %v12688_v49 }
 0x399   : > { %10170 = vmatprep.mubr.msk.f32.mxu1 %vm279_vm1, %v12692_v36 }
 0x39c   : > { %10171 = vmatmul.mubr.msk.f32.gmra.mrb[42].mxu1 %vm279_vm1, %v12696_v34 }
 0x39d   : > { %10173 = vmatprep.mubr.msk.f32.mxu1 %vm279_vm1, %v12700_v29 }
 0x3a0   : > { %10174 = vmatmul.mubr.msk.f32.gmra.mrb[44].mxu1 %vm279_vm1, %v12704_v28  ;;  %v12723_v28 = vld [vmem:[#allocation3 + $0x1a] sm:$0xff] }
 0x3a1   : > { %10176 = vmatprep.mubr.msk.f32.mxu1 %vm279_vm1, %v12708_v40  ;;  %13716 = vst [vmem:[#allocation16_spill] sm:$0xff] %v12723_v28 }
 0x3a4   : > { %10177 = vmatmul.mubr.msk.f32.gmra.mrb[46].mxu1 %vm279_vm1, %v12712_v16  ;;  %v12735_v16 = vld [vmem:[#allocation3 + $0x32] sm:$0xff] }
 0x3a5   : > { %10181 = vmatprep.mubr.msk.f32.mxu1 %vm279_vm1, %v5347_v31  ;;  %v12731_v31 = vld [vmem:[#allocation3 + $0x22] sm:$0xff]  ;;  %13718 = vst [vmem:[#allocation18_spill] sm:$0xff] %v12735_v16 }
 0x3a6   : > { %13717 = vst [vmem:[#allocation17_spill] sm:$0xff] %v12731_v31 }
 0x3a8   : > { %10182 = vmatmul.mubr.msk.f32.vlgmr.msra.gmra.mrb[16].mxu1 %vm279_vm1, %v5348_v8  ;;  %v12739_v8 = vld [vmem:[#allocation3 + $0x3a] sm:$0xff] }
 0x3a9   : > { %10230 = vmatpush3.msk.msra.mxu1 %vm590_vm0, %v12575_v43  ;;  %10184 = vmatprep.mubr.msk.f32.mxu1 %vm279_vm1, %v12723_v28  ;;  %13719 = vst [vmem:[#allocation19_spill] sm:$0xff] %v12739_v8  ;;  %v12743_v43 = vld [vmem:[#allocation3 + $0x4a] sm:$0xff]  ;;  %v12747_v28 = vld [vmem:[#allocation3 + $0x52] sm:$0xff] }
 0x3aa   : > { %10279 = vmatprep.subr.msk.mxu1 %vm590_vm0, %v12720_v55  ;;  %13720 = vst [vmem:[#allocation20_spill] sm:$0xff] %v12743_v43  ;;  %13721 = vst [vmem:[#allocation21_spill] sm:$0xff] %v12747_v28 }
 0x3ac   : > { %10185 = vmatmul.mubr.msk.f32.gmra.mrb[18].mxu1 %vm279_vm1, %v12731_v31  ;;  %v12751_v31 = vld [vmem:[#allocation3 + $0x62] sm:$0xff] }
 0x3ad   : > { %10187 = vmatprep.mubr.msk.f32.mxu1 %vm279_vm1, %v12735_v16  ;;  %13722 = vst [vmem:[#allocation22_spill] sm:$0xff] %v12751_v31  ;;  %v12755_v16 = vld [vmem:[#allocation3 + $0x6a] sm:$0xff] }
 0x3ae   : > { %13723 = vst [vmem:[#allocation23_spill] sm:$0xff] %v12755_v16 }
 0x3b0   : > { %10188 = vmatmul.mubr.msk.f32.gmra.mrb[20].mxu1 %vm279_vm1, %v12739_v8  ;;  %v12759_v8 = vld [vmem:[#allocation3 + $0x7a] sm:$0xff] }
 0x3b1   : > { %10190 = vmatprep.mubr.msk.f32.mxu1 %vm279_vm1, %v12743_v43  ;;  %13724 = vst [vmem:[#allocation24_spill] sm:$0xff] %v12759_v8  ;;  %v12763_v43 = vld [vmem:[#allocation3 + $0x82] sm:$0xff] }
 0x3b2   : > { %13725 = vst [vmem:[#allocation25_spill] sm:$0xff] %v12763_v43 }
 0x3b4   : > { %10191 = vmatmul.mubr.msk.f32.gmra.mrb[22].mxu1 %vm279_vm1, %v12747_v28  ;;  %v12767_v28 = vld [vmem:[#allocation3 + $0x92] sm:$0xff] }
 0x3b5   : > { %10193 = vmatprep.mubr.msk.f32.mxu1 %vm279_vm1, %v12751_v31  ;;  %13726 = vst [vmem:[#allocation26_spill] sm:$0xff] %v12767_v28  ;;  %v12771_v31 = vld [vmem:[#allocation3 + $0x9a] sm:$0xff] }
 0x3b6   : > { %13727 = vst [vmem:[#allocation27_spill] sm:$0xff] %v12771_v31 }
 0x3b8   : > { %10194 = vmatmul.mubr.msk.f32.gmra.mrb[24].mxu1 %vm279_vm1, %v12755_v16  ;;  %v12775_v16 = vld [vmem:[#allocation3 + $0xaa] sm:$0xff] }
 0x3b9   : > { %10196 = vmatprep.mubr.msk.f32.mxu1 %vm279_vm1, %v12759_v8  ;;  %13728 = vst [vmem:[#allocation28_spill] sm:$0xff] %v12775_v16  ;;  %v12779_v8 = vld [vmem:[#allocation3 + $0xb2] sm:$0xff] }
 0x3ba   : > { %13729 = vst [vmem:[#allocation30_spill] sm:$0xff] %v12779_v8 }
 0x3bc   : > { %10197 = vmatmul.mubr.msk.f32.gmra.mrb[26].mxu1 %vm279_vm1, %v12763_v43  ;;  %v12783_v43 = vld [vmem:[#allocation3 + $0xc2] sm:$0xff] }
 0x3bd   : > { %10199 = vmatprep.mubr.msk.f32.mxu1 %vm279_vm1, %v12767_v28  ;;  %13730 = vst [vmem:[#allocation32_spill] sm:$0xff] %v12783_v43  ;;  %v12787_v28 = vld [vmem:[#allocation3 + $0xca] sm:$0xff] }
 0x3be   : > { %13731 = vst [vmem:[#allocation35_spill] sm:$0xff] %v12787_v28 }
 0x3c0   : > { %10200 = vmatmul.mubr.msk.f32.gmra.mrb[28].mxu1 %vm279_vm1, %v12771_v31  ;;  %v12791_v31 = vld [vmem:[#allocation3 + $0xda] sm:$0xff] }
 0x3c1   : > { %10202 = vmatprep.mubr.msk.f32.mxu1 %vm279_vm1, %v12775_v16  ;;  %13732 = vst [vmem:[#allocation37_spill] sm:$0xff] %v12791_v31  ;;  %v12795_v16 = vld [vmem:[#allocation3 + $0xe2] sm:$0xff] }
 0x3c2   : > { %13733 = vst [vmem:[#allocation39_spill] sm:$0xff] %v12795_v16 }
 0x3c4   : > { %10203 = vmatmul.mubr.msk.f32.gmra.mrb[30].mxu1 %vm279_vm1, %v12779_v8  ;;  %v12799_v8 = vld [vmem:[#allocation3 + $0xf2] sm:$0xff] }
 0x3c5   : > { %10205 = vmatprep.mubr.msk.f32.mxu1 %vm279_vm1, %v12783_v43  ;;  %13734 = vst [vmem:[#allocation9_spill] sm:$0xff] %v12799_v8  ;;  %v12803_v43 = vld [vmem:[#allocation3 + $0xfa] sm:$0xff] }
 0x3c6   : > { %13735 = vst [vmem:[#allocation10_spill] sm:$0xff] %v12803_v43 }
 0x3c8   : > { %10206 = vmatmul.mubr.msk.f32.gmra.mrb[32].mxu1 %vm279_vm1, %v12787_v28  ;;  %v12807_v28 = vld [vmem:[#allocation3 + $0x10a] sm:$0xff] }
 0x3c9   : > { %10208 = vmatprep.mubr.msk.f32.mxu1 %vm279_vm1, %v12791_v31  ;;  %13736 = vst [vmem:[#allocation42_spill] sm:$0xff] %v12807_v28  ;;  %v12811_v31 = vld [vmem:[#allocation3 + $0x112] sm:$0xff] }
 0x3ca   : > { %13737 = vst [vmem:[#allocation43_spill] sm:$0xff] %v12811_v31 }
 0x3cc   : > { %10209 = vmatmul.mubr.msk.f32.gmra.mrb[34].mxu1 %vm279_vm1, %v12795_v16  ;;  %v12815_v16 = vld [vmem:[#allocation3 + $0x122] sm:$0xff] }
 0x3cd   : > { %10211 = vmatprep.mubr.msk.f32.mxu1 %vm279_vm1, %v12799_v8  ;;  %13738 = vst [vmem:[#allocation44_spill] sm:$0xff] %v12815_v16  ;;  %v12819_v8 = vld [vmem:[#allocation3 + $0x12a] sm:$0xff] }
 0x3ce   : > { %13739 = vst [vmem:[#allocation45_spill] sm:$0xff] %v12819_v8 }
 0x3d0   : > { %10212 = vmatmul.mubr.msk.f32.gmra.mrb[36].mxu1 %vm279_vm1, %v12803_v43  ;;  %v12823_v43 = vld [vmem:[#allocation3 + $0x13a] sm:$0xff] }
 0x3d1   : > { %10214 = vmatprep.mubr.msk.f32.mxu1 %vm279_vm1, %v12807_v28  ;;  %13740 = vst [vmem:[#allocation46_spill] sm:$0xff] %v12823_v43  ;;  %v12827_v28 = vld [vmem:[#allocation3 + $0x142] sm:$0xff] }
 0x3d2   : > { %13741 = vst [vmem:[#allocation47_spill] sm:$0xff] %v12827_v28 }
 0x3d4   : > { %10215 = vmatmul.mubr.msk.f32.gmra.mrb[38].mxu1 %vm279_vm1, %v12811_v31  ;;  %v12831_v31 = vld [vmem:[#allocation3 + $0x152] sm:$0xff] }
 0x3d5   : > { %10217 = vmatprep.mubr.msk.f32.mxu1 %vm279_vm1, %v12815_v16  ;;  %13742 = vst [vmem:[#allocation48_spill] sm:$0xff] %v12831_v31  ;;  %v12835_v16 = vld [vmem:[#allocation3 + $0x15a] sm:$0xff] }
 0x3d6   : > { %13743 = vst [vmem:[#allocation49_spill] sm:$0xff] %v12835_v16 }
 0x3d8   : > { %10218 = vmatmul.mubr.msk.f32.gmra.mrb[40].mxu1 %vm279_vm1, %v12819_v8  ;;  %v12839_v8 = vld [vmem:[#allocation3 + $0x16a] sm:$0xff] }
 0x3d9   : > { %10220 = vmatprep.mubr.msk.f32.mxu1 %vm279_vm1, %v12823_v43  ;;  %13744 = vst [vmem:[#allocation50_spill] sm:$0xff] %v12839_v8  ;;  %v12843_v43 = vld [vmem:[#allocation3 + $0x172] sm:$0xff] }
 0x3da   : > { %13745 = vst [vmem:[#allocation51_spill] sm:$0xff] %v12843_v43 }
 0x3dc   : > { %10221 = vmatmul.mubr.msk.f32.gmra.mrb[42].mxu1 %vm279_vm1, %v12827_v28 }
 0x3dd   : > { %10223 = vmatprep.mubr.msk.f32.mxu1 %vm279_vm1, %v12831_v31  ;;  %v8812_v31 = vld [vmem:[%s13474_s5 + $0x14] sm:$0xf] }
 0x3e0   : > { %10224 = vmatmul.mubr.msk.f32.gmra.mrb[44].mxu1 %vm279_vm1, %v12835_v16 }
 0x3e1   : > { %10226 = vmatprep.mubr.msk.f32.mxu1 %vm279_vm1, %v12839_v8 }
 0x3e4   : > { %10227 = vmatmul.mubr.msk.f32.gmra.mrb[46].mxu1 %vm279_vm1, %v12843_v43 }
 0x3e5   : > { %10231 = vmatprep.mubr.msk.f32.mxu1 %vm279_vm1, %v12382_v59  ;;  %v12913_v59 = vld [vmem:[#allocation3 + $0x180] sm:$0xff] }
 0x3e8   : > { %10232 = vmatmul.mubr.msk.f32.vlgmr.msra.gmra.mrb[16].mxu1 %vm279_vm1, %v12384_v60  ;;  %v12917_v60 = vld [vmem:[#allocation3 + $0x188] sm:$0xff] }
 0x3e9   : > { %10280 = vmatpush3.msk.msra.mxu1 %vm590_vm0, %v12720_v55  ;;  %10234 = vmatprep.mubr.msk.f32.mxu1 %vm279_vm1, %v12394_v9  ;;  %v8846_v9 = vld [vmem:[%s13474_s5 + $0x18] sm:$0xf]  ;;  %v13758_v55 = vld [vmem:[#allocation26_spill] sm:$0xff] }
 0x3ea   : > { %10329 = vmatprep.subr.msk.mxu1 %vm590_vm0, %v8812_v31 }
 0x3ec   : > { %10235 = vmatmul.mubr.msk.f32.gmra.mrb[18].mxu1 %vm279_vm1, %v12396_v11  ;;  %v13746_v11 = vld [vmem:[#allocation40_spill] sm:$0xff] }
 0x3ed   : > { %10237 = vmatprep.mubr.msk.f32.mxu1 %vm279_vm1, %v12406_v20  ;;  %v13747_v20 = vld [vmem:[#allocation41_spill] sm:$0xff] }
 0x3f0   : > { %10238 = vmatmul.mubr.msk.f32.gmra.mrb[20].mxu1 %vm279_vm1, %v12408_v21  ;;  %v12986_v21 = vld [vmem:[#allocation3 + $0x181] sm:$0xff] }
 0x3f1   : > { %10240 = vmatprep.mubr.msk.f32.mxu1 %vm279_vm1, %v12418_v37  ;;  %v12990_v37 = vld [vmem:[#allocation3 + $0x189] sm:$0xff] }
 0x3f4   : > { %10241 = vmatmul.mubr.msk.f32.gmra.mrb[22].mxu1 %vm279_vm1, %v12420_v39  ;;  %v13748_v39 = vld [vmem:[#allocation16_spill] sm:$0xff] }
 0x3f5   : > { %10243 = vmatprep.mubr.msk.f32.mxu1 %vm279_vm1, %v12430_v38  ;;  %v8880_v38 = vld [vmem:[%s13474_s5 + $0x1c] sm:$0xf] }
 0x3f8   : > { %10244 = vmatmul.mubr.msk.f32.gmra.mrb[24].mxu1 %vm279_vm1, %v12432_v30  ;;  %v13749_v30 = vld [vmem:[#allocation17_spill] sm:$0xff] }
 0x3f9   : > { %10246 = vmatprep.mubr.msk.f32.mxu1 %vm279_vm1, %v12442_v47  ;;  %v13750_v47 = vld [vmem:[#allocation18_spill] sm:$0xff] }
 0x3fc   : > { %10247 = vmatmul.mubr.msk.f32.gmra.mrb[26].mxu1 %vm279_vm1, %v12444_v48  ;;  %v13751_v48 = vld [vmem:[#allocation19_spill] sm:$0xff] }
 0x3fd   : > { %10249 = vmatprep.mubr.msk.f32.mxu1 %vm279_vm1, %v12454_v57  ;;  %v13752_v57 = vld [vmem:[#allocation20_spill] sm:$0xff] }
 0x400   : > { %10250 = vmatmul.mubr.msk.f32.gmra.mrb[28].mxu1 %vm279_vm1, %v12456_v58  ;;  %v13753_v58 = vld [vmem:[#allocation21_spill] sm:$0xff] }
 0x401   : > { %10252 = vmatprep.mubr.msk.f32.mxu1 %vm279_vm1, %v12466_v12  ;;  %v13754_v12 = vld [vmem:[#allocation22_spill] sm:$0xff] }
 0x404   : > { %10253 = vmatmul.mubr.msk.f32.gmra.mrb[30].mxu1 %vm279_vm1, %v12468_v13  ;;  %v13755_v13 = vld [vmem:[#allocation23_spill] sm:$0xff] }
 0x405   : > { %10255 = vmatprep.mubr.msk.f32.mxu1 %vm279_vm1, %v12478_v24  ;;  %v13756_v24 = vld [vmem:[#allocation24_spill] sm:$0xff] }
 0x408   : > { %10256 = vmatmul.mubr.msk.f32.gmra.mrb[32].mxu1 %vm279_vm1, %v12480_v25  ;;  %v13757_v25 = vld [vmem:[#allocation25_spill] sm:$0xff] }
 0x409   : > { %10258 = vmatprep.mubr.msk.f32.mxu1 %vm279_vm1, %v12490_v6 }
 0x40c   : > { %10259 = vmatmul.mubr.msk.f32.gmra.mrb[34].mxu1 %vm279_vm1, %v12492_v2 }
 0x40d   : > { %10261 = vmatprep.mubr.msk.f32.mxu1 %vm279_vm1, %v12502_v45 }
 0x410   : > { %10262 = vmatmul.mubr.msk.f32.gmra.mrb[36].mxu1 %vm279_vm1, %v12504_v46 }
 0x411   : > { %10264 = vmatprep.mubr.msk.f32.mxu1 %vm279_vm1, %v12516_v62 }
 0x414   : > { %10265 = vmatmul.mubr.msk.f32.gmra.mrb[38].mxu1 %vm279_vm1, %v12518_v63 }
 0x415   : > { %10267 = vmatprep.mubr.msk.f32.mxu1 %vm279_vm1, %v12532_v19 }
 0x418   : > { %10268 = vmatmul.mubr.msk.f32.gmra.mrb[40].mxu1 %vm279_vm1, %v12534_v22 }
 0x419   : > { %10270 = vmatprep.mubr.msk.f32.mxu1 %vm279_vm1, %v12544_v32 }
 0x41c   : > { %10271 = vmatmul.mubr.msk.f32.gmra.mrb[42].mxu1 %vm279_vm1, %v12546_v42 }
 0x41d   : > { %10273 = vmatprep.mubr.msk.f32.mxu1 %vm279_vm1, %v12559_v4 }
 0x420   : > { %10274 = vmatmul.mubr.msk.f32.gmra.mrb[44].mxu1 %vm279_vm1, %v12561_v41 }
 0x421   : > { %10276 = vmatprep.mubr.msk.f32.mxu1 %vm279_vm1, %v12913_v59 }
 0x424   : > { %10277 = vmatmul.mubr.msk.f32.gmra.mrb[46].mxu1 %vm279_vm1, %v12917_v60 }
 0x425   : > { %10281 = vmatprep.mubr.msk.f32.mxu1 %vm279_vm1, %v12578_v44  ;;  %v13759_v44 = vld [vmem:[#allocation27_spill] sm:$0xff] }
 0x428   : > { %10282 = vmatmul.mubr.msk.f32.vlgmr.msra.gmra.mrb[16].mxu1 %vm279_vm1, %v12590_v51  ;;  %v13760_v51 = vld [vmem:[#allocation28_spill] sm:$0xff] }
 0x429   : > { %10330 = vmatpush3.msk.msra.mxu1 %vm590_vm0, %v8812_v31  ;;  %10284 = vmatprep.mubr.msk.f32.mxu1 %vm279_vm1, %v12594_v52  ;;  %v13761_v31 = vld [vmem:[#allocation30_spill] sm:$0xff] }
 0x42a   : > { %10379 = vmatprep.subr.msk.mxu1 %vm590_vm0, %v8846_v9 }
 0x42c   : > { %10285 = vmatmul.mubr.msk.f32.gmra.mrb[18].mxu1 %vm279_vm1, %v12600_v3 }
 0x42d   : > { %10287 = vmatprep.mubr.msk.f32.mxu1 %vm279_vm1, %v12604_v54 }
 0x430   : > { %10288 = vmatmul.mubr.msk.f32.gmra.mrb[20].mxu1 %vm279_vm1, %v12612_v0 }
 0x431   : > { %10290 = vmatprep.mubr.msk.f32.mxu1 %vm279_vm1, %v12616_v1 }
 0x434   : > { %10291 = vmatmul.mubr.msk.f32.gmra.mrb[22].mxu1 %vm279_vm1, %v12624_v14 }
 0x435   : > { %10293 = vmatprep.mubr.msk.f32.mxu1 %vm279_vm1, %v12628_v15 }
 0x438   : > { %10294 = vmatmul.mubr.msk.f32.gmra.mrb[24].mxu1 %vm279_vm1, %v12632_v17 }
 0x439   : > { %10296 = vmatprep.mubr.msk.f32.mxu1 %vm279_vm1, %v12636_v18 }
 0x43c   : > { %10297 = vmatmul.mubr.msk.f32.gmra.mrb[26].mxu1 %vm279_vm1, %v12640_v23 }
 0x43d   : > { %10299 = vmatprep.mubr.msk.f32.mxu1 %vm279_vm1, %v12644_v26 }
 0x440   : > { %10300 = vmatmul.mubr.msk.f32.gmra.mrb[28].mxu1 %vm279_vm1, %v12648_v27 }
 0x441   : > { %10302 = vmatprep.mubr.msk.f32.mxu1 %vm279_vm1, %v12652_v5 }
 0x444   : > { %10303 = vmatmul.mubr.msk.f32.gmra.mrb[30].mxu1 %vm279_vm1, %v12656_v33 }
 0x445   : > { %10305 = vmatprep.mubr.msk.f32.mxu1 %vm279_vm1, %v12660_v35 }
 0x448   : > { %10306 = vmatmul.mubr.msk.f32.gmra.mrb[32].mxu1 %vm279_vm1, %v12664_v10 }
 0x449   : > { %10308 = vmatprep.mubr.msk.f32.mxu1 %vm279_vm1, %v12668_v7 }
 0x44c   : > { %10309 = vmatmul.mubr.msk.f32.gmra.mrb[34].mxu1 %vm279_vm1, %v12672_v61 }
 0x44d   : > { %10311 = vmatprep.mubr.msk.f32.mxu1 %vm279_vm1, %v12676_v56 }
 0x450   : > { %10312 = vmatmul.mubr.msk.f32.gmra.mrb[36].mxu1 %vm279_vm1, %v12680_v53 }
 0x451   : > { %10314 = vmatprep.mubr.msk.f32.mxu1 %vm279_vm1, %v12684_v50 }
 0x454   : > { %10315 = vmatmul.mubr.msk.f32.gmra.mrb[38].mxu1 %vm279_vm1, %v12688_v49 }
 0x455   : > { %10317 = vmatprep.mubr.msk.f32.mxu1 %vm279_vm1, %v12692_v36 }
 0x458   : > { %10318 = vmatmul.mubr.msk.f32.gmra.mrb[40].mxu1 %vm279_vm1, %v12696_v34 }
 0x459   : > { %10320 = vmatprep.mubr.msk.f32.mxu1 %vm279_vm1, %v12700_v29 }
 0x45c   : > { %10321 = vmatmul.mubr.msk.f32.gmra.mrb[42].mxu1 %vm279_vm1, %v13746_v11 }
 0x45d   : > { %10323 = vmatprep.mubr.msk.f32.mxu1 %vm279_vm1, %v12708_v40 }
 0x460   : > { %10324 = vmatmul.mubr.msk.f32.gmra.mrb[44].mxu1 %vm279_vm1, %v13747_v20 }
 0x461   : > { %10326 = vmatprep.mubr.msk.f32.mxu1 %vm279_vm1, %v12986_v21 }
 0x464   : > { %10327 = vmatmul.mubr.msk.f32.gmra.mrb[46].mxu1 %vm279_vm1, %v12990_v37 }
 0x465   : > { %10331 = vmatprep.mubr.msk.f32.mxu1 %vm279_vm1, %v13748_v39  ;;  %v13763_v39 = vld [vmem:[#allocation35_spill] sm:$0xff] }
 0x468   : > { %10332 = vmatmul.mubr.msk.f32.vlgmr.msra.gmra.mrb[16].mxu1 %vm279_vm1, %v13749_v30  ;;  %v13764_v30 = vld [vmem:[#allocation37_spill] sm:$0xff] }
 0x469   : > { %10380 = vmatpush3.msk.msra.mxu1 %vm590_vm0, %v8846_v9  ;;  %10334 = vmatprep.mubr.msk.f32.mxu1 %vm279_vm1, %v13750_v47  ;;  %v13762_v9 = vld [vmem:[#allocation32_spill] sm:$0xff] }
 0x46a   : > { %10429 = vmatprep.subr.msk.mxu1 %vm590_vm0, %v8880_v38 }
 0x46c   : > { %10335 = vmatmul.mubr.msk.f32.gmra.mrb[18].mxu1 %vm279_vm1, %v13751_v48 }
 0x46d   : > { %10337 = vmatprep.mubr.msk.f32.mxu1 %vm279_vm1, %v13752_v57 }
 0x470   : > { %10338 = vmatmul.mubr.msk.f32.gmra.mrb[20].mxu1 %vm279_vm1, %v13753_v58 }
 0x471   : > { %10340 = vmatprep.mubr.msk.f32.mxu1 %vm279_vm1, %v13754_v12 }
 0x474   : > { %10341 = vmatmul.mubr.msk.f32.gmra.mrb[22].mxu1 %vm279_vm1, %v13755_v13 }
 0x475   : > { %10343 = vmatprep.mubr.msk.f32.mxu1 %vm279_vm1, %v13756_v24 }
 0x478   : > { %10344 = vmatmul.mubr.msk.f32.gmra.mrb[24].mxu1 %vm279_vm1, %v13757_v25  ;;  %v13765_v25 = vld [vmem:[#allocation39_spill] sm:$0xff] }
 0x479   : > { %10346 = vmatprep.mubr.msk.f32.mxu1 %vm279_vm1, %v13758_v55  ;;  %v13766_v55 = vld [vmem:[#allocation9_spill] sm:$0xff] }
 0x47c   : > { %10347 = vmatmul.mubr.msk.f32.gmra.mrb[26].mxu1 %vm279_vm1, %v13759_v44  ;;  %v13767_v44 = vld [vmem:[#allocation10_spill] sm:$0xff] }
 0x47d   : > { %10349 = vmatprep.mubr.msk.f32.mxu1 %vm279_vm1, %v13760_v51  ;;  %v13768_v51 = vld [vmem:[#allocation42_spill] sm:$0xff] }
 0x480   : > { %10350 = vmatmul.mubr.msk.f32.gmra.mrb[28].mxu1 %vm279_vm1, %v13761_v31  ;;  %v13769_v31 = vld [vmem:[#allocation43_spill] sm:$0xff] }
 0x481   : > { %10352 = vmatprep.mubr.msk.f32.mxu1 %vm279_vm1, %v13762_v9 }
 0x484   : > { %10353 = vmatmul.mubr.msk.f32.gmra.mrb[30].mxu1 %vm279_vm1, %v13763_v39  ;;  %v13770_v39 = vld [vmem:[#allocation44_spill] sm:$0xff] }
 0x485   : > { %10355 = vmatprep.mubr.msk.f32.mxu1 %vm279_vm1, %v13764_v30  ;;  %v13771_v30 = vld [vmem:[#allocation45_spill] sm:$0xff] }
 0x488   : > { %10356 = vmatmul.mubr.msk.f32.gmra.mrb[32].mxu1 %vm279_vm1, %v13765_v25  ;;  %v13772_v25 = vld [vmem:[#allocation46_spill] sm:$0xff] }
 0x489   : > { %10358 = vmatprep.mubr.msk.f32.mxu1 %vm279_vm1, %v13766_v55 }
 0x48c   : > { %10359 = vmatmul.mubr.msk.f32.gmra.mrb[34].mxu1 %vm279_vm1, %v13767_v44  ;;  %v13773_v44 = vld [vmem:[#allocation48_spill] sm:$0xff] }
 0x48d   : > { %10361 = vmatprep.mubr.msk.f32.mxu1 %vm279_vm1, %v13768_v51 }
 0x490   : > { %10362 = vmatmul.mubr.msk.f32.gmra.mrb[36].mxu1 %vm279_vm1, %v13769_v31  ;;  %v4116_v31 = vld [vmem:[%s11423_s11 + $0x78] sm:$0xff] }
 0x491   : > { %10364 = vmatprep.mubr.msk.f32.mxu1 %vm279_vm1, %v13770_v39  ;;  %v13059_v39 = vld [vmem:[#allocation3 + $0x182] sm:$0xff] }
 0x492   : > { %13774 = vst [vmem:[#allocation40_spill] sm:$0xff] %v13059_v39 }
 0x494   : > { %10365 = vmatmul.mubr.msk.f32.gmra.mrb[38].mxu1 %vm279_vm1, %v13771_v30  ;;  %v4114_v30 = vld [vmem:[%s11423_s11 + $0x68] sm:$0xff] }
 0x495   : > { %10367 = vmatprep.mubr.msk.f32.mxu1 %vm279_vm1, %v13772_v25  ;;  %v13074_v25 = vld [vmem:[%s13474_s5 + $0x20] sm:$0xf] }
 0x498   : > { %10368 = vmatmul.mubr.msk.f32.gmra.mrb[40].mxu1 %vm279_vm1, %v12827_v28  ;;  %v13063_v28 = vld [vmem:[#allocation3 + $0x18a] sm:$0xff] }
 0x499   : > { %10370 = vmatprep.mubr.msk.f32.mxu1 %vm279_vm1, %v13773_v44  ;;  %13775 = vst [vmem:[#allocation41_spill] sm:$0xff] %v13063_v28  ;;  %v6908_v44 = vld [vmem:[#allocation3 + $0x30] sm:$0xff] }
 0x49c   : > { %10371 = vmatmul.mubr.msk.f32.gmra.mrb[42].mxu1 %vm279_vm1, %v12835_v16  ;;  %v4101_v16 = vld [vmem:[%s11423_s11] sm:$0xff] }
 0x49d   : > { %10373 = vmatprep.mubr.msk.f32.mxu1 %vm279_vm1, %v12839_v8  ;;  %v4102_v8 = vld [vmem:[%s11423_s11 + $0x8] sm:$0xff]  ;;  %10031 = vmatprep.mubr.msk.f32.mxu0 %vm279_vm1, %v4101_v16  ;;  %v6911_v16 = vld [vmem:[#allocation3 + $0x50] sm:$0xff] }
 0x49e   : > { %10032 = vmatmul.mubr.msk.f32.vlgmr.msra.gmra.mrb[32].mxu0 %vm279_vm1, %v4102_v8  ;;  %v6912_v8 = vld [vmem:[#allocation3 + $0x60] sm:$0xff] }
 0x4a0   : > { %10374 = vmatmul.mubr.msk.f32.gmra.mrb[44].mxu1 %vm279_vm1, %v12843_v43  ;;  %v6909_v43 = vld [vmem:[#allocation3 + $0x38] sm:$0xff] }
 0x4a1   : > { %10376 = vmatprep.mubr.msk.f32.mxu1 %vm279_vm1, %v13059_v39  ;;  %v4104_v39 = vld [vmem:[%s11423_s11 + $0x18] sm:$0xff] }
 0x4a4   : > { %10377 = vmatmul.mubr.msk.f32.gmra.mrb[46].mxu1 %vm279_vm1, %v13063_v28  ;;  %v6910_v28 = vld [vmem:[#allocation3 + $0x48] sm:$0xff] }
 0x4a5   : > { %10381 = vmatprep.mubr.msk.f32.mxu1 %vm279_vm1, %v6908_v44  ;;  %v4103_v44 = vld [vmem:[%s11423_s11 + $0x10] sm:$0xff] }
 0x4a6   : > { %10034 = vmatprep.mubr.msk.f32.mxu0 %vm279_vm1, %v4103_v44  ;;  %v6914_v44 = vld [vmem:[#allocation3 + $0x78] sm:$0xff] }
 0x4a7   : > { %10035 = vmatmul.mubr.msk.f32.gmra.mrb[34].mxu0 %vm279_vm1, %v4104_v39  ;;  %v4107_v39 = vld [vmem:[%s11423_s11 + $0x30] sm:$0xff] }
 0x4a8   : > { %10382 = vmatmul.mubr.msk.f32.vlgmr.msra.gmra.mrb[16].mxu1 %vm279_vm1, %v6909_v43  ;;  %v4105_v43 = vld [vmem:[%s11423_s11 + $0x20] sm:$0xff] }
 0x4a9   : > { %10430 = vmatpush3.msk.msra.mxu1 %vm590_vm0, %v8880_v38  ;;  %10384 = vmatprep.mubr.msk.f32.mxu1 %vm279_vm1, %v6910_v28  ;;  %v4106_v28 = vld [vmem:[%s11423_s11 + $0x28] sm:$0xff]  ;;  %v6913_v38 = vld [vmem:[#allocation3 + $0x68] sm:$0xff] }
 0x4aa   : > { %10479 = vmatprep.subr.msk.mxu1 %vm590_vm0, %v13074_v25  ;;  %10037 = vmatprep.mubr.msk.f32.mxu0 %vm279_vm1, %v4105_v43  ;;  %v6916_v43 = vld [vmem:[#allocation3 + $0x90] sm:$0xff] }
 0x4ab   : > { %10038 = vmatmul.mubr.msk.f32.gmra.mrb[36].mxu0 %vm279_vm1, %v4106_v28  ;;  %v4109_v28 = vld [vmem:[%s11423_s11 + $0x40] sm:$0xff] }
 0x4ac   : > { %10385 = vmatmul.mubr.msk.f32.gmra.mrb[18].mxu1 %vm279_vm1, %v6911_v16  ;;  %v4108_v16 = vld [vmem:[%s11423_s11 + $0x38] sm:$0xff]  ;;  %10040 = vmatprep.mubr.msk.f32.mxu0 %vm279_vm1, %v4107_v39 }
 0x4ad   : > { %10387 = vmatprep.mubr.msk.f32.mxu1 %vm279_vm1, %v6912_v8  ;;  %v6915_v8 = vld [vmem:[#allocation3 + $0x80] sm:$0xff]  ;;  %v6918_v39 = vld [vmem:[#allocation3 + $0xa8] sm:$0xff] }
 0x4af   : > { %10041 = vmatmul.mubr.msk.f32.gmra.mrb[38].mxu0 %vm279_vm1, %v4108_v16  ;;  %v4111_v16 = vld [vmem:[%s11423_s11 + $0x50] sm:$0xff] }
 0x4b0   : > { %10388 = vmatmul.mubr.msk.f32.gmra.mrb[20].mxu1 %vm279_vm1, %v6913_v38  ;;  %v4110_v38 = vld [vmem:[%s11423_s11 + $0x48] sm:$0xff]  ;;  %10043 = vmatprep.mubr.msk.f32.mxu0 %vm279_vm1, %v4109_v28  ;;  %v6920_v28 = vld [vmem:[#allocation3 + $0xc0] sm:$0xff] }
 0x4b1   : > { %10390 = vmatprep.mubr.msk.f32.mxu1 %vm279_vm1, %v6914_v44  ;;  %v6917_v44 = vld [vmem:[#allocation3 + $0x98] sm:$0xff] }
 0x4b3   : > { %10044 = vmatmul.mubr.msk.f32.gmra.mrb[40].mxu0 %vm279_vm1, %v4110_v38  ;;  %v4113_v38 = vld [vmem:[%s11423_s11 + $0x60] sm:$0xff] }
 0x4b4   : > { %10391 = vmatmul.mubr.msk.f32.gmra.mrb[22].mxu1 %vm279_vm1, %v6915_v8  ;;  %v4112_v8 = vld [vmem:[%s11423_s11 + $0x58] sm:$0xff]  ;;  %10046 = vmatprep.mubr.msk.f32.mxu0 %vm279_vm1, %v4111_v16  ;;  %v4115_v16 = vld [vmem:[%s11423_s11 + $0x70] sm:$0xff] }
 0x4b5   : > { %10393 = vmatprep.mubr.msk.f32.mxu1 %vm279_vm1, %v6916_v43  ;;  %v6919_v43 = vld [vmem:[#allocation3 + $0xb0] sm:$0xff] }
 0x4b7   : > { %10047 = vmatmul.mubr.msk.f32.gmra.mrb[42].mxu0 %vm279_vm1, %v4112_v8  ;;  %v6923_v8 = vld [vmem:[#allocation3 + $0xe0] sm:$0xff] }
 0x4b8   : > { %10394 = vmatmul.mubr.msk.f32.gmra.mrb[24].mxu1 %vm279_vm1, %v6917_v44  ;;  %10049 = vmatprep.mubr.msk.f32.mxu0 %vm279_vm1, %v4113_v38  ;;  %v6921_v44 = vld [vmem:[#allocation3 + $0xc8] sm:$0xff] }
 0x4b9   : > { %10396 = vmatprep.mubr.msk.f32.mxu1 %vm279_vm1, %v6918_v39  ;;  %v6922_v39 = vld [vmem:[#allocation3 + $0xd8] sm:$0xff] }
 0x4bb   : > { %10050 = vmatmul.mubr.msk.f32.gmra.mrb[44].mxu0 %vm279_vm1, %v4114_v30 }
 0x4bc   : > { %10397 = vmatmul.mubr.msk.f32.gmra.mrb[26].mxu1 %vm279_vm1, %v6919_v43  ;;  %10052 = vmatprep.mubr.msk.f32.mxu0 %vm279_vm1, %v4115_v16 }
 0x4bd   : > { %10399 = vmatprep.mubr.msk.f32.mxu1 %vm279_vm1, %v6920_v28  ;;  %v13315_v28 = vld [vmem:[%s13475_s6] ss:$0 sm:$0xff] }
 0x4bf   : > { %10053 = vmatmul.mubr.msk.f32.gmra.mrb[46].mxu0 %vm279_vm1, %v4116_v31 }
 0x4c0   : > { %10400 = vmatmul.mubr.msk.f32.gmra.mrb[28].mxu1 %vm279_vm1, %v6921_v44 }
 0x4c1   : > { %10402 = vmatprep.mubr.msk.f32.mxu1 %vm279_vm1, %v6922_v39 }
 0x4c4   : > { %10403 = vmatmul.mubr.msk.f32.gmra.mrb[30].mxu1 %vm279_vm1, %v6923_v8 }
 0x4c5   : > { %10405 = vmatprep.mubr.msk.f32.mxu1 %vm279_vm1, %v12490_v6  ;;  %v6938_v6 = vld [vmem:[#allocation3 + $0x198] sm:$0xff] }
 0x4c8   : > { %10406 = vmatmul.mubr.msk.f32.gmra.mrb[32].mxu1 %vm279_vm1, %v12492_v2  ;;  %v6939_v2 = vld [vmem:[#allocation3 + $0x1a0] sm:$0xff] }
 0x4c9   : > { %10408 = vmatprep.mubr.msk.f32.mxu1 %vm279_vm1, %v12502_v45  ;;  %v7328_v45 = vld [vmem:[#allocation3 + $0x199] sm:$0xff] }
 0x4cc   : > { %10409 = vmatmul.mubr.msk.f32.gmra.mrb[34].mxu1 %vm279_vm1, %v12504_v46  ;;  %v7329_v46 = vld [vmem:[#allocation3 + $0x1a1] sm:$0xff] }
 0x4cd   : > { %10411 = vmatprep.mubr.msk.f32.mxu1 %vm279_vm1, %v12516_v62  ;;  %v13776_v62 = vld [vmem:[#allocation25_spill] sm:$0xff] }
 0x4d0   : > { %10412 = vmatmul.mubr.msk.f32.gmra.mrb[36].mxu1 %vm279_vm1, %v12518_v63  ;;  %v13777_v63 = vld [vmem:[#allocation26_spill] sm:$0xff] }
 0x4d1   : > { %10414 = vmatprep.mubr.msk.f32.mxu1 %vm279_vm1, %v12532_v19  ;;  %v13778_v19 = vld [vmem:[#allocation27_spill] sm:$0xff] }
 0x4d4   : > { %10415 = vmatmul.mubr.msk.f32.gmra.mrb[38].mxu1 %vm279_vm1, %v12534_v22  ;;  %v13779_v22 = vld [vmem:[#allocation28_spill] sm:$0xff] }
 0x4d5   : > { %10417 = vmatprep.mubr.msk.f32.mxu1 %vm279_vm1, %v12544_v32  ;;  %v13780_v32 = vld [vmem:[#allocation30_spill] sm:$0xff] }
 0x4d8   : > { %10418 = vmatmul.mubr.msk.f32.gmra.mrb[40].mxu1 %vm279_vm1, %v12546_v42  ;;  %v13781_v42 = vld [vmem:[#allocation35_spill] sm:$0xff] }
 0x4d9   : > { %10420 = vmatprep.mubr.msk.f32.mxu1 %vm279_vm1, %v12559_v4  ;;  %v13784_v4 = vld [vmem:[#allocation10_spill] sm:$0xff] }
 0x4dc   : > { %10421 = vmatmul.mubr.msk.f32.gmra.mrb[42].mxu1 %vm279_vm1, %v12561_v41  ;;  %v13785_v41 = vld [vmem:[#allocation43_spill] sm:$0xff] }
 0x4dd   : > { %10423 = vmatprep.mubr.msk.f32.mxu1 %vm279_vm1, %v12913_v59 }
 0x4e0   : > { %10424 = vmatmul.mubr.msk.f32.gmra.mrb[44].mxu1 %vm279_vm1, %v12917_v60 }
 0x4e1   : > { %10426 = vmatprep.mubr.msk.f32.mxu1 %vm279_vm1, %v6938_v6 }
 0x4e4   : > { %10427 = vmatmul.mubr.msk.f32.gmra.mrb[46].mxu1 %vm279_vm1, %v6939_v2 }
 0x4e5   : > { %10431 = vmatprep.mubr.msk.f32.mxu1 %vm279_vm1, %v12594_v52  ;;  %v13790_v52 = vld [vmem:[#allocation48_spill] sm:$0xff] }
 0x4e8   : > { %10432 = vmatmul.mubr.msk.f32.vlgmr.msra.gmra.mrb[16].mxu1 %vm279_vm1, %v12600_v3  ;;  %v13792_v3 = vld [vmem:[#allocation50_spill] sm:$0xff] }
 0x4e9   : > { %10480 = vmatpush3.msk.msra.mxu1 %vm590_vm0, %v13074_v25  ;;  %10434 = vmatprep.mubr.msk.f32.mxu1 %vm279_vm1, %v12604_v54  ;;  %v13793_v54 = vld [vmem:[#allocation51_spill] sm:$0xff] }
 0x4ec   : > { %10435 = vmatmul.mubr.msk.f32.gmra.mrb[18].mxu1 %vm279_vm1, %v12612_v0  ;;  %v13795_v0 = vld [vmem:[#allocation41_spill] sm:$0xff] }
 0x4ed   : > { %10437 = vmatprep.mubr.msk.f32.mxu1 %vm279_vm1, %v12616_v1  ;;  %v7719_v1 = vld [vmem:[#allocation3 + $0x1a2] sm:$0xff] }
 0x4f0   : > { %10438 = vmatmul.mubr.msk.f32.gmra.mrb[20].mxu1 %vm279_vm1, %v12624_v14 }
 0x4f1   : > { %10440 = vmatprep.mubr.msk.f32.mxu1 %vm279_vm1, %v12628_v15 }
 0x4f4   : > { %10441 = vmatmul.mubr.msk.f32.gmra.mrb[22].mxu1 %vm279_vm1, %v12632_v17 }
 0x4f5   : > { %10443 = vmatprep.mubr.msk.f32.mxu1 %vm279_vm1, %v12636_v18 }
 0x4f8   : > { %10444 = vmatmul.mubr.msk.f32.gmra.mrb[24].mxu1 %vm279_vm1, %v12640_v23 }
 0x4f9   : > { %10446 = vmatprep.mubr.msk.f32.mxu1 %vm279_vm1, %v12644_v26 }
 0x4fc   : > { %10447 = vmatmul.mubr.msk.f32.gmra.mrb[26].mxu1 %vm279_vm1, %v12648_v27 }
 0x4fd   : > { %10449 = vmatprep.mubr.msk.f32.mxu1 %vm279_vm1, %v12652_v5 }
 0x500   : > { %10450 = vmatmul.mubr.msk.f32.gmra.mrb[28].mxu1 %vm279_vm1, %v12656_v33 }
 0x501   : > { %10452 = vmatprep.mubr.msk.f32.mxu1 %vm279_vm1, %v12660_v35 }
 0x504   : > { %10453 = vmatmul.mubr.msk.f32.gmra.mrb[30].mxu1 %vm279_vm1, %v12664_v10 }
 0x505   : > { %10455 = vmatprep.mubr.msk.f32.mxu1 %vm279_vm1, %v12668_v7 }
 0x508   : > { %10456 = vmatmul.mubr.msk.f32.gmra.mrb[32].mxu1 %vm279_vm1, %v12672_v61  ;;  %v7718_v61 = vld [vmem:[#allocation3 + $0x19a] sm:$0xff] }
 0x509   : > { %10458 = vmatprep.mubr.msk.f32.mxu1 %vm279_vm1, %v12676_v56  ;;  %v13794_v56 = vld [vmem:[#allocation40_spill] sm:$0xff] }
 0x50c   : > { %10459 = vmatmul.mubr.msk.f32.gmra.mrb[34].mxu1 %vm279_vm1, %v12680_v53  ;;  %v13791_v53 = vld [vmem:[#allocation49_spill] sm:$0xff] }
 0x50d   : > { %10461 = vmatprep.mubr.msk.f32.mxu1 %vm279_vm1, %v12684_v50  ;;  %v13789_v50 = vld [vmem:[#allocation47_spill] sm:$0xff] }
 0x510   : > { %10462 = vmatmul.mubr.msk.f32.gmra.mrb[36].mxu1 %vm279_vm1, %v12688_v49  ;;  %v13788_v49 = vld [vmem:[#allocation46_spill] sm:$0xff] }
 0x511   : > { %10464 = vmatprep.mubr.msk.f32.mxu1 %vm279_vm1, %v12692_v36  ;;  %v13787_v36 = vld [vmem:[#allocation45_spill] sm:$0xff] }
 0x514   : > { %10465 = vmatmul.mubr.msk.f32.gmra.mrb[38].mxu1 %vm279_vm1, %v12696_v34  ;;  %v13786_v34 = vld [vmem:[#allocation44_spill] sm:$0xff] }
 0x515   : > { %10467 = vmatprep.mubr.msk.f32.mxu1 %vm279_vm1, %v12700_v29  ;;  %v13783_v29 = vld [vmem:[#allocation39_spill] sm:$0xff] }
 0x518   : > { %10468 = vmatmul.mubr.msk.f32.gmra.mrb[40].mxu1 %vm279_vm1, %v13746_v11 }
 0x519   : > { %10470 = vmatprep.mubr.msk.f32.mxu1 %vm279_vm1, %v12708_v40  ;;  %v13782_v40 = vld [vmem:[#allocation37_spill] sm:$0xff] }
 0x51c   : > { %10471 = vmatmul.mubr.msk.f32.gmra.mrb[42].mxu1 %vm279_vm1, %v13747_v20 }
 0x51d   : > { %10473 = vmatprep.mubr.msk.f32.mxu1 %vm279_vm1, %v12986_v21  ;;  %v13298_v21 = vld [vmem:[%s13471_s2] ss:$0 sm:$0xff] }
 0x520   : > { %10474 = vmatmul.mubr.msk.f32.gmra.mrb[44].mxu1 %vm279_vm1, %v12990_v37  ;;  %v13796_v37 = vld [vmem:[#allocation14_spill] sm:$0xff] }
 0x521   : > { %10476 = vmatprep.mubr.msk.f32.mxu1 %vm279_vm1, %v7328_v45  ;;  %v13799_v45 = vld [vmem:[#allocation31_spill] sm:$0xff] }
 0x524   : > { %10477 = vmatmul.mubr.msk.f32.gmra.mrb[46].mxu1 %vm279_vm1, %v7329_v46  ;;  %v13325_v46 = vadd.f32 %v13298_v21, %v13799_v45 }
 0x525   : > { %10481 = vmatprep.mubr.msk.f32.mxu1 %vm279_vm1, %v13750_v47  ;;  %v4392_v47 = vadd.f32 %v13796_v37, %v13298_v21 }
 0x527   : > { %vm4482_vm0 = vcmp.gt.f32.partialorder %v4392_v47, 0.0 }
 0x528   : > { %10482 = vmatmul.mubr.msk.f32.vlgmr.msra.gmra.mrb[16].mxu1 %vm279_vm1, %v13751_v48  ;;  %v13797_v48 = vld [vmem:[#allocation15_spill] sm:$0xff] }
 0x529   : > { %10484 = vmatprep.mubr.msk.f32.mxu1 %vm279_vm1, %v13752_v57  ;;  %v4387_v57 = vadd.f32 %v13298_v21, %v13797_v48 }
 0x52b   : > { %v4513_v31 = vmul.f32 0.2, %v4387_v57 }
 0x52c   : > { %10485 = vmatmul.mubr.msk.f32.gmra.mrb[18].mxu1 %vm279_vm1, %v13753_v58  ;;  %v13798_v58 = vld [vmem:[#allocation29_spill] sm:$0xff] }
 0x52d   : > { %10487 = vmatprep.mubr.msk.f32.mxu1 %vm279_vm1, %v13754_v12  ;;  %v4402_v12 = vadd.f32 %v13798_v58, %v13298_v21 }
 0x52f   : > { %vm4484_vm7 = vcmp.gt.f32.partialorder %v4402_v12, 0.0 }
 0x530   : > { %10488 = vmatmul.mubr.msk.f32.gmra.mrb[20].mxu1 %vm279_vm1, %v13755_v13  ;;  %v4514_v13 = vmul.f32 0.2, %v4392_v47 }
 0x531   : > { %10490 = vmatprep.mubr.msk.f32.mxu1 %vm279_vm1, %v13756_v24 }
 0x532   : > { %v13310_v30 = vsel %vm4482_vm0, %v4392_v47, %v4514_v13 }
 0x534   : > { %10491 = vmatmul.mubr.msk.f32.gmra.mrb[22].mxu1 %vm279_vm1, %v13776_v62  ;;  %v13800_v62 = vld [vmem:[#allocation33_spill] sm:$0xff] }
 0x535   : > { %10493 = vmatprep.mubr.msk.f32.mxu1 %vm279_vm1, %v13777_v63  ;;  %v13329_v63 = vadd.f32 %v13800_v62, %v13298_v21 }
 0x538   : > { %10494 = vmatmul.mubr.msk.f32.gmra.mrb[24].mxu1 %vm279_vm1, %v13778_v19 }
 0x539   : > { %10496 = vmatprep.mubr.msk.f32.mxu1 %vm279_vm1, %v13779_v22 }
 0x53c   : > { %10497 = vmatmul.mubr.msk.f32.gmra.mrb[26].mxu1 %vm279_vm1, %v13780_v32 }
 0x53d   : > { %10499 = vmatprep.mubr.msk.f32.mxu1 %vm279_vm1, %v13762_v9  ;;  %v4516_v9 = vmul.f32 0.2, %v4402_v12 }
 0x53f   : > { %v13321_v2 = vsel %vm4484_vm7, %v4402_v12, %v4516_v9 }
 0x540   : > { %10500 = vmatmul.mubr.msk.f32.gmra.mrb[28].mxu1 %vm279_vm1, %v13781_v42 }
 0x541   : > { %10502 = vmatprep.mubr.msk.f32.mxu1 %vm279_vm1, %v13782_v40 }
 0x544   : > { %10503 = vmatmul.mubr.msk.f32.gmra.mrb[30].mxu1 %vm279_vm1, %v13783_v29 }
 0x545   : > { %10505 = vmatprep.mubr.msk.f32.mxu1 %vm279_vm1, %v13766_v55 }
 0x548   : > { %10506 = vmatmul.mubr.msk.f32.gmra.mrb[32].mxu1 %vm279_vm1, %v13784_v4 }
 0x549   : > { %10508 = vmatprep.mubr.msk.f32.mxu1 %vm279_vm1, %v13768_v51 }
 0x54c   : > { %10509 = vmatmul.mubr.msk.f32.gmra.mrb[34].mxu1 %vm279_vm1, %v13785_v41 }
 0x54d   : > { %10511 = vmatprep.mubr.msk.f32.mxu1 %vm279_vm1, %v13786_v34 }
 0x550   : > { %10512 = vmatmul.mubr.msk.f32.gmra.mrb[36].mxu1 %vm279_vm1, %v13787_v36 }
 0x551   : > { %10514 = vmatprep.mubr.msk.f32.mxu1 %vm279_vm1, %v13788_v49 }
 0x554   : > { %10515 = vmatmul.mubr.msk.f32.gmra.mrb[38].mxu1 %vm279_vm1, %v13789_v50 }
 0x555   : > { %10517 = vmatprep.mubr.msk.f32.mxu1 %vm279_vm1, %v13790_v52 }
 0x558   : > { %10518 = vmatmul.mubr.msk.f32.gmra.mrb[40].mxu1 %vm279_vm1, %v13791_v53 }
 0x559   : > { %10520 = vmatprep.mubr.msk.f32.mxu1 %vm279_vm1, %v13792_v3 }
 0x55c   : > { %10521 = vmatmul.mubr.msk.f32.gmra.mrb[42].mxu1 %vm279_vm1, %v13793_v54 }
 0x55d   : > { %10523 = vmatprep.mubr.msk.f32.mxu1 %vm279_vm1, %v13794_v56 }
 0x560   : > { %10524 = vmatmul.mubr.msk.f32.gmra.mrb[44].mxu1 %vm279_vm1, %v13795_v0 }
 0x561   : > { %10526 = vmatprep.mubr.msk.f32.mxu1 %vm279_vm1, %v7718_v61 }
 0x564   : > { %10527 = vmatmul.mubr.msk.f32.gmra.mrb[46].mxu1 %vm279_vm1, %v7719_v1  ;;  %vm4481_vm1 = vcmp.gt.f32.partialorder %v4387_v57, 0.0 }
 0x565   : > { %v13318_v8 = vsel %vm4481_vm1, %v4387_v57, %v4513_v31 }
 0x571   : > { %v10033_v7 = vpop.f32.mrb[32].mxu0 }
 0x572   : > { %v4306_v10 = vpop.f32.mrb[33].mxu0  ;;  %v4312_v24 = vadd.f32 %v10033_v7, %v13298_v21 }
 0x573   : > { %v4307_v25 = vadd.f32 %v13298_v21, %v4306_v10 }
 0x574   : > { %v4498_v43 = vmul.f32 0.2, %v4312_v24  ;;  %vm4466_vm8 = vcmp.gt.f32.partialorder %v4312_v24, 0.0 }
 0x575   : > { %v4497_v38 = vmul.f32 0.2, %v4307_v25  ;;  %vm4465_vm9 = vcmp.gt.f32.partialorder %v4307_v25, 0.0 }
 0x576   : > { %v4530_v32 = vsel %vm4466_vm8, %v4312_v24, %v4498_v43 }
 0x577   : > { %v4529_v40 = vsel %vm4465_vm9, %v4307_v25, %v4497_v38 }
 0x57a   : > { %v10036_v14 = vpop.f32.mrb[34].mxu0 }
 0x57b   : > { %v4316_v15 = vpop.f32.mrb[35].mxu0  ;;  %v4322_v55 = vadd.f32 %v10036_v14, %v13298_v21 }
 0x57c   : > { %v4317_v51 = vadd.f32 %v13298_v21, %v4316_v15 }
 0x57d   : > { %v4500_v39 = vmul.f32 0.2, %v4322_v55  ;;  %vm4468_vm10 = vcmp.gt.f32.partialorder %v4322_v55, 0.0 }
 0x57e   : > { %v10039_v17 = vpop.f32.mrb[36].mxu0  ;;  %v4499_v16 = vmul.f32 0.2, %v4317_v51  ;;  %vm4467_vm11 = vcmp.gt.f32.partialorder %v4317_v51, 0.0 }
 0x57f   : > { %v4326_v18 = vpop.f32.mrb[37].mxu0  ;;  %v4332_v44 = vadd.f32 %v10039_v17, %v13298_v21  ;;  %v4532_v34 = vsel %vm4468_vm10, %v4322_v55, %v4500_v39 }
 0x580   : > { %v4327_v6 = vadd.f32 %v13298_v21, %v4326_v18  ;;  %v4531_v36 = vsel %vm4467_vm11, %v4317_v51, %v4499_v16 }
 0x581   : > { %v4502_v4 = vmul.f32 0.2, %v4332_v44  ;;  %vm4470_vm12 = vcmp.gt.f32.partialorder %v4332_v44, 0.0 }
 0x582   : > { %v10042_v23 = vpop.f32.mrb[38].mxu0  ;;  %vm4469_vm14 = vcmp.gt.f32.partialorder %v4327_v6, 0.0  ;;  %v4501_v50 = vmul.f32 0.2, %v4327_v6 }
 0x583   : > { %v4336_v26 = vpop.f32.mrb[39].mxu0  ;;  %v4342_v22 = vadd.f32 %v10042_v23, %v13298_v21  ;;  %v4534_v1 = vsel %vm4470_vm12, %v4332_v44, %v4502_v4 }
 0x584   : > { %v4337_v54 = vadd.f32 %v13298_v21, %v4336_v26  ;;  %v4533_v23 = vsel %vm4469_vm14, %v4327_v6, %v4501_v50 }
 0x585   : > { %v4504_v3 = vmul.f32 0.2, %v4342_v22  ;;  %vm4472_vm2 = vcmp.gt.f32.partialorder %v4342_v22, 0.0 }
 0x586   : > { %v13279_v27 = vpop.f32.mrb[40].mxu0  ;;  %v4503_v48 = vmul.f32 0.2, %v4337_v54  ;;  %vm4471_vm5 = vcmp.gt.f32.partialorder %v4337_v54, 0.0 }
 0x587   : > { %v13281_v5 = vpop.f32.mrb[41].mxu0  ;;  %v4352_v15 = vadd.f32 %v13279_v27, %v13298_v21  ;;  %v4536_v47 = vsel %vm4472_vm2, %v4342_v22, %v4504_v3 }
 0x588   : > { %v4347_v27 = vadd.f32 %v13298_v21, %v13281_v5  ;;  %v4535_v44 = vsel %vm4471_vm5, %v4337_v54, %v4503_v48 }
 0x589   : > { %v4506_v55 = vmul.f32 0.2, %v4352_v15  ;;  %vm4474_vm1 = vcmp.gt.f32.partialorder %v4352_v15, 0.0 }
 0x58a   : > { %v13283_v33 = vpop.f32.mrb[42].mxu0  ;;  %vm4473_vm7 = vcmp.gt.f32.partialorder %v4347_v27, 0.0  ;;  %v4505_v6 = vmul.f32 0.2, %v4347_v27 }
 0x58b   : > { %v13285_v35 = vpop.f32.mrb[43].mxu0  ;;  %v4362_v9 = vadd.f32 %v13283_v33, %v13298_v21 }
 0x58c   : > { %v4357_v33 = vadd.f32 %v13298_v21, %v13285_v35 }
 0x58d   : > { %vm4476_vm10 = vcmp.gt.f32.partialorder %v4362_v9, 0.0 }
 0x58e   : > { %v13287_v59 = vpop.f32.mrb[44].mxu0  ;;  %v4507_v3 = vmul.f32 0.2, %v4357_v33 }
 0x58f   : > { %v13289_v60 = vpop.f32.mrb[45].mxu0  ;;  %v4372_v35 = vadd.f32 %v13287_v59, %v13298_v21 }
 0x591   : > { %vm4478_vm14 = vcmp.gt.f32.partialorder %v4372_v35, 0.0 }
 0x592   : > { %v13291_v11 = vpop.f32.mrb[46].mxu0 }
 0x593   : > { %v13293_v20 = vpop.f32.mrb[47].mxu0 }
 0x5fb   : > { %v10483_v19 = vpop.f32.mrb[16].mxu1 }
 0x5fc   : > { %v10563_v42 = vadd.f32 %v10483_v19, %v13315_v28  ;;  %v7887_v29 = vpop.f32.mrb[17].mxu1 }
 0x5fd   : > { %v10564_v41 = vadd.f32 %v13315_v28, %v7887_v29  ;;  %v4538_v29 = vsel %vm4474_vm1, %v4352_v15, %v4506_v55  ;;  %v4510_v15 = vmul.f32 0.2, %v4372_v35 }
 0x5fe   : > { %vm8079_vm13 = vcmp.gt.f32.partialorder %v10563_v42, 0.0  ;;  %v8111_v49 = vmul.f32 0.2, %v10563_v42 }
 0x5ff   : > { %vm8078_vm15 = vcmp.gt.f32.partialorder %v10564_v41, 0.0  ;;  %v8110_v52 = vmul.f32 0.2, %v10564_v41  ;;  %v10486_v53 = vpop.f32.mrb[18].mxu1 }
 0x600   : > { %v8143_v56 = vsel %vm8079_vm13, %v10563_v42, %v8111_v49  ;;  %v10565_v61 = vadd.f32 %v10486_v53, %v13315_v28  ;;  %v7897_v0 = vpop.f32.mrb[19].mxu1  ;;  %v4508_v42 = vmul.f32 0.2, %v4362_v9  ;;  %vm4475_vm13 = vcmp.gt.f32.partialorder %v4357_v33, 0.0 }
 0x601   : > { %v8175_v7 = vadd.f32 %v8143_v56, %v4530_v32  ;;  %v8142_v10 = vsel %vm8078_vm15, %v10564_v41, %v8110_v52  ;;  %v10566_v14 = vadd.f32 %v13315_v28, %v7897_v0  ;;  %v4539_v48 = vsel %vm4475_vm13, %v4357_v33, %v4507_v3 }
 0x602   : > { %v8174_v17 = vadd.f32 %v8142_v10, %v4529_v40  ;;  %vm8081_vm3 = vcmp.gt.f32.partialorder %v10565_v61, 0.0  ;;  %v8113_v18 = vmul.f32 0.2, %v10565_v61 }
 0x603   : > { %8207 = vst [vmem:[%s13340_s15 + $0x8] sm:$0xff] %v8175_v7  ;;  %vm8080_vm4 = vcmp.gt.f32.partialorder %v10566_v14, 0.0  ;;  %v8112_v26 = vmul.f32 0.2, %v10566_v14  ;;  %v10489_v37 = vpop.f32.mrb[20].mxu1  ;;  %v4367_v7 = vadd.f32 %v13298_v21, %v13289_v60 }
 0x604   : > { %8206 = vst [vmem:[%s13340_s15] sm:$0xff] %v8174_v17  ;;  %v8145_v57 = vsel %vm8081_vm3, %v10565_v61, %v8113_v18  ;;  %v10567_v58 = vadd.f32 %v10489_v37, %v13315_v28  ;;  %v7907_v12 = vpop.f32.mrb[21].mxu1  ;;  %v4540_v61 = vsel %vm4476_vm10, %v4362_v9, %v4508_v42 }
 0x605   : > { %v8177_v13 = vadd.f32 %v8145_v57, %v4532_v34  ;;  %v8144_v24 = vsel %vm8080_vm4, %v10566_v14, %v8112_v26  ;;  %v10568_v25 = vadd.f32 %v13315_v28, %v7907_v12  ;;  %v4382_v26 = vadd.f32 %v13291_v11, %v13298_v21 }
 0x606   : > { %v8176_v51 = vadd.f32 %v8144_v24, %v4531_v36  ;;  %vm8083_vm6 = vcmp.gt.f32.partialorder %v10567_v58, 0.0  ;;  %v8115_v31 = vmul.f32 0.2, %v10567_v58  ;;  %v4537_v36 = vsel %vm4473_vm7, %v4347_v27, %v4505_v6 }
 0x607   : > { %8209 = vst [vmem:[%s13340_s15 + $0x18] sm:$0xff] %v8177_v13  ;;  %vm8082_vm0 = vcmp.gt.f32.partialorder %v10568_v25, 0.0  ;;  %v8114_v43 = vmul.f32 0.2, %v10568_v25  ;;  %v10492_v38 = vpop.f32.mrb[22].mxu1  ;;  %v4377_v12 = vadd.f32 %v13298_v21, %v13293_v20  ;;  %v4542_v13 = vsel %vm4478_vm14, %v4372_v35, %v4510_v15  ;;  %v13804_v15 = vld [vmem:[#allocation4_spill] sm:$0xff] }
 0x608   : > { %8208 = vst [vmem:[%s13340_s15 + $0x10] sm:$0xff] %v8176_v51  ;;  %v8147_v5 = vsel %vm8083_vm6, %v10567_v58, %v8115_v31  ;;  %v10569_v39 = vadd.f32 %v10492_v38, %v13315_v28  ;;  %v7917_v16 = vpop.f32.mrb[23].mxu1  ;;  %v4509_v58 = vmul.f32 0.2, %v4367_v7  ;;  %vm4477_vm3 = vcmp.gt.f32.partialorder %v4367_v7, 0.0 }
 0x609   : > { %v8179_v45 = vadd.f32 %v8147_v5, %v4534_v1  ;;  %v8146_v62 = vsel %vm8082_vm0, %v10568_v25, %v8114_v43  ;;  %v10570_v19 = vadd.f32 %v13315_v28, %v7917_v16  ;;  %v4512_v31 = vmul.f32 0.2, %v4382_v26 }
 0x60a   : > { %v8178_v22 = vadd.f32 %v8146_v62, %v4533_v23  ;;  %vm8085_vm8 = vcmp.gt.f32.partialorder %v10569_v39, 0.0  ;;  %v8117_v32 = vmul.f32 0.2, %v10569_v39  ;;  %vm4480_vm5 = vcmp.gt.f32.partialorder %v4382_v26, 0.0 }
 0x60b   : > { %8211 = vst [vmem:[%s13340_s15 + $0x28] sm:$0xff] %v8179_v45  ;;  %vm8084_vm9 = vcmp.gt.f32.partialorder %v10570_v19, 0.0  ;;  %v8116_v40 = vmul.f32 0.2, %v10570_v19  ;;  %v10495_v4 = vpop.f32.mrb[24].mxu1  ;;  %v4541_v20 = vsel %vm4477_vm3, %v4367_v7, %v4509_v58  ;;  %vm4483_vm0 = vcmp.gt.f32.partialorder %v13325_v46, 0.0 }
 0x60c   : > { %8210 = vst [vmem:[%s13340_s15 + $0x20] sm:$0xff] %v8178_v22  ;;  %v8149_v41 = vsel %vm8085_vm8, %v10569_v39, %v8117_v32  ;;  %v10571_v34 = vadd.f32 %v10495_v4, %v13315_v28  ;;  %v7927_v49 = vpop.f32.mrb[25].mxu1  ;;  %v4511_v5 = vmul.f32 0.2, %v4377_v12  ;;  %vm4479_vm1 = vcmp.gt.f32.partialorder %v4377_v12, 0.0 }
 0x60d   : > { %v8181_v50 = vadd.f32 %v8149_v41, %v4536_v47  ;;  %v8148_v52 = vsel %vm8084_vm9, %v10570_v19, %v8116_v40  ;;  %v10572_v53 = vadd.f32 %v13315_v28, %v7927_v49  ;;  %v4515_v45 = vmul.f32 0.2, %v13325_v46 }
 0x60e   : > { %v8180_v54 = vadd.f32 %v8148_v52, %v4535_v44  ;;  %vm8087_vm11 = vcmp.gt.f32.partialorder %v10571_v34, 0.0  ;;  %v8119_v56 = vmul.f32 0.2, %v10571_v34  ;;  %v4544_v32 = vsel %vm4480_vm5, %v4382_v26, %v4512_v31  ;;  %v13805_v31 = vld [vmem:[#allocation5_spill] sm:$0xff] }
 0x60f   : > { %8213 = vst [vmem:[%s13340_s15 + $0x38] sm:$0xff] %v8181_v50  ;;  %vm8086_vm12 = vcmp.gt.f32.partialorder %v10572_v53, 0.0  ;;  %v8118_v0 = vmul.f32 0.2, %v10572_v53  ;;  %v10498_v1 = vpop.f32.mrb[26].mxu1  ;;  %vm4486_vm9 = vcmp.gt.f32.partialorder %v13329_v63, 0.0  ;;  %v4547_v52 = vsel %vm4483_vm0, %v13325_v46, %v4515_v45 }
 0x610   : > { %8212 = vst [vmem:[%s13340_s15 + $0x30] sm:$0xff] %v8180_v54  ;;  %v8151_v59 = vsel %vm8087_vm11, %v10571_v34, %v8119_v56  ;;  %v10573_v10 = vadd.f32 %v10498_v1, %v13315_v28  ;;  %v7937_v14 = vpop.f32.mrb[27].mxu1  ;;  %v4518_v40 = vmul.f32 0.2, %v13329_v63  ;;  %v13801_v34 = vld [vmem:[#allocation34_spill] sm:$0xff]  ;;  %v13802_v56 = vld [vmem:[#allocation36_spill] sm:$0xff] }
 0x611   : > { %v8183_v17 = vadd.f32 %v8151_v59, %v4538_v29  ;;  %v8150_v18 = vsel %vm8086_vm12, %v10572_v53, %v8118_v0  ;;  %v10574_v23 = vadd.f32 %v13315_v28, %v7937_v14  ;;  %v4543_v29 = vsel %vm4479_vm1, %v4377_v12, %v4511_v5  ;;  %v13803_v59 = vld [vmem:[#allocation38_spill] sm:$0xff] }
 0x612   : > { %v8182_v37 = vadd.f32 %v8150_v18, %v4537_v36  ;;  %vm8089_vm15 = vcmp.gt.f32.partialorder %v10573_v10, 0.0  ;;  %v8121_v47 = vmul.f32 0.2, %v10573_v10  ;;  %v4407_v36 = vadd.f32 %v13298_v21, %v13801_v34 }
 0x613   : > { %8215 = vst [vmem:[%s13340_s15 + $0x48] sm:$0xff] %v8183_v17  ;;  %vm8088_vm2 = vcmp.gt.f32.partialorder %v10574_v23, 0.0  ;;  %v8120_v60 = vmul.f32 0.2, %v10574_v23  ;;  %v10501_v57 = vpop.f32.mrb[28].mxu1  ;;  %v4550_v7 = vsel %vm4486_vm9, %v13329_v63, %v4518_v40  ;;  %v4432_v17 = vadd.f32 %v13804_v15, %v13298_v21 }
 0x614   : > { %8214 = vst [vmem:[%s13340_s15 + $0x40] sm:$0xff] %v8182_v37  ;;  %v8153_v27 = vsel %vm8089_vm15, %v10573_v10, %v8121_v47  ;;  %v10575_v24 = vadd.f32 %v10501_v57, %v13315_v28  ;;  %v7947_v11 = vpop.f32.mrb[29].mxu1  ;;  %v4417_v10 = vadd.f32 %v13298_v21, %v13803_v59  ;;  %vm4485_vm12 = vcmp.gt.f32.partialorder %v4407_v36, 0.0 }
 0x615   : > { %v8185_v25 = vadd.f32 %v8153_v27, %v4540_v61  ;;  %v8152_v55 = vsel %vm8088_vm2, %v10574_v23, %v8120_v60  ;;  %v10576_v51 = vadd.f32 %v13315_v28, %v7947_v11  ;;  %v4422_v61 = vadd.f32 %v13802_v56, %v13298_v21 }
 0x616   : > { %v8184_v9 = vadd.f32 %v8152_v55, %v4539_v48  ;;  %vm8091_vm4 = vcmp.gt.f32.partialorder %v10575_v24, 0.0  ;;  %v8123_v43 = vmul.f32 0.2, %v10575_v24  ;;  %v4517_v37 = vmul.f32 0.2, %v4407_v36 }
 0x617   : > { %8217 = vst [vmem:[%s13340_s15 + $0x58] sm:$0xff] %v8185_v25  ;;  %vm8090_vm6 = vcmp.gt.f32.partialorder %v10576_v51, 0.0  ;;  %v8122_v38 = vmul.f32 0.2, %v10576_v51  ;;  %v10504_v44 = vpop.f32.mrb[30].mxu1  ;;  %vm4488_vm14 = vcmp.gt.f32.partialorder %v4422_v61, 0.0 }
 0x618   : > { %8216 = vst [vmem:[%s13340_s15 + $0x50] sm:$0xff] %v8184_v9  ;;  %v8155_v39 = vsel %vm8091_vm4, %v10575_v24, %v8123_v43  ;;  %v10577_v16 = vadd.f32 %v10504_v44, %v13315_v28  ;;  %v7957_v6 = vpop.f32.mrb[31].mxu1  ;;  %v4520_v60 = vmul.f32 0.2, %v4422_v61  ;;  %vm4487_vm15 = vcmp.gt.f32.partialorder %v4417_v10, 0.0 }
 0x619   : > { %v8187_v62 = vadd.f32 %v8155_v39, %v4542_v13  ;;  %v8154_v19 = vsel %vm8090_vm6, %v10576_v51, %v8122_v38  ;;  %v10578_v33 = vadd.f32 %v13315_v28, %v7957_v6  ;;  %v4519_v13 = vmul.f32 0.2, %v4417_v10 }
 0x61a   : > { %v8186_v22 = vadd.f32 %v8154_v19, %v4541_v20  ;;  %vm8093_vm7 = vcmp.gt.f32.partialorder %v10577_v16, 0.0  ;;  %v8125_v42 = vmul.f32 0.2, %v10577_v16  ;;  %vm4490_vm3 = vcmp.gt.f32.partialorder %v4432_v17, 0.0 }
 0x61b   : > { %8219 = vst [vmem:[%s13340_s15 + $0x68] sm:$0xff] %v8187_v62  ;;  %vm8092_vm8 = vcmp.gt.f32.partialorder %v10578_v33, 0.0  ;;  %v8124_v4 = vmul.f32 0.2, %v10578_v33  ;;  %v10507_v41 = vpop.f32.mrb[32].mxu1  ;;  %v4427_v9 = vadd.f32 %v13298_v21, %v13805_v31  ;;  %v4549_v38 = vsel %vm4485_vm12, %v4407_v36, %v4517_v37 }
 0x61c   : > { %8218 = vst [vmem:[%s13340_s15 + $0x60] sm:$0xff] %v8186_v22  ;;  %v8157_v49 = vsel %vm8093_vm7, %v10577_v16, %v8125_v42  ;;  %v10579_v35 = vadd.f32 %v10507_v41, %v13315_v28  ;;  %v7967_v50 = vpop.f32.mrb[33].mxu1  ;;  %v4522_v25 = vmul.f32 0.2, %v4432_v17  ;;  %v4552_v44 = vsel %vm4488_vm14, %v4422_v61, %v4520_v60  ;;  %v13807_v41 = vld [vmem:[#allocation7_spill] sm:$0xff] }
 0x61d   : > { %v8189_v53 = vadd.f32 %v8157_v49, %v4544_v32  ;;  %v8156_v3 = vsel %vm8092_vm8, %v10578_v33, %v8124_v4  ;;  %v10580_v54 = vadd.f32 %v13315_v28, %v7967_v50  ;;  %v4551_v16 = vsel %vm4487_vm15, %v4417_v10, %v4519_v13 }
 0x61e   : > { %v8188_v0 = vadd.f32 %v8156_v3, %v4543_v29  ;;  %vm8095_vm10 = vcmp.gt.f32.partialorder %v10579_v35, 0.0  ;;  %v8127_v1 = vmul.f32 0.2, %v10579_v35  ;;  %v4554_v33 = vsel %vm4490_vm3, %v4432_v17, %v4522_v25  ;;  %v13808_v3 = vld [vmem:[#allocation8_spill] sm:$0xff] }
 0x61f   : > { %8221 = vst [vmem:[%s13340_s15 + $0x78] sm:$0xff] %v8189_v53  ;;  %vm8094_vm11 = vcmp.gt.f32.partialorder %v10580_v54, 0.0  ;;  %v8126_v14 = vmul.f32 0.2, %v10580_v54  ;;  %v10510_v46 = vpop.f32.mrb[34].mxu1  ;;  %vm4489_vm0 = vcmp.gt.f32.partialorder %v4427_v9, 0.0  ;;  %v4437_v34 = vadd.f32 %v13298_v21, %v13807_v41 }
 0x620   : > { %8220 = vst [vmem:[%s13340_s15 + $0x70] sm:$0xff] %v8188_v0  ;;  %v8159_v18 = vsel %vm8095_vm10, %v10579_v35, %v8127_v1  ;;  %v10581_v23 = vadd.f32 %v10510_v46, %v13315_v28  ;;  %v7977_v26 = vpop.f32.mrb[35].mxu1  ;;  %v4521_v40 = vmul.f32 0.2, %v4427_v9 }
 0x621   : > { %v8191_v63 = vadd.f32 %v8159_v18, %v13310_v30  ;;  %v8158_v47 = vsel %vm8094_vm11, %v10580_v54, %v8126_v14  ;;  %v10582_v48 = vadd.f32 %v13315_v28, %v7977_v26  ;;  %v4452_v54 = vadd.f32 %v13808_v3, %v13298_v21  ;;  %v13809_v14 = vld [vmem:[#allocation11_spill] sm:$0xff] }
 0x622   : > { %v8190_v57 = vadd.f32 %v8158_v47, %v13318_v8  ;;  %vm8097_vm13 = vcmp.gt.f32.partialorder %v10581_v23, 0.0  ;;  %v8129_v58 = vmul.f32 0.2, %v10581_v23  ;;  %v4553_v1 = vsel %vm4489_vm0, %v4427_v9, %v4521_v40 }
 0x623   : > { %8223 = vst [vmem:[%s13340_s15 + $0x88] sm:$0xff] %v8191_v63  ;;  %vm8096_vm2 = vcmp.gt.f32.partialorder %v10582_v48, 0.0  ;;  %v8128_v12 = vmul.f32 0.2, %v10582_v48  ;;  %v10513_v27 = vpop.f32.mrb[36].mxu1  ;;  %v4447_v46 = vadd.f32 %v13298_v21, %v13809_v14  ;;  %vm4491_vm10 = vcmp.gt.f32.partialorder %v4437_v34, 0.0 }
 0x624   : > { %8222 = vst [vmem:[%s13340_s15 + $0x80] sm:$0xff] %v8190_v57  ;;  %v8161_v24 = vsel %vm8097_vm13, %v10581_v23, %v8129_v58  ;;  %v10583_v30 = vadd.f32 %v10513_v27, %v13315_v28  ;;  %v7987_v11 = vpop.f32.mrb[37].mxu1  ;;  %v4523_v10 = vmul.f32 0.2, %v4437_v34  ;;  %vm4494_vm11 = vcmp.gt.f32.partialorder %v4452_v54, 0.0 }
 0x625   : > { %v8193_v8 = vadd.f32 %v8161_v24, %v13321_v2  ;;  %v8160_v55 = vsel %vm8096_vm2, %v10582_v48, %v8128_v12  ;;  %v10584_v51 = vadd.f32 %v13315_v28, %v7987_v11  ;;  %v13806_v2 = vld [vmem:[#allocation6_spill] sm:$0xff]  ;;  %v4526_v60 = vmul.f32 0.2, %v4452_v54 }
 0x626   : > { %v8192_v43 = vadd.f32 %v8160_v55, %v4547_v52  ;;  %vm8099_vm4 = vcmp.gt.f32.partialorder %v10583_v30, 0.0  ;;  %v8131_v20 = vmul.f32 0.2, %v10583_v30  ;;  %v4442_v6 = vadd.f32 %v13806_v2, %v13298_v21 }
 0x627   : > { %8225 = vst [vmem:[%s13340_s15 + $0x98] sm:$0xff] %v8193_v8  ;;  %vm8098_vm5 = vcmp.gt.f32.partialorder %v10584_v51, 0.0  ;;  %v8130_v5 = vmul.f32 0.2, %v10584_v51  ;;  %v10516_v39 = vpop.f32.mrb[38].mxu1  ;;  %v4555_v12 = vsel %vm4491_vm10, %v4437_v34, %v4523_v10  ;;  %vm4493_vm14 = vcmp.gt.f32.partialorder %v4447_v46, 0.0 }
 0x628   : > { %8224 = vst [vmem:[%s13340_s15 + $0x90] sm:$0xff] %v8192_v43  ;;  %v8163_v45 = vsel %vm8099_vm4, %v10583_v30, %v8131_v20  ;;  %v10585_v62 = vadd.f32 %v10516_v39, %v13315_v28  ;;  %v7997_v19 = vpop.f32.mrb[39].mxu1  ;;  %vm4492_vm7 = vcmp.gt.f32.partialorder %v4442_v6, 0.0  ;;  %v4524_v35 = vmul.f32 0.2, %v4442_v6  ;;  %v13810_v30 = vld [vmem:[#allocation12_spill] sm:$0xff] }
 0x629   : > { %v8195_v22 = vadd.f32 %v8163_v45, %v4550_v7  ;;  %v8162_v32 = vsel %vm8098_vm5, %v10584_v51, %v8130_v5  ;;  %v10586_v42 = vadd.f32 %v13315_v28, %v7997_v19  ;;  %v4525_v27 = vmul.f32 0.2, %v4447_v46  ;;  %v13811_v51 = vld [vmem:[#allocation13_spill] sm:$0xff] }
 0x62a   : > { %v8194_v29 = vadd.f32 %v8162_v32, %v4549_v38  ;;  %vm8101_vm6 = vcmp.gt.f32.partialorder %v10585_v62, 0.0  ;;  %v8133_v4 = vmul.f32 0.2, %v10585_v62  ;;  %v4556_v18 = vsel %vm4492_vm7, %v4442_v6, %v4524_v35 }
 0x62b   : > { %8227 = vst [vmem:[%s13340_s15 + $0xa8] sm:$0xff] %v8195_v22  ;;  %vm8100_vm1 = vcmp.gt.f32.partialorder %v10586_v42, 0.0  ;;  %v8132_v36 = vmul.f32 0.2, %v10586_v42  ;;  %v10519_v49 = vpop.f32.mrb[40].mxu1  ;;  %v4462_v11 = vadd.f32 %v13810_v30, %v13298_v21  ;;  %v4457_v31 = vadd.f32 %v13298_v21, %v13811_v51 }
 0x62c   : > { %8226 = vst [vmem:[%s13340_s15 + $0xa0] sm:$0xff] %v8194_v29  ;;  %v8165_v50 = vsel %vm8101_vm6, %v10585_v62, %v8133_v4  ;;  %v10587_v52 = vadd.f32 %v10519_v49, %v13315_v28  ;;  %v8007_v53 = vpop.f32.mrb[41].mxu1  ;;  %v4558_v5 = vsel %vm4494_vm11, %v4452_v54, %v4526_v60  ;;  %v4557_v39 = vsel %vm4493_vm14, %v4447_v46, %v4525_v27 }
 0x62d   : > { %v8197_v56 = vadd.f32 %v8165_v50, %v4552_v44  ;;  %v8164_v61 = vsel %vm8100_vm1, %v10586_v42, %v8132_v36  ;;  %v10588_v0 = vadd.f32 %v13315_v28, %v8007_v53  ;;  %vm4496_vm3 = vcmp.gt.f32.partialorder %v4462_v11, 0.0 }
 0x62e   : > { %v8196_v7 = vadd.f32 %v8164_v61, %v4551_v16  ;;  %vm8103_vm8 = vcmp.gt.f32.partialorder %v10587_v52, 0.0  ;;  %v8135_v59 = vmul.f32 0.2, %v10587_v52  ;;  %v4528_v6 = vmul.f32 0.2, %v4462_v11 }
 0x62f   : > { %8229 = vst [vmem:[%s13340_s15 + $0xb8] sm:$0xff] %v8197_v56  ;;  %vm8102_vm9 = vcmp.gt.f32.partialorder %v10588_v0, 0.0  ;;  %v8134_v15 = vmul.f32 0.2, %v10588_v0  ;;  %v10522_v17 = vpop.f32.mrb[42].mxu1  ;;  %vm4495_vm4 = vcmp.gt.f32.partialorder %v4457_v31, 0.0 }
 0x630   : > { %8228 = vst [vmem:[%s13340_s15 + $0xb0] sm:$0xff] %v8196_v7  ;;  %v8167_v23 = vsel %vm8103_vm8, %v10587_v52, %v8135_v59  ;;  %v10589_v26 = vadd.f32 %v10522_v17, %v13315_v28  ;;  %v8017_v37 = vpop.f32.mrb[43].mxu1  ;;  %v4527_v19 = vmul.f32 0.2, %v4457_v31  ;;  %v4560_v4 = vsel %vm4496_vm3, %v4462_v11, %v4528_v6 }
 0x631   : > { %v8199_v63 = vadd.f32 %v8167_v23, %v4554_v33  ;;  %v8166_v47 = vsel %vm8102_vm9, %v10588_v0, %v8134_v15  ;;  %v10590_v48 = vadd.f32 %v13315_v28, %v8017_v37 }
 0x632   : > { %v8198_v57 = vadd.f32 %v8166_v47, %v4553_v1  ;;  %vm8105_vm12 = vcmp.gt.f32.partialorder %v10589_v26, 0.0  ;;  %v8137_v58 = vmul.f32 0.2, %v10589_v26  ;;  %v4559_v34 = vsel %vm4495_vm4, %v4457_v31, %v4527_v19 }
 0x633   : > { %8231 = vst [vmem:[%s13340_s15 + $0xc8] sm:$0xff] %v8199_v63  ;;  %vm8104_vm13 = vcmp.gt.f32.partialorder %v10590_v48, 0.0  ;;  %v8136_v13 = vmul.f32 0.2, %v10590_v48  ;;  %v10525_v24 = vpop.f32.mrb[44].mxu1 }
 0x634   : > { %8230 = vst [vmem:[%s13340_s15 + $0xc0] sm:$0xff] %v8198_v57  ;;  %v8169_v25 = vsel %vm8105_vm12, %v10589_v26, %v8137_v58  ;;  %v10591_v8 = vadd.f32 %v10525_v24, %v13315_v28  ;;  %v8027_v55 = vpop.f32.mrb[45].mxu1 }
 0x635   : > { %v8201_v9 = vadd.f32 %v8169_v25, %v4556_v18  ;;  %v8168_v43 = vsel %vm8104_vm13, %v10590_v48, %v8136_v13  ;;  %v10592_v20 = vadd.f32 %v13315_v28, %v8027_v55 }
 0x636   : > { %v8200_v38 = vadd.f32 %v8168_v43, %v4555_v12  ;;  %vm8107_vm15 = vcmp.gt.f32.partialorder %v10591_v8, 0.0  ;;  %v8139_v44 = vmul.f32 0.2, %v10591_v8 }
 0x637   : > { %8233 = vst [vmem:[%s13340_s15 + $0xd8] sm:$0xff] %v8201_v9  ;;  %vm8106_vm2 = vcmp.gt.f32.partialorder %v10592_v20, 0.0  ;;  %v8138_v16 = vmul.f32 0.2, %v10592_v20  ;;  %v10528_v2 = vpop.f32.mrb[46].mxu1 }
 0x638   : > { %8232 = vst [vmem:[%s13340_s15 + $0xd0] sm:$0xff] %v8200_v38  ;;  %v8171_v21 = vsel %vm8107_vm15, %v10591_v8, %v8139_v44  ;;  %v10593_v45 = vadd.f32 %v10528_v2, %v13315_v28  ;;  %v8037_v62 = vpop.f32.mrb[47].mxu1 }
 0x639   : > { %v8203_v33 = vadd.f32 %v8171_v21, %v4558_v5  ;;  %v8170_v22 = vsel %vm8106_vm2, %v10592_v20, %v8138_v16  ;;  %v10594_v32 = vadd.f32 %v13315_v28, %v8037_v62 }
 0x63a   : > { %v8202_v42 = vadd.f32 %v8170_v22, %v4557_v39  ;;  %vm8109_vm5 = vcmp.gt.f32.partialorder %v10593_v45, 0.0  ;;  %v8141_v40 = vmul.f32 0.2, %v10593_v45 }
 0x63b   : > { %8235 = vst [vmem:[%s13340_s15 + $0xe8] sm:$0xff] %v8203_v33  ;;  %vm8108_vm6 = vcmp.gt.f32.partialorder %v10594_v32, 0.0  ;;  %v8140_v29 = vmul.f32 0.2, %v10594_v32 }
 0x63c   : > { %8234 = vst [vmem:[%s13340_s15 + $0xe0] sm:$0xff] %v8202_v42  ;;  %v8173_v41 = vsel %vm8109_vm5, %v10593_v45, %v8141_v40 }
 0x63d   : > { %v8205_v36 = vadd.f32 %v8173_v41, %v4560_v4  ;;  %v8172_v49 = vsel %vm8108_vm6, %v10594_v32, %v8140_v29 }
 0x63e   : > { %v8204_v35 = vadd.f32 %v8172_v49, %v4559_v34 }
 0x63f   : > { %8237 = vst [vmem:[%s13340_s15 + $0xf8] sm:$0xff] %v8205_v36 }
 0x640   : > { %8236 = vst [vmem:[%s13340_s15 + $0xf0] sm:$0xff] %v8204_v35 }
 0x641 PF: > { %s17_s24 = sadd.s32 1, %s11122_s24  }
 0x642   : > { %p14_p4 = scmp.ge.s32.totalorder %s17_s24, 4  }
 0x644   :  { %16 = sbr.rel (!%p14_p4) target bundleno = 1 (0x1), region = 98 }

</bundles_post_ra>
